<compile_context>
chip_gen: v5e
topology: v5e:2x2
jax: 0.10.0
libtpu: 0.0.40
codegen_flags: <defaults>
</compile_context>

<pallas_src>
import math

import jax
import jax.numpy as jnp
import numpy as np
from jax import lax
from jax.experimental import pallas as pl
from jax.experimental.pallas import tpu as pltpu

LANE = 128


def _round_up(x, m):
    return ((x + m - 1) // m) * m


# ----------------------------- Pallas kernel --------------------------------


def make_encoder_kernel(S, B, Hp, gamma1, gamma2, eps=1e-5):
    """Fused LSTM + (mean/logvar) projections + BatchNorm1d (+ exp).

    emb_ref : (S*B, Ep)  time-major flattened embeddings (lane-padded E)
    wih_ref : (Ep, 4*Hp) input->gate weights, each gate in its own 128-block
    whh_ref : (Hp, 4*Hp) hidden->gate weights, same packing
    b_ref   : (1, 4*Hp)  b_ih + b_hh, same packing
    wm_ref  : (Hp, Zp)   linear2mean^T   (zero-padded)
    wl_ref  : (Hp, Zp)   linear2logvar^T (zero-padded)
    mean_ref/var_ref : (S*B, Zp) outputs (lane-dense, Zp % 128 == 0)
    hs_ref  : (S*B, Hp)  VMEM scratch holding all hidden states
    """

    def kernel(emb_ref, wih_ref, whh_ref, b_ref, wm_ref, wl_ref,
               mean_ref, var_ref, hs_ref):
        # ---- 1) input projection hoisted out of the recurrence ------------
        gates_x = (jnp.dot(emb_ref[...], wih_ref[...],
                           preferred_element_type=jnp.float32)
                   + b_ref[...])                                    # (S*B, 4Hp)

        whh = whh_ref[...]                                          # (Hp, 4Hp)

        # ---- 2) serial recurrence, fully unrolled (S static) --------------
        h = jnp.zeros((B, Hp), jnp.float32)
        c = jnp.zeros((B, Hp), jnp.float32)
        for t in range(S):
            gates = (gates_x[t * B:(t + 1) * B, :]
                     + jnp.dot(h, whh, preferred_element_type=jnp.float32))
            # lane-aligned 128-wide gate blocks -> no XLU lane extracts
            i = jax.nn.sigmoid(gates[:, 0 * Hp:1 * Hp])
            f = jax.nn.sigmoid(gates[:, 1 * Hp:2 * Hp])
            g = jnp.tanh(gates[:, 2 * Hp:3 * Hp])
            o = jax.nn.sigmoid(gates[:, 3 * Hp:4 * Hp])
            c = f * c + i * g
            h = o * jnp.tanh(c)
            hs_ref[pl.ds(t * B, B), :] = h

        # ---- 3) fused projections + BatchNorm1d (training stats) + exp ----
        hs = hs_ref[...]                                            # (S*B, Hp)
        m = jnp.dot(hs, wm_ref[...], preferred_element_type=jnp.float32)
        lv = jnp.dot(hs, wl_ref[...], preferred_element_type=jnp.float32)

        inv_n = 1.0 / (S * B)

        def bn(x, gamma):
            mu = jnp.sum(x, axis=0, keepdims=True) * inv_n
            xc = x - mu
            var = jnp.sum(xc * xc, axis=0, keepdims=True) * inv_n   # biased
            return xc * lax.rsqrt(var + eps) * gamma                # beta == 0

        mean_ref[...] = bn(m, gamma1)
        var_ref[...] = jnp.exp(bn(lv, gamma2))

    return kernel


# -------------------------- weight packing (glue) ---------------------------


def _pack_gate_weight(w, k_pad, hp):
    """PyTorch (4H, K) gate weight -> (k_pad, 4*hp); each gate block is
    transposed into its own lane-aligned 128-wide column block, zero pad."""
    w = np.asarray(w, np.float32)
    h4, k = w.shape
    h = h4 // 4
    out = np.zeros((k_pad, 4 * hp), np.float32)
    for g in range(4):
        out[:k, g * hp:g * hp + h] = w[g * h:(g + 1) * h, :].T
    return jnp.asarray(out)


def _pack_gate_bias(b, hp):
    b = np.asarray(b, np.float32)
    h = b.shape[0] // 4
    out = np.zeros((1, 4 * hp), np.float32)
    for g in range(4):
        out[0, g * hp:g * hp + h] = b[g * h:(g + 1) * h]
    return jnp.asarray(out)


def _pack_proj(w, hp, zp):
    """PyTorch (Z, H) linear weight -> zero-padded (hp, zp) = W^T."""
    w = np.asarray(w, np.float32)
    z, h = w.shape
    out = np.zeros((hp, zp), np.float32)
    out[:h, :z] = w.T
    return jnp.asarray(out)


def bn_gammas(tau, theta=0.5):
    sig_pos = 1.0 / (1.0 + math.exp(-theta))
    sig_neg = 1.0 / (1.0 + math.exp(theta))
    gamma1 = math.sqrt(tau + (1.0 - tau) * sig_pos)
    gamma2 = math.sqrt((1.0 - tau) * sig_neg)
    return gamma1, gamma2


# --------------------------------- wrapper -----------------------------------


def gaussian_lstm_encoder2(x_tokens, params, tau):
    """Forward pass. Returns (means, var_s), each (B, dim_z, S) as in PyTorch."""
    emb_table = params["embed"]                          # (V, E)
    B, S = x_tokens.shape
    E = emb_table.shape[1]
    H = params["w_hh"].shape[1]
    Z = params["w_mean"].shape[0]

    Hp = _round_up(H, LANE)
    Zp = _round_up(Z, LANE)
    Ep = _round_up(E, LANE)

    wih_pad = _pack_gate_weight(params["w_ih"], Ep, Hp)            # (Ep, 4Hp)
    whh_pad = _pack_gate_weight(params["w_hh"], Hp, Hp)            # (Hp, 4Hp)
    b_pad = _pack_gate_bias(params["b_ih"] + params["b_hh"], Hp)   # (1, 4Hp)
    wm_pad = _pack_proj(params["w_mean"], Hp, Zp)                  # (Hp, Zp)
    wl_pad = _pack_proj(params["w_logvar"], Hp, Zp)                # (Hp, Zp)

    # glue: embedding gather, time-major flatten, lane-pad E
    emb = jnp.take(emb_table, x_tokens, axis=0).astype(jnp.float32)   # (B,S,E)
    emb_tm = jnp.transpose(emb, (1, 0, 2)).reshape(S * B, E)          # (S*B,E)
    if Ep > E:
        emb_tm = jnp.pad(emb_tm, ((0, 0), (0, Ep - E)))

    gamma1, gamma2 = bn_gammas(tau)

    vmem = pl.BlockSpec(memory_space=pltpu.MemorySpace.VMEM)
    means_pad, vars_pad = pl.pallas_call(
        make_encoder_kernel(S, B, Hp, gamma1, gamma2),
        out_shape=(jax.ShapeDtypeStruct((S * B, Zp), jnp.float32),
                   jax.ShapeDtypeStruct((S * B, Zp), jnp.float32)),
        in_specs=[vmem] * 6,
        out_specs=(vmem, vmem),
        scratch_shapes=[pltpu.VMEM((S * B, Hp), jnp.float32)],
        compiler_params=pltpu.CompilerParams(
            vmem_limit_bytes=32 * 1024 * 1024),
    )(emb_tm, wih_pad, whh_pad, b_pad, wm_pad, wl_pad)

    means = jnp.transpose(means_pad[:, :Z].reshape(S, B, Z), (1, 2, 0))  # (B,Z,S)
    var_s = jnp.transpose(vars_pad[:, :Z].reshape(S, B, Z), (1, 2, 0))   # (B,Z,S)
    return means, var_s


# ------------------------- pure-JAX reference (check) ------------------------


def reference(x_tokens, params, tau):
    emb = jnp.take(params["embed"], x_tokens, axis=0)               # (B, S, E)
    B, S, _ = emb.shape
    H = params["w_hh"].shape[1]
    wih_t = params["w_ih"].T
    whh_t = params["w_hh"].T
    b = params["b_ih"] + params["b_hh"]

    def step(carry, x_t):
        h, c = carry
        gates = x_t @ wih_t + h @ whh_t + b
        i = jax.nn.sigmoid(gates[:, :H])
        f = jax.nn.sigmoid(gates[:, H:2 * H])
        g = jnp.tanh(gates[:, 2 * H:3 * H])
        o = jax.nn.sigmoid(gates[:, 3 * H:])
        c = f * c + i * g
        h = o * jnp.tanh(c)
        return (h, c), h

    h0 = jnp.zeros((B, H), jnp.float32)
    c0 = jnp.zeros((B, H), jnp.float32)
    _, hs = lax.scan(step, (h0, c0), jnp.transpose(emb, (1, 0, 2)))  # (S, B, H)
    hs_bsh = jnp.transpose(hs, (1, 0, 2))                            # (B, S, H)

    m = hs_bsh @ params["w_mean"].T                                  # (B, S, Z)
    lv = hs_bsh @ params["w_logvar"].T
    gamma1, gamma2 = bn_gammas(tau)

    def bn(x, gamma):
        mu = jnp.mean(x, axis=(0, 1), keepdims=True)
        var = jnp.mean((x - mu) ** 2, axis=(0, 1), keepdims=True)
        return (x - mu) / jnp.sqrt(var + 1e-5) * gamma

    means = jnp.transpose(bn(m, gamma1), (0, 2, 1))                  # (B, Z, S)
    var_s = jnp.transpose(jnp.exp(bn(lv, gamma2)), (0, 2, 1))
    return means, var_s


# ---------------------------------- main -------------------------------------


if __name__ == "__main__":
    vocab_size, embed_dim, hid_size, dim_z, tau = 50, 32, 32, 16, 0.5
    B, S = 2, 8

    key = jax.random.PRNGKey(0)
    keys = jax.random.split(key, 8)
    scale = 0.1
    params = {
        "embed": jax.random.normal(keys[0], (vocab_size, embed_dim), jnp.float32),
        "w_ih": scale * jax.random.normal(keys[1], (4 * hid_size, embed_dim), jnp.float32),
        "w_hh": scale * jax.random.normal(keys[2], (4 * hid_size, hid_size), jnp.float32),
        "b_ih": scale * jax.random.normal(keys[3], (4 * hid_size,), jnp.float32),
        "b_hh": scale * jax.random.normal(keys[4], (4 * hid_size,), jnp.float32),
        "w_mean": scale * jax.random.normal(keys[5], (dim_z, hid_size), jnp.float32),
        "w_logvar": scale * jax.random.normal(keys[6], (dim_z, hid_size), jnp.float32),
    }
    x = jax.random.randint(keys[7], (B, S), 0, vocab_size, dtype=jnp.int32)

    means, var_s = gaussian_lstm_encoder2(x, params, tau)
    jax.block_until_ready((means, var_s))

    assert means.shape == (B, dim_z, S), means.shape
    assert var_s.shape == (B, dim_z, S), var_s.shape

    ref_means, ref_vars = reference(x, params, tau)
    np.testing.assert_allclose(np.asarray(means), np.asarray(ref_means), rtol=1e-4, atol=1e-4)
    np.testing.assert_allclose(np.asarray(var_s), np.asarray(ref_vars), rtol=1e-4, atol=1e-4)

    print("KERNEL_OK")
</pallas_src>

<mosaic_0001>
module attributes {stable_mosaic.version = 11 : i64} {
  func.func @kernel(%arg0: memref<16x128xf32, #tpu.memory_space<vmem>>, %arg1: memref<128x512xf32, #tpu.memory_space<vmem>>, %arg2: memref<128x512xf32, #tpu.memory_space<vmem>>, %arg3: memref<1x512xf32, #tpu.memory_space<vmem>>, %arg4: memref<128x128xf32, #tpu.memory_space<vmem>>, %arg5: memref<128x128xf32, #tpu.memory_space<vmem>>, %arg6: memref<16x128xf32, #tpu.memory_space<vmem>>, %arg7: memref<16x128xf32, #tpu.memory_space<vmem>>, %arg8: memref<16x128xf32, #tpu.memory_space<vmem>>) attributes {dimension_semantics = [], scalar_prefetch = 0 : i64, scratch_operands = 1 : i64, tpu.core_type = #tpu.core_type<tc>} {
    %c0 = arith.constant 0 : index
    %c0_0 = arith.constant 0 : index
    %0 = vector.load %arg0[%c0, %c0_0] : memref<16x128xf32, #tpu.memory_space<vmem>>, vector<16x128xf32>
    %c0_1 = arith.constant 0 : index
    %c0_2 = arith.constant 0 : index
    %1 = vector.load %arg1[%c0_1, %c0_2] : memref<128x512xf32, #tpu.memory_space<vmem>>, vector<128x512xf32>
    %cst = arith.constant dense<0.000000e+00> : vector<16x512xf32>
    %2 = tpu.matmul %0, %1, %cst {dimension_numbers = #tpu.dot_dimension_numbers<[1], [0], [0], [1], [0, 0, 1, 1], [], []>} : vector<16x128xf32>, vector<128x512xf32>, vector<16x512xf32> -> vector<16x512xf32>
    %c0_3 = arith.constant 0 : index
    %c0_4 = arith.constant 0 : index
    %3 = vector.load %arg3[%c0_3, %c0_4] : memref<1x512xf32, #tpu.memory_space<vmem>>, vector<1x512xf32>
    %4 = vector.broadcast %3 : vector<1x512xf32> to vector<16x512xf32>
    %5 = arith.addf %2, %4 : vector<16x512xf32>
    %c0_5 = arith.constant 0 : index
    %c0_6 = arith.constant 0 : index
    %6 = vector.load %arg2[%c0_5, %c0_6] : memref<128x512xf32, #tpu.memory_space<vmem>>, vector<128x512xf32>
    %cst_7 = arith.constant 0.000000e+00 : f32
    %7 = vector.broadcast %cst_7 : f32 to vector<2x128xf32>
    %cst_8 = arith.constant 0.000000e+00 : f32
    %8 = vector.broadcast %cst_8 : f32 to vector<2x128xf32>
    %9 = vector.extract_strided_slice %5 {offsets = [0, 0], sizes = [2, 512], strides = [1, 1]} : vector<16x512xf32> to vector<2x512xf32>
    %cst_9 = arith.constant dense<0.000000e+00> : vector<2x512xf32>
    %10 = tpu.matmul %7, %6, %cst_9 {dimension_numbers = #tpu.dot_dimension_numbers<[1], [0], [0], [1], [0, 0, 1, 1], [], []>} : vector<2x128xf32>, vector<128x512xf32>, vector<2x512xf32> -> vector<2x512xf32>
    %11 = arith.addf %9, %10 : vector<2x512xf32>
    %12 = vector.extract_strided_slice %11 {offsets = [0, 0], sizes = [2, 128], strides = [1, 1]} : vector<2x512xf32> to vector<2x128xf32>
    %13 = arith.negf %12 : vector<2x128xf32>
    %14 = math.exp %13 : vector<2x128xf32>
    %cst_10 = arith.constant 1.000000e+00 : f32
    %15 = vector.broadcast %cst_10 : f32 to vector<2x128xf32>
    %16 = arith.addf %15, %14 : vector<2x128xf32>
    %17 = arith.divf %15, %16 : vector<2x128xf32>
    %18 = vector.extract_strided_slice %11 {offsets = [0, 128], sizes = [2, 128], strides = [1, 1]} : vector<2x512xf32> to vector<2x128xf32>
    %19 = arith.negf %18 : vector<2x128xf32>
    %20 = math.exp %19 : vector<2x128xf32>
    %cst_11 = arith.constant 1.000000e+00 : f32
    %21 = vector.broadcast %cst_11 : f32 to vector<2x128xf32>
    %22 = arith.addf %21, %20 : vector<2x128xf32>
    %23 = arith.divf %21, %22 : vector<2x128xf32>
    %24 = vector.extract_strided_slice %11 {offsets = [0, 256], sizes = [2, 128], strides = [1, 1]} : vector<2x512xf32> to vector<2x128xf32>
    %25 = math.tanh %24 : vector<2x128xf32>
    %26 = vector.extract_strided_slice %11 {offsets = [0, 384], sizes = [2, 128], strides = [1, 1]} : vector<2x512xf32> to vector<2x128xf32>
    %27 = arith.negf %26 : vector<2x128xf32>
    %28 = math.exp %27 : vector<2x128xf32>
    %cst_12 = arith.constant 1.000000e+00 : f32
    %29 = vector.broadcast %cst_12 : f32 to vector<2x128xf32>
    %30 = arith.addf %29, %28 : vector<2x128xf32>
    %31 = arith.divf %29, %30 : vector<2x128xf32>
    %32 = arith.mulf %23, %8 : vector<2x128xf32>
    %33 = arith.mulf %17, %25 : vector<2x128xf32>
    %34 = arith.addf %32, %33 : vector<2x128xf32>
    %35 = math.tanh %34 : vector<2x128xf32>
    %36 = arith.mulf %31, %35 : vector<2x128xf32>
    %c0_13 = arith.constant 0 : index
    %c0_14 = arith.constant 0 : index
    %37 = vector.load %arg8[%c0_13, %c0_14] : memref<16x128xf32, #tpu.memory_space<vmem>>, vector<2x128xf32>
    tpu.vector_store %arg8[%c0_13, %c0_14], %36 {strides = array<i32>} : memref<16x128xf32, #tpu.memory_space<vmem>>, vector<2x128xf32>,
    %38 = vector.extract_strided_slice %5 {offsets = [2, 0], sizes = [2, 512], strides = [1, 1]} : vector<16x512xf32> to vector<2x512xf32>
    %cst_15 = arith.constant dense<0.000000e+00> : vector<2x512xf32>
    %39 = tpu.matmul %36, %6, %cst_15 {dimension_numbers = #tpu.dot_dimension_numbers<[1], [0], [0], [1], [0, 0, 1, 1], [], []>} : vector<2x128xf32>, vector<128x512xf32>, vector<2x512xf32> -> vector<2x512xf32>
    %40 = arith.addf %38, %39 : vector<2x512xf32>
    %41 = vector.extract_strided_slice %40 {offsets = [0, 0], sizes = [2, 128], strides = [1, 1]} : vector<2x512xf32> to vector<2x128xf32>
    %42 = arith.negf %41 : vector<2x128xf32>
    %43 = math.exp %42 : vector<2x128xf32>
    %cst_16 = arith.constant 1.000000e+00 : f32
    %44 = vector.broadcast %cst_16 : f32 to vector<2x128xf32>
    %45 = arith.addf %44, %43 : vector<2x128xf32>
    %46 = arith.divf %44, %45 : vector<2x128xf32>
    %47 = vector.extract_strided_slice %40 {offsets = [0, 128], sizes = [2, 128], strides = [1, 1]} : vector<2x512xf32> to vector<2x128xf32>
    %48 = arith.negf %47 : vector<2x128xf32>
    %49 = math.exp %48 : vector<2x128xf32>
    %cst_17 = arith.constant 1.000000e+00 : f32
    %50 = vector.broadcast %cst_17 : f32 to vector<2x128xf32>
    %51 = arith.addf %50, %49 : vector<2x128xf32>
    %52 = arith.divf %50, %51 : vector<2x128xf32>
    %53 = vector.extract_strided_slice %40 {offsets = [0, 256], sizes = [2, 128], strides = [1, 1]} : vector<2x512xf32> to vector<2x128xf32>
    %54 = math.tanh %53 : vector<2x128xf32>
    %55 = vector.extract_strided_slice %40 {offsets = [0, 384], sizes = [2, 128], strides = [1, 1]} : vector<2x512xf32> to vector<2x128xf32>
    %56 = arith.negf %55 : vector<2x128xf32>
    %57 = math.exp %56 : vector<2x128xf32>
    %cst_18 = arith.constant 1.000000e+00 : f32
    %58 = vector.broadcast %cst_18 : f32 to vector<2x128xf32>
    %59 = arith.addf %58, %57 : vector<2x128xf32>
    %60 = arith.divf %58, %59 : vector<2x128xf32>
    %61 = arith.mulf %52, %34 : vector<2x128xf32>
    %62 = arith.mulf %46, %54 : vector<2x128xf32>
    %63 = arith.addf %61, %62 : vector<2x128xf32>
    %64 = math.tanh %63 : vector<2x128xf32>
    %65 = arith.mulf %60, %64 : vector<2x128xf32>
    %c2 = arith.constant 2 : index
    %c0_19 = arith.constant 0 : index
    %66 = vector.load %arg8[%c2, %c0_19] : memref<16x128xf32, #tpu.memory_space<vmem>>, vector<2x128xf32>
    tpu.vector_store %arg8[%c2, %c0_19], %65 {strides = array<i32>} : memref<16x128xf32, #tpu.memory_space<vmem>>, vector<2x128xf32>,
    %67 = vector.extract_strided_slice %5 {offsets = [4, 0], sizes = [2, 512], strides = [1, 1]} : vector<16x512xf32> to vector<2x512xf32>
    %cst_20 = arith.constant dense<0.000000e+00> : vector<2x512xf32>
    %68 = tpu.matmul %65, %6, %cst_20 {dimension_numbers = #tpu.dot_dimension_numbers<[1], [0], [0], [1], [0, 0, 1, 1], [], []>} : vector<2x128xf32>, vector<128x512xf32>, vector<2x512xf32> -> vector<2x512xf32>
    %69 = arith.addf %67, %68 : vector<2x512xf32>
    %70 = vector.extract_strided_slice %69 {offsets = [0, 0], sizes = [2, 128], strides = [1, 1]} : vector<2x512xf32> to vector<2x128xf32>
    %71 = arith.negf %70 : vector<2x128xf32>
    %72 = math.exp %71 : vector<2x128xf32>
    %cst_21 = arith.constant 1.000000e+00 : f32
    %73 = vector.broadcast %cst_21 : f32 to vector<2x128xf32>
    %74 = arith.addf %73, %72 : vector<2x128xf32>
    %75 = arith.divf %73, %74 : vector<2x128xf32>
    %76 = vector.extract_strided_slice %69 {offsets = [0, 128], sizes = [2, 128], strides = [1, 1]} : vector<2x512xf32> to vector<2x128xf32>
    %77 = arith.negf %76 : vector<2x128xf32>
    %78 = math.exp %77 : vector<2x128xf32>
    %cst_22 = arith.constant 1.000000e+00 : f32
    %79 = vector.broadcast %cst_22 : f32 to vector<2x128xf32>
    %80 = arith.addf %79, %78 : vector<2x128xf32>
    %81 = arith.divf %79, %80 : vector<2x128xf32>
    %82 = vector.extract_strided_slice %69 {offsets = [0, 256], sizes = [2, 128], strides = [1, 1]} : vector<2x512xf32> to vector<2x128xf32>
    %83 = math.tanh %82 : vector<2x128xf32>
    %84 = vector.extract_strided_slice %69 {offsets = [0, 384], sizes = [2, 128], strides = [1, 1]} : vector<2x512xf32> to vector<2x128xf32>
    %85 = arith.negf %84 : vector<2x128xf32>
    %86 = math.exp %85 : vector<2x128xf32>
    %cst_23 = arith.constant 1.000000e+00 : f32
    %87 = vector.broadcast %cst_23 : f32 to vector<2x128xf32>
    %88 = arith.addf %87, %86 : vector<2x128xf32>
    %89 = arith.divf %87, %88 : vector<2x128xf32>
    %90 = arith.mulf %81, %63 : vector<2x128xf32>
    %91 = arith.mulf %75, %83 : vector<2x128xf32>
    %92 = arith.addf %90, %91 : vector<2x128xf32>
    %93 = math.tanh %92 : vector<2x128xf32>
    %94 = arith.mulf %89, %93 : vector<2x128xf32>
    %c4 = arith.constant 4 : index
    %c0_24 = arith.constant 0 : index
    %95 = vector.load %arg8[%c4, %c0_24] : memref<16x128xf32, #tpu.memory_space<vmem>>, vector<2x128xf32>
    tpu.vector_store %arg8[%c4, %c0_24], %94 {strides = array<i32>} : memref<16x128xf32, #tpu.memory_space<vmem>>, vector<2x128xf32>,
    %96 = vector.extract_strided_slice %5 {offsets = [6, 0], sizes = [2, 512], strides = [1, 1]} : vector<16x512xf32> to vector<2x512xf32>
    %cst_25 = arith.constant dense<0.000000e+00> : vector<2x512xf32>
    %97 = tpu.matmul %94, %6, %cst_25 {dimension_numbers = #tpu.dot_dimension_numbers<[1], [0], [0], [1], [0, 0, 1, 1], [], []>} : vector<2x128xf32>, vector<128x512xf32>, vector<2x512xf32> -> vector<2x512xf32>
    %98 = arith.addf %96, %97 : vector<2x512xf32>
    %99 = vector.extract_strided_slice %98 {offsets = [0, 0], sizes = [2, 128], strides = [1, 1]} : vector<2x512xf32> to vector<2x128xf32>
    %100 = arith.negf %99 : vector<2x128xf32>
    %101 = math.exp %100 : vector<2x128xf32>
    %cst_26 = arith.constant 1.000000e+00 : f32
    %102 = vector.broadcast %cst_26 : f32 to vector<2x128xf32>
    %103 = arith.addf %102, %101 : vector<2x128xf32>
    %104 = arith.divf %102, %103 : vector<2x128xf32>
    %105 = vector.extract_strided_slice %98 {offsets = [0, 128], sizes = [2, 128], strides = [1, 1]} : vector<2x512xf32> to vector<2x128xf32>
    %106 = arith.negf %105 : vector<2x128xf32>
    %107 = math.exp %106 : vector<2x128xf32>
    %cst_27 = arith.constant 1.000000e+00 : f32
    %108 = vector.broadcast %cst_27 : f32 to vector<2x128xf32>
    %109 = arith.addf %108, %107 : vector<2x128xf32>
    %110 = arith.divf %108, %109 : vector<2x128xf32>
    %111 = vector.extract_strided_slice %98 {offsets = [0, 256], sizes = [2, 128], strides = [1, 1]} : vector<2x512xf32> to vector<2x128xf32>
    %112 = math.tanh %111 : vector<2x128xf32>
    %113 = vector.extract_strided_slice %98 {offsets = [0, 384], sizes = [2, 128], strides = [1, 1]} : vector<2x512xf32> to vector<2x128xf32>
    %114 = arith.negf %113 : vector<2x128xf32>
    %115 = math.exp %114 : vector<2x128xf32>
    %cst_28 = arith.constant 1.000000e+00 : f32
    %116 = vector.broadcast %cst_28 : f32 to vector<2x128xf32>
    %117 = arith.addf %116, %115 : vector<2x128xf32>
    %118 = arith.divf %116, %117 : vector<2x128xf32>
    %119 = arith.mulf %110, %92 : vector<2x128xf32>
    %120 = arith.mulf %104, %112 : vector<2x128xf32>
    %121 = arith.addf %119, %120 : vector<2x128xf32>
    %122 = math.tanh %121 : vector<2x128xf32>
    %123 = arith.mulf %118, %122 : vector<2x128xf32>
    %c6 = arith.constant 6 : index
    %c0_29 = arith.constant 0 : index
    %124 = vector.load %arg8[%c6, %c0_29] : memref<16x128xf32, #tpu.memory_space<vmem>>, vector<2x128xf32>
    tpu.vector_store %arg8[%c6, %c0_29], %123 {strides = array<i32>} : memref<16x128xf32, #tpu.memory_space<vmem>>, vector<2x128xf32>,
    %125 = vector.extract_strided_slice %5 {offsets = [8, 0], sizes = [2, 512], strides = [1, 1]} : vector<16x512xf32> to vector<2x512xf32>
    %cst_30 = arith.constant dense<0.000000e+00> : vector<2x512xf32>
    %126 = tpu.matmul %123, %6, %cst_30 {dimension_numbers = #tpu.dot_dimension_numbers<[1], [0], [0], [1], [0, 0, 1, 1], [], []>} : vector<2x128xf32>, vector<128x512xf32>, vector<2x512xf32> -> vector<2x512xf32>
    %127 = arith.addf %125, %126 : vector<2x512xf32>
    %128 = vector.extract_strided_slice %127 {offsets = [0, 0], sizes = [2, 128], strides = [1, 1]} : vector<2x512xf32> to vector<2x128xf32>
    %129 = arith.negf %128 : vector<2x128xf32>
    %130 = math.exp %129 : vector<2x128xf32>
    %cst_31 = arith.constant 1.000000e+00 : f32
    %131 = vector.broadcast %cst_31 : f32 to vector<2x128xf32>
    %132 = arith.addf %131, %130 : vector<2x128xf32>
    %133 = arith.divf %131, %132 : vector<2x128xf32>
    %134 = vector.extract_strided_slice %127 {offsets = [0, 128], sizes = [2, 128], strides = [1, 1]} : vector<2x512xf32> to vector<2x128xf32>
    %135 = arith.negf %134 : vector<2x128xf32>
    %136 = math.exp %135 : vector<2x128xf32>
    %cst_32 = arith.constant 1.000000e+00 : f32
    %137 = vector.broadcast %cst_32 : f32 to vector<2x128xf32>
    %138 = arith.addf %137, %136 : vector<2x128xf32>
    %139 = arith.divf %137, %138 : vector<2x128xf32>
    %140 = vector.extract_strided_slice %127 {offsets = [0, 256], sizes = [2, 128], strides = [1, 1]} : vector<2x512xf32> to vector<2x128xf32>
    %141 = math.tanh %140 : vector<2x128xf32>
    %142 = vector.extract_strided_slice %127 {offsets = [0, 384], sizes = [2, 128], strides = [1, 1]} : vector<2x512xf32> to vector<2x128xf32>
    %143 = arith.negf %142 : vector<2x128xf32>
    %144 = math.exp %143 : vector<2x128xf32>
    %cst_33 = arith.constant 1.000000e+00 : f32
    %145 = vector.broadcast %cst_33 : f32 to vector<2x128xf32>
    %146 = arith.addf %145, %144 : vector<2x128xf32>
    %147 = arith.divf %145, %146 : vector<2x128xf32>
    %148 = arith.mulf %139, %121 : vector<2x128xf32>
    %149 = arith.mulf %133, %141 : vector<2x128xf32>
    %150 = arith.addf %148, %149 : vector<2x128xf32>
    %151 = math.tanh %150 : vector<2x128xf32>
    %152 = arith.mulf %147, %151 : vector<2x128xf32>
    %c8 = arith.constant 8 : index
    %c0_34 = arith.constant 0 : index
    %153 = vector.load %arg8[%c8, %c0_34] : memref<16x128xf32, #tpu.memory_space<vmem>>, vector<2x128xf32>
    tpu.vector_store %arg8[%c8, %c0_34], %152 {strides = array<i32>} : memref<16x128xf32, #tpu.memory_space<vmem>>, vector<2x128xf32>,
    %154 = vector.extract_strided_slice %5 {offsets = [10, 0], sizes = [2, 512], strides = [1, 1]} : vector<16x512xf32> to vector<2x512xf32>
    %cst_35 = arith.constant dense<0.000000e+00> : vector<2x512xf32>
    %155 = tpu.matmul %152, %6, %cst_35 {dimension_numbers = #tpu.dot_dimension_numbers<[1], [0], [0], [1], [0, 0, 1, 1], [], []>} : vector<2x128xf32>, vector<128x512xf32>, vector<2x512xf32> -> vector<2x512xf32>
    %156 = arith.addf %154, %155 : vector<2x512xf32>
    %157 = vector.extract_strided_slice %156 {offsets = [0, 0], sizes = [2, 128], strides = [1, 1]} : vector<2x512xf32> to vector<2x128xf32>
    %158 = arith.negf %157 : vector<2x128xf32>
    %159 = math.exp %158 : vector<2x128xf32>
    %cst_36 = arith.constant 1.000000e+00 : f32
    %160 = vector.broadcast %cst_36 : f32 to vector<2x128xf32>
    %161 = arith.addf %160, %159 : vector<2x128xf32>
    %162 = arith.divf %160, %161 : vector<2x128xf32>
    %163 = vector.extract_strided_slice %156 {offsets = [0, 128], sizes = [2, 128], strides = [1, 1]} : vector<2x512xf32> to vector<2x128xf32>
    %164 = arith.negf %163 : vector<2x128xf32>
    %165 = math.exp %164 : vector<2x128xf32>
    %cst_37 = arith.constant 1.000000e+00 : f32
    %166 = vector.broadcast %cst_37 : f32 to vector<2x128xf32>
    %167 = arith.addf %166, %165 : vector<2x128xf32>
    %168 = arith.divf %166, %167 : vector<2x128xf32>
    %169 = vector.extract_strided_slice %156 {offsets = [0, 256], sizes = [2, 128], strides = [1, 1]} : vector<2x512xf32> to vector<2x128xf32>
    %170 = math.tanh %169 : vector<2x128xf32>
    %171 = vector.extract_strided_slice %156 {offsets = [0, 384], sizes = [2, 128], strides = [1, 1]} : vector<2x512xf32> to vector<2x128xf32>
    %172 = arith.negf %171 : vector<2x128xf32>
    %173 = math.exp %172 : vector<2x128xf32>
    %cst_38 = arith.constant 1.000000e+00 : f32
    %174 = vector.broadcast %cst_38 : f32 to vector<2x128xf32>
    %175 = arith.addf %174, %173 : vector<2x128xf32>
    %176 = arith.divf %174, %175 : vector<2x128xf32>
    %177 = arith.mulf %168, %150 : vector<2x128xf32>
    %178 = arith.mulf %162, %170 : vector<2x128xf32>
    %179 = arith.addf %177, %178 : vector<2x128xf32>
    %180 = math.tanh %179 : vector<2x128xf32>
    %181 = arith.mulf %176, %180 : vector<2x128xf32>
    %c10 = arith.constant 10 : index
    %c0_39 = arith.constant 0 : index
    %182 = vector.load %arg8[%c10, %c0_39] : memref<16x128xf32, #tpu.memory_space<vmem>>, vector<2x128xf32>
    tpu.vector_store %arg8[%c10, %c0_39], %181 {strides = array<i32>} : memref<16x128xf32, #tpu.memory_space<vmem>>, vector<2x128xf32>,
    %183 = vector.extract_strided_slice %5 {offsets = [12, 0], sizes = [2, 512], strides = [1, 1]} : vector<16x512xf32> to vector<2x512xf32>
    %cst_40 = arith.constant dense<0.000000e+00> : vector<2x512xf32>
    %184 = tpu.matmul %181, %6, %cst_40 {dimension_numbers = #tpu.dot_dimension_numbers<[1], [0], [0], [1], [0, 0, 1, 1], [], []>} : vector<2x128xf32>, vector<128x512xf32>, vector<2x512xf32> -> vector<2x512xf32>
    %185 = arith.addf %183, %184 : vector<2x512xf32>
    %186 = vector.extract_strided_slice %185 {offsets = [0, 0], sizes = [2, 128], strides = [1, 1]} : vector<2x512xf32> to vector<2x128xf32>
    %187 = arith.negf %186 : vector<2x128xf32>
    %188 = math.exp %187 : vector<2x128xf32>
    %cst_41 = arith.constant 1.000000e+00 : f32
    %189 = vector.broadcast %cst_41 : f32 to vector<2x128xf32>
    %190 = arith.addf %189, %188 : vector<2x128xf32>
    %191 = arith.divf %189, %190 : vector<2x128xf32>
    %192 = vector.extract_strided_slice %185 {offsets = [0, 128], sizes = [2, 128], strides = [1, 1]} : vector<2x512xf32> to vector<2x128xf32>
    %193 = arith.negf %192 : vector<2x128xf32>
    %194 = math.exp %193 : vector<2x128xf32>
    %cst_42 = arith.constant 1.000000e+00 : f32
    %195 = vector.broadcast %cst_42 : f32 to vector<2x128xf32>
    %196 = arith.addf %195, %194 : vector<2x128xf32>
    %197 = arith.divf %195, %196 : vector<2x128xf32>
    %198 = vector.extract_strided_slice %185 {offsets = [0, 256], sizes = [2, 128], strides = [1, 1]} : vector<2x512xf32> to vector<2x128xf32>
    %199 = math.tanh %198 : vector<2x128xf32>
    %200 = vector.extract_strided_slice %185 {offsets = [0, 384], sizes = [2, 128], strides = [1, 1]} : vector<2x512xf32> to vector<2x128xf32>
    %201 = arith.negf %200 : vector<2x128xf32>
    %202 = math.exp %201 : vector<2x128xf32>
    %cst_43 = arith.constant 1.000000e+00 : f32
    %203 = vector.broadcast %cst_43 : f32 to vector<2x128xf32>
    %204 = arith.addf %203, %202 : vector<2x128xf32>
    %205 = arith.divf %203, %204 : vector<2x128xf32>
    %206 = arith.mulf %197, %179 : vector<2x128xf32>
    %207 = arith.mulf %191, %199 : vector<2x128xf32>
    %208 = arith.addf %206, %207 : vector<2x128xf32>
    %209 = math.tanh %208 : vector<2x128xf32>
    %210 = arith.mulf %205, %209 : vector<2x128xf32>
    %c12 = arith.constant 12 : index
    %c0_44 = arith.constant 0 : index
    %211 = vector.load %arg8[%c12, %c0_44] : memref<16x128xf32, #tpu.memory_space<vmem>>, vector<2x128xf32>
    tpu.vector_store %arg8[%c12, %c0_44], %210 {strides = array<i32>} : memref<16x128xf32, #tpu.memory_space<vmem>>, vector<2x128xf32>,
    %212 = vector.extract_strided_slice %5 {offsets = [14, 0], sizes = [2, 512], strides = [1, 1]} : vector<16x512xf32> to vector<2x512xf32>
    %cst_45 = arith.constant dense<0.000000e+00> : vector<2x512xf32>
    %213 = tpu.matmul %210, %6, %cst_45 {dimension_numbers = #tpu.dot_dimension_numbers<[1], [0], [0], [1], [0, 0, 1, 1], [], []>} : vector<2x128xf32>, vector<128x512xf32>, vector<2x512xf32> -> vector<2x512xf32>
    %214 = arith.addf %212, %213 : vector<2x512xf32>
    %215 = vector.extract_strided_slice %214 {offsets = [0, 0], sizes = [2, 128], strides = [1, 1]} : vector<2x512xf32> to vector<2x128xf32>
    %216 = arith.negf %215 : vector<2x128xf32>
    %217 = math.exp %216 : vector<2x128xf32>
    %cst_46 = arith.constant 1.000000e+00 : f32
    %218 = vector.broadcast %cst_46 : f32 to vector<2x128xf32>
    %219 = arith.addf %218, %217 : vector<2x128xf32>
    %220 = arith.divf %218, %219 : vector<2x128xf32>
    %221 = vector.extract_strided_slice %214 {offsets = [0, 128], sizes = [2, 128], strides = [1, 1]} : vector<2x512xf32> to vector<2x128xf32>
    %222 = arith.negf %221 : vector<2x128xf32>
    %223 = math.exp %222 : vector<2x128xf32>
    %cst_47 = arith.constant 1.000000e+00 : f32
    %224 = vector.broadcast %cst_47 : f32 to vector<2x128xf32>
    %225 = arith.addf %224, %223 : vector<2x128xf32>
    %226 = arith.divf %224, %225 : vector<2x128xf32>
    %227 = vector.extract_strided_slice %214 {offsets = [0, 256], sizes = [2, 128], strides = [1, 1]} : vector<2x512xf32> to vector<2x128xf32>
    %228 = math.tanh %227 : vector<2x128xf32>
    %229 = vector.extract_strided_slice %214 {offsets = [0, 384], sizes = [2, 128], strides = [1, 1]} : vector<2x512xf32> to vector<2x128xf32>
    %230 = arith.negf %229 : vector<2x128xf32>
    %231 = math.exp %230 : vector<2x128xf32>
    %cst_48 = arith.constant 1.000000e+00 : f32
    %232 = vector.broadcast %cst_48 : f32 to vector<2x128xf32>
    %233 = arith.addf %232, %231 : vector<2x128xf32>
    %234 = arith.divf %232, %233 : vector<2x128xf32>
    %235 = arith.mulf %226, %208 : vector<2x128xf32>
    %236 = arith.mulf %220, %228 : vector<2x128xf32>
    %237 = arith.addf %235, %236 : vector<2x128xf32>
    %238 = math.tanh %237 : vector<2x128xf32>
    %239 = arith.mulf %234, %238 : vector<2x128xf32>
    %c14 = arith.constant 14 : index
    %c0_49 = arith.constant 0 : index
    %240 = vector.load %arg8[%c14, %c0_49] : memref<16x128xf32, #tpu.memory_space<vmem>>, vector<2x128xf32>
    tpu.vector_store %arg8[%c14, %c0_49], %239 {strides = array<i32>} : memref<16x128xf32, #tpu.memory_space<vmem>>, vector<2x128xf32>,
    %c0_50 = arith.constant 0 : index
    %c0_51 = arith.constant 0 : index
    %241 = vector.load %arg8[%c0_50, %c0_51] : memref<16x128xf32, #tpu.memory_space<vmem>>, vector<16x128xf32>
    %c0_52 = arith.constant 0 : index
    %c0_53 = arith.constant 0 : index
    %242 = vector.load %arg4[%c0_52, %c0_53] : memref<128x128xf32, #tpu.memory_space<vmem>>, vector<128x128xf32>
    %cst_54 = arith.constant dense<0.000000e+00> : vector<16x128xf32>
    %243 = tpu.matmul %241, %242, %cst_54 {dimension_numbers = #tpu.dot_dimension_numbers<[1], [0], [0], [1], [0, 0, 1, 1], [], []>} : vector<16x128xf32>, vector<128x128xf32>, vector<16x128xf32> -> vector<16x128xf32>
    %c0_55 = arith.constant 0 : index
    %c0_56 = arith.constant 0 : index
    %244 = vector.load %arg5[%c0_55, %c0_56] : memref<128x128xf32, #tpu.memory_space<vmem>>, vector<128x128xf32>
    %cst_57 = arith.constant dense<0.000000e+00> : vector<16x128xf32>
    %245 = tpu.matmul %241, %244, %cst_57 {dimension_numbers = #tpu.dot_dimension_numbers<[1], [0], [0], [1], [0, 0, 1, 1], [], []>} : vector<16x128xf32>, vector<128x128xf32>, vector<16x128xf32> -> vector<16x128xf32>
    %cst_58 = arith.constant dense<0.000000e+00> : vector<128xf32>
    %246 = vector.multi_reduction <add>, %243, %cst_58 [0] : vector<16x128xf32> to vector<128xf32>
    %247 = vector.shape_cast %246 : vector<128xf32> to vector<1x128xf32>
    %cst_59 = arith.constant 6.250000e-02 : f32
    %248 = vector.broadcast %cst_59 : f32 to vector<1x128xf32>
    %249 = arith.mulf %247, %248 : vector<1x128xf32>
    %250 = vector.broadcast %249 : vector<1x128xf32> to vector<16x128xf32>
    %251 = arith.subf %243, %250 : vector<16x128xf32>
    %252 = arith.mulf %251, %251 : vector<16x128xf32>
    %cst_60 = arith.constant dense<0.000000e+00> : vector<128xf32>
    %253 = vector.multi_reduction <add>, %252, %cst_60 [0] : vector<16x128xf32> to vector<128xf32>
    %254 = vector.shape_cast %253 : vector<128xf32> to vector<1x128xf32>
    %cst_61 = arith.constant 6.250000e-02 : f32
    %255 = vector.broadcast %cst_61 : f32 to vector<1x128xf32>
    %256 = arith.mulf %254, %255 : vector<1x128xf32>
    %cst_62 = arith.constant 9.99999974E-6 : f32
    %257 = vector.broadcast %cst_62 : f32 to vector<1x128xf32>
    %258 = arith.addf %256, %257 : vector<1x128xf32>
    %259 = math.rsqrt %258 : vector<1x128xf32>
    %260 = vector.broadcast %259 : vector<1x128xf32> to vector<16x128xf32>
    %261 = arith.mulf %251, %260 : vector<16x128xf32>
    %cst_63 = arith.constant 0.900682866 : f32
    %262 = vector.broadcast %cst_63 : f32 to vector<16x128xf32>
    %263 = arith.mulf %261, %262 : vector<16x128xf32>
    %c0_64 = arith.constant 0 : index
    %c0_65 = arith.constant 0 : index
    %264 = vector.load %arg6[%c0_64, %c0_65] : memref<16x128xf32, #tpu.memory_space<vmem>>, vector<16x128xf32>
    tpu.vector_store %arg6[%c0_64, %c0_65], %263 {strides = array<i32>} : memref<16x128xf32, #tpu.memory_space<vmem>>, vector<16x128xf32>,
    %cst_66 = arith.constant dense<0.000000e+00> : vector<128xf32>
    %265 = vector.multi_reduction <add>, %245, %cst_66 [0] : vector<16x128xf32> to vector<128xf32>
    %266 = vector.shape_cast %265 : vector<128xf32> to vector<1x128xf32>
    %cst_67 = arith.constant 6.250000e-02 : f32
    %267 = vector.broadcast %cst_67 : f32 to vector<1x128xf32>
    %268 = arith.mulf %266, %267 : vector<1x128xf32>
    %269 = vector.broadcast %268 : vector<1x128xf32> to vector<16x128xf32>
    %270 = arith.subf %245, %269 : vector<16x128xf32>
    %271 = arith.mulf %270, %270 : vector<16x128xf32>
    %cst_68 = arith.constant dense<0.000000e+00> : vector<128xf32>
    %272 = vector.multi_reduction <add>, %271, %cst_68 [0] : vector<16x128xf32> to vector<128xf32>
    %273 = vector.shape_cast %272 : vector<128xf32> to vector<1x128xf32>
    %cst_69 = arith.constant 6.250000e-02 : f32
    %274 = vector.broadcast %cst_69 : f32 to vector<1x128xf32>
    %275 = arith.mulf %273, %274 : vector<1x128xf32>
    %cst_70 = arith.constant 9.99999974E-6 : f32
    %276 = vector.broadcast %cst_70 : f32 to vector<1x128xf32>
    %277 = arith.addf %275, %276 : vector<1x128xf32>
    %278 = math.rsqrt %277 : vector<1x128xf32>
    %279 = vector.broadcast %278 : vector<1x128xf32> to vector<16x128xf32>
    %280 = arith.mulf %270, %279 : vector<16x128xf32>
    %cst_71 = arith.constant 0.434477091 : f32
    %281 = vector.broadcast %cst_71 : f32 to vector<16x128xf32>
    %282 = arith.mulf %280, %281 : vector<16x128xf32>
    %283 = math.exp %282 : vector<16x128xf32>
    %c0_72 = arith.constant 0 : index
    %c0_73 = arith.constant 0 : index
    %284 = vector.load %arg7[%c0_72, %c0_73] : memref<16x128xf32, #tpu.memory_space<vmem>>, vector<16x128xf32>
    tpu.vector_store %arg7[%c0_72, %c0_73], %283 {strides = array<i32>} : memref<16x128xf32, #tpu.memory_space<vmem>>, vector<16x128xf32>,
    return
  }
}

</mosaic_0001>

<bundles_post_ra>
// kernel: tpu_custom_call.1
= control target key start
LH: loop header
LB: loop body
LE: loop exit
PB: predicated region body
PF: predicated region fallthrough
CT: control target
= control target key end

     0   :  { %13 = vsyncpa [#allocation4], 0  ;;  %s3234_s0 = inlined_call_operand.hbm [shape: f32[16,128], index: 0, kind: input, shape index: {}]   ;;  %s3235_s1 = inlined_call_operand.hbm [shape: f32[128,512], index: 1, kind: input, shape index: {}]   ;;  %s3236_s2 = inlined_call_operand.hbm [shape: f32[128,512], index: 2, kind: input, shape index: {}]   ;;  %s3237_s3 = inlined_call_operand.hbm [shape: f32[1,512], index: 3, kind: input, shape index: {}]   ;;  %s3238_s4 = inlined_call_operand.hbm [shape: f32[128,128], index: 4, kind: input, shape index: {}]   ;;  %s3239_s5 = inlined_call_operand.hbm [shape: f32[128,128], index: 5, kind: input, shape index: {}]   ;;  %s3240_s6 = inlined_call_operand.hbm [shape: f32[16,128], index: 6, kind: output, shape index: {0}]   ;;  %s3241_s7 = inlined_call_operand.hbm [shape: f32[16,128], index: 7, kind: output, shape index: {1}]  }
   0x1   :  { %14 = vsyncpa [#allocation7], 0 }
   0x2   :  { %15 = vsyncpa [#allocation10], 0 }
   0x3   :  { %16 = vsyncpa [#allocation13], 0 }
   0x4   :  { %17 = vsyncpa [#allocation5], 0  ;;  %s36_s26 = sshll.u32 %s3235_s1, 4  ;;  %s37_s26 = int_to_ptr.hbm [resolvable:$true] %s36_s26 }
   0x5   :  { %18 = vsyncpa [#allocation16], 0  ;;  %s2282_s27 = smov [#allocation6]   ;;  %s63_s8 = sshll.u32 %s3237_s3, 4  ;;  %s64_s8 = int_to_ptr.hbm [resolvable:$true] %s63_s8 }
   0x6   :  { %s38_s28 = sshll.u32 %s2282_s27, 4  ;;  %s2283_s9 = smov 512   ;;  %s39_s28 = int_to_ptr.vmem [resolvable:$true] %s38_s28 }
   0x7   :  { %s2284_s10 = smov 32   ;;  %s2285_s11 = smov [#allocation9]  }
   0x8   :  { %44 = dma.hbm_to_vmem [thread:$0]  %s37_s26, 8192, %s39_s28, [#allocation7], %s2283_s9, %s2283_s9, %s2284_s10  }
   0x9   :  { %s65_s12 = sshll.u32 %s2285_s11, 4  ;;  %s23_s15 = sshll.u32 %s3234_s0, 4  ;;  %s66_s12 = int_to_ptr.vmem [resolvable:$true] %s65_s12  ;;  %s24_s15 = int_to_ptr.hbm [resolvable:$true] %s23_s15 }
   0xa   :  { %68 = dma.hbm_to_vmem [thread:$0]  %s64_s8, 64, %s66_s12, [#allocation10]  }
   0xb   :  { %s2286_s1 = smov [#allocation3]   ;;  %s49_s3 = sshll.u32 %s3236_s2, 4  ;;  %s50_s3 = int_to_ptr.hbm [resolvable:$true] %s49_s3 }
   0xc   :  { %s25_s16 = sshll.u32 %s2286_s1, 4  ;;  %s2287_s19 = smov 128   ;;  %s26_s16 = int_to_ptr.vmem [resolvable:$true] %s25_s16 }
   0xd   :  { %s2288_s20 = smov 8   ;;  %s2289_s21 = smov [#allocation8]  }
   0xe   :  { %31 = dma.hbm_to_vmem [thread:$0]  %s24_s15, 256, %s26_s16, [#allocation4], %s2287_s19, %s2287_s19, %s2288_s20  }
   0xf   :  { %s51_s22 = sshll.u32 %s2289_s21, 4  ;;  %s73_s24 = sshll.u32 %s3238_s4, 4  ;;  %s52_s22 = int_to_ptr.vmem [resolvable:$true] %s51_s22  ;;  %s74_s24 = int_to_ptr.hbm [resolvable:$true] %s73_s24 }
  0x10   :  { %57 = dma.hbm_to_vmem [thread:$0]  %s50_s3, 8192, %s52_s22, [#allocation7], %s2283_s9, %s2283_s9, %s2284_s10  }
  0x11   :  { %s86_s2 = sshll.u32 %s3239_s5, 4  ;;  %s2290_s27 = smov [#allocation11]   ;;  %s87_s2 = int_to_ptr.hbm [resolvable:$true] %s86_s2 }
  0x12   :  { %s75_s28 = sshll.u32 %s2290_s27, 4  ;;  %s2291_s29 = smov [#allocation12]   ;;  %s76_s28 = int_to_ptr.vmem [resolvable:$true] %s75_s28 }
  0x13   :  { %81 = dma.hbm_to_vmem [thread:$0]  %s74_s24, 2048, %s76_s28, [#allocation10], %s2287_s19, %s2287_s19, %s2288_s20  }
  0x14   :  { %s88_s30 = sshll.u32 %s2291_s29, 4  ;;  %s89_s30 = int_to_ptr.vmem [resolvable:$true] %s88_s30 }
  0x15   :  { %94 = dma.hbm_to_vmem [thread:$0]  %s87_s2, 2048, %s89_s30, [#allocation13], %s2287_s19, %s2287_s19, %s2288_s20  }
  0x16   :  { %2270 = dma.done.wait [#allocation4], 256  }
  0x17   :  { %2271 = vsyncadd [#allocation4], 4294967040 }
  0x18   :  { %2272 = dma.done.wait [#allocation7], 16384  }
  0x19   :  { %2273 = vsyncadd [#allocation7], 4294950912 }
  0x1a   :  { %2274 = dma.done.wait [#allocation10], 2112  }
  0x1b   :  { %2275 = vsyncadd [#allocation10], 4294965184 }
  0x1c   :  { %2276 = dma.done.wait [#allocation13], 2048  }
  0x1d   :  { %2277 = vsyncadd [#allocation13], 4294965248  ;;  %v181_v0 = vld [vmem:[#allocation6 + $0x1e0] sm:$0xff]  ;;  %v182_v1 = vld [vmem:[#allocation6 + $0x1e8] sm:$0xff]  ;;  %s2293_s4 = smov [#allocation14]   ;;  %s1807_s10 = sshll.u32 %s3240_s6, 4  ;;  %s1808_s10 = int_to_ptr.hbm [resolvable:$true] %s1807_s10 }
  0x1e   :  { %v177_v2 = vld [vmem:[#allocation6 + $0x1c0] sm:$0xff]  ;;  %195 = vmatpush.msra.mxu2 %v181_v0  ;;  %218 = vmatpush.msra.mxu3 %v182_v1  ;;  %v178_v3 = vld [vmem:[#allocation6 + $0x1c8] sm:$0xff]  ;;  %v183_v51 = vld [vmem:[#allocation6 + $0x1f0] sm:$0xff]  ;;  %s1805_s5 = sshll.u32 %s2293_s4, 4  ;;  %s2294_s11 = smov [#allocation15]   ;;  %s1806_s5 = int_to_ptr.vmem [resolvable:$true] %s1805_s5 }
  0x1f   :  { %v173_v4 = vld [vmem:[#allocation6 + $0x1a0] sm:$0xff]  ;;  %v174_v5 = vld [vmem:[#allocation6 + $0x1a8] sm:$0xff]  ;;  %v184_v52 = vld [vmem:[#allocation6 + $0x1f8] sm:$0xff]  ;;  %s1818_s6 = sshll.u32 %s2294_s11, 4  ;;  %s1820_s14 = sshll.u32 %s3241_s7, 4  ;;  %s1819_s6 = int_to_ptr.vmem [resolvable:$true] %s1818_s6  ;;  %s1821_s14 = int_to_ptr.hbm [resolvable:$true] %s1820_s14 }
  0x20   :  { %196 = vmatpush.msra.mxu2 %v177_v2  ;;  %219 = vmatpush.msra.mxu3 %v178_v3  ;;  %v169_v6 = vld [vmem:[#allocation6 + $0x180] sm:$0xff]  ;;  %v170_v7 = vld [vmem:[#allocation6 + $0x188] sm:$0xff]  ;;  %v2420_v54 = vld [vmem:[#allocation3] sm:$0xff] }
  0x21   :  { %v165_v8 = vld [vmem:[#allocation6 + $0x160] sm:$0xff]  ;;  %v166_v9 = vld [vmem:[#allocation6 + $0x168] sm:$0xff]  ;;  %v179_v55 = vld [vmem:[#allocation6 + $0x1d0] sm:$0xff] }
  0x22   :  { %197 = vmatpush.msra.mxu2 %v173_v4  ;;  %220 = vmatpush.msra.mxu3 %v174_v5  ;;  %v161_v10 = vld [vmem:[#allocation6 + $0x140] sm:$0xff]  ;;  %v162_v11 = vld [vmem:[#allocation6 + $0x148] sm:$0xff]  ;;  %v180_v56 = vld [vmem:[#allocation6 + $0x1d8] sm:$0xff] }
  0x23   :  { %v2362_v12 = vld [vmem:[#allocation8 + $0x1e8] sm:$0xff]  ;;  %v157_v14 = vld [vmem:[#allocation6 + $0x120] sm:$0xff]  ;;  %v175_v59 = vld [vmem:[#allocation6 + $0x1b0] sm:$0xff] }
  0x24   :  { %198 = vmatpush.msra.mxu2 %v169_v6  ;;  %221 = vmatpush.msra.mxu3 %v170_v7  ;;  %v2364_v13 = vld [vmem:[#allocation8 + $0x1c8] sm:$0xff]  ;;  %v153_v17 = vld [vmem:[#allocation6 + $0x100] sm:$0xff]  ;;  %v176_v60 = vld [vmem:[#allocation6 + $0x1b8] sm:$0xff] }
  0x25   :  { %3343 = vst [vmem:[#allocation23_spill] sm:$0xff] %v2364_v13  ;;  %v158_v15 = vld [vmem:[#allocation6 + $0x128] sm:$0xff]  ;;  %371 = vmatpush.msra.mxu1 %v2362_v12  ;;  %v149_v20 = vld [vmem:[#allocation6 + $0xe0] sm:$0xff]  ;;  %v171_v63 = vld [vmem:[#allocation6 + $0x190] sm:$0xff] }
  0x26   :  { %199 = vmatpush.msra.mxu2 %v165_v8  ;;  %222 = vmatpush.msra.mxu3 %v166_v9  ;;  %v2367_v16 = vld [vmem:[#allocation8 + $0x1a8] sm:$0xff]  ;;  %v2373_v22 = vld [vmem:[#allocation8 + $0x1e0] sm:$0xff]  ;;  %v172_v0 = vld [vmem:[#allocation6 + $0x198] sm:$0xff] }
  0x27   :  { %v154_v18 = vld [vmem:[#allocation6 + $0x108] sm:$0xff]  ;;  %372 = vmatpush.msra.mxu1 %v2364_v13  ;;  %v2377_v24 = vld [vmem:[#allocation8 + $0x1c0] sm:$0xff]  ;;  %351 = vmatpush.msra.mxu0 %v2373_v22  ;;  %v167_v3 = vld [vmem:[#allocation6 + $0x170] sm:$0xff] }
  0x28   :  { %200 = vmatpush.msra.mxu2 %v161_v10  ;;  %223 = vmatpush.msra.mxu3 %v162_v11  ;;  %v2370_v19 = vld [vmem:[#allocation8 + $0x188] sm:$0xff]  ;;  %v145_v25 = vld [vmem:[#allocation6 + $0xc0] sm:$0xff]  ;;  %v168_v4 = vld [vmem:[#allocation6 + $0x178] sm:$0xff] }
  0x29   :  { %v150_v21 = vld [vmem:[#allocation6 + $0xe8] sm:$0xff]  ;;  %373 = vmatpush.msra.mxu1 %v2367_v16  ;;  %v2383_v28 = vld [vmem:[#allocation8 + $0x1a0] sm:$0xff]  ;;  %352 = vmatpush.msra.mxu0 %v2377_v24  ;;  %v163_v7 = vld [vmem:[#allocation6 + $0x150] sm:$0xff] }
  0x2a   :  { %201 = vmatpush.msra.mxu2 %v157_v14  ;;  %224 = vmatpush.msra.mxu3 %v158_v15  ;;  %v2375_v23 = vld [vmem:[#allocation8 + $0x168] sm:$0xff]  ;;  %v141_v29 = vld [vmem:[#allocation6 + $0xa0] sm:$0xff]  ;;  %v164_v8 = vld [vmem:[#allocation6 + $0x158] sm:$0xff] }
  0x2b   :  { %v146_v26 = vld [vmem:[#allocation6 + $0xc8] sm:$0xff]  ;;  %374 = vmatpush.msra.mxu1 %v2370_v19  ;;  %v2389_v32 = vld [vmem:[#allocation8 + $0x180] sm:$0xff]  ;;  %353 = vmatpush.msra.mxu0 %v2383_v28  ;;  %v159_v9 = vld [vmem:[#allocation6 + $0x130] sm:$0xff] }
  0x2c   :  { %202 = vmatpush.msra.mxu2 %v153_v17  ;;  %225 = vmatpush.msra.mxu3 %v154_v18  ;;  %v2381_v27 = vld [vmem:[#allocation8 + $0x148] sm:$0xff]  ;;  %v137_v33 = vld [vmem:[#allocation6 + $0x80] sm:$0xff]  ;;  %v160_v10 = vld [vmem:[#allocation6 + $0x138] sm:$0xff]  ;;  %v3242_v18 = vmov 0.0  }
  0x2d   :  { %v142_v30 = vld [vmem:[#allocation6 + $0xa8] sm:$0xff]  ;;  %375 = vmatpush.msra.mxu1 %v2375_v23  ;;  %v2395_v36 = vld [vmem:[#allocation8 + $0x160] sm:$0xff]  ;;  %354 = vmatpush.msra.mxu0 %v2389_v32  ;;  %v2451_v14 = vld [vmem:[#allocation3 + $0x8] sm:$0xff] }
  0x2e   :  { %203 = vmatpush.msra.mxu2 %v149_v20  ;;  %226 = vmatpush.msra.mxu3 %v150_v21  ;;  %v2387_v31 = vld [vmem:[#allocation8 + $0x128] sm:$0xff]  ;;  %v133_v37 = vld [vmem:[#allocation6 + $0x60] sm:$0xff]  ;;  %v155_v15 = vld [vmem:[#allocation6 + $0x110] sm:$0xff] }
  0x2f   :  { %v138_v34 = vld [vmem:[#allocation6 + $0x88] sm:$0xff]  ;;  %376 = vmatpush.msra.mxu1 %v2381_v27  ;;  %v2401_v40 = vld [vmem:[#allocation8 + $0x140] sm:$0xff]  ;;  %355 = vmatpush.msra.mxu0 %v2395_v36  ;;  %v156_v17 = vld [vmem:[#allocation6 + $0x118] sm:$0xff] }
  0x30   :  { %204 = vmatpush.msra.mxu2 %v145_v25  ;;  %227 = vmatpush.msra.mxu3 %v146_v26  ;;  %v2393_v35 = vld [vmem:[#allocation8 + $0x108] sm:$0xff]  ;;  %v129_v41 = vld [vmem:[#allocation6 + $0x40] sm:$0xff]  ;;  %v151_v21 = vld [vmem:[#allocation6 + $0xf0] sm:$0xff] }
  0x31   :  { %v134_v38 = vld [vmem:[#allocation6 + $0x68] sm:$0xff]  ;;  %377 = vmatpush.msra.mxu1 %v2387_v31  ;;  %v2407_v44 = vld [vmem:[#allocation8 + $0x120] sm:$0xff]  ;;  %356 = vmatpush.msra.mxu0 %v2401_v40  ;;  %v152_v25 = vld [vmem:[#allocation6 + $0xf8] sm:$0xff] }
  0x32   :  { %205 = vmatpush.msra.mxu2 %v141_v29  ;;  %228 = vmatpush.msra.mxu3 %v142_v30  ;;  %v2399_v39 = vld [vmem:[#allocation8 + $0xe8] sm:$0xff]  ;;  %v125_v45 = vld [vmem:[#allocation6 + $0x20] sm:$0xff]  ;;  %v147_v29 = vld [vmem:[#allocation6 + $0xd0] sm:$0xff] }
  0x33   :  { %v130_v42 = vld [vmem:[#allocation6 + $0x48] sm:$0xff]  ;;  %378 = vmatpush.msra.mxu1 %v2393_v35  ;;  %v2413_v48 = vld [vmem:[#allocation8 + $0x100] sm:$0xff]  ;;  %357 = vmatpush.msra.mxu0 %v2407_v44  ;;  %v148_v30 = vld [vmem:[#allocation6 + $0xd8] sm:$0xff] }
  0x34   :  { %206 = vmatpush.msra.mxu2 %v137_v33  ;;  %229 = vmatpush.msra.mxu3 %v138_v34  ;;  %v2405_v43 = vld [vmem:[#allocation8 + $0xc8] sm:$0xff]  ;;  %v121_v49 = vld [vmem:[#allocation6] sm:$0xff]  ;;  %v143_v34 = vld [vmem:[#allocation6 + $0xb0] sm:$0xff] }
  0x35   :  { %v126_v46 = vld [vmem:[#allocation6 + $0x28] sm:$0xff]  ;;  %379 = vmatpush.msra.mxu1 %v2399_v39  ;;  %358 = vmatpush.msra.mxu0 %v2413_v48  ;;  %v2425_v58 = vld [vmem:[#allocation8 + $0xe0] sm:$0xff] }
  0x36   :  { %207 = vmatpush.msra.mxu2 %v133_v37  ;;  %230 = vmatpush.msra.mxu3 %v134_v38  ;;  %v2411_v47 = vld [vmem:[#allocation8 + $0xa8] sm:$0xff]  ;;  %v2431_v62 = vld [vmem:[#allocation8 + $0xc0] sm:$0xff]  ;;  %v144_v37 = vld [vmem:[#allocation6 + $0xb8] sm:$0xff] }
  0x37   :  { %v122_v50 = vld [vmem:[#allocation6 + $0x8] sm:$0xff]  ;;  %380 = vmatpush.msra.mxu1 %v2405_v43  ;;  %359 = vmatpush.msra.mxu0 %v2425_v58  ;;  %v2437_v2 = vld [vmem:[#allocation8 + $0xa0] sm:$0xff]  ;;  %v139_v38 = vld [vmem:[#allocation6 + $0x90] sm:$0xff] }
  0x38   :  { %208 = vmatpush.msra.mxu2 %v129_v41  ;;  %231 = vmatpush.msra.mxu3 %v130_v42  ;;  %v2418_v53 = vld [vmem:[#allocation8 + $0x88] sm:$0xff]  ;;  %v2443_v6 = vld [vmem:[#allocation8 + $0x80] sm:$0xff]  ;;  %v140_v41 = vld [vmem:[#allocation6 + $0x98] sm:$0xff] }
  0x39   :  { %381 = vmatpush.msra.mxu1 %v2411_v47  ;;  %3344 = vst [vmem:[#allocation24_spill] sm:$0xff] %v2418_v53  ;;  %v2423_v57 = vld [vmem:[#allocation8 + $0x68] sm:$0xff]  ;;  %360 = vmatpush.msra.mxu0 %v2431_v62  ;;  %v2449_v11 = vld [vmem:[#allocation8 + $0x60] sm:$0xff]  ;;  %v135_v42 = vld [vmem:[#allocation6 + $0x70] sm:$0xff] }
  0x3a   :  { %209 = vmatpush.msra.mxu2 %v125_v45  ;;  %232 = vmatpush.msra.mxu3 %v126_v46  ;;  %3345 = vst [vmem:[#allocation25_spill] sm:$0xff] %v2423_v57  ;;  %v2429_v61 = vld [vmem:[#allocation8 + $0x48] sm:$0xff]  ;;  %v2455_v20 = vld [vmem:[#allocation8 + $0x40] sm:$0xff]  ;;  %v136_v45 = vld [vmem:[#allocation6 + $0x78] sm:$0xff] }
  0x3b   :  { %382 = vmatpush.msra.mxu1 %v2418_v53  ;;  %3346 = vst [vmem:[#allocation26_spill] sm:$0xff] %v2429_v61  ;;  %v2435_v1 = vld [vmem:[#allocation8 + $0x28] sm:$0xff]  ;;  %361 = vmatpush.msra.mxu0 %v2437_v2  ;;  %v2459_v26 = vld [vmem:[#allocation8 + $0x20] sm:$0xff]  ;;  %v131_v46 = vld [vmem:[#allocation6 + $0x50] sm:$0xff] }
  0x3c   :  { %210 = vmatpush.msra.mxu2 %v121_v49  ;;  %233 = vmatpush.msra.mxu3 %v122_v50  ;;  %3347 = vst [vmem:[#allocation27_spill] sm:$0xff] %v2435_v1  ;;  %v2441_v5 = vld [vmem:[#allocation8 + $0x8] sm:$0xff]  ;;  %v2463_v33 = vld [vmem:[#allocation8] sm:$0xff]  ;;  %v132_v49 = vld [vmem:[#allocation6 + $0x58] sm:$0xff] }
  0x3d   :  { %234 = vmatmul.f32.vlgmr.msra.gmra.mxu3 %v2420_v54  ;;  %383 = vmatpush.msra.mxu1 %v2423_v57  ;;  %3348 = vst [vmem:[#allocation28_spill] sm:$0xff] %v2441_v5  ;;  %v127_v50 = vld [vmem:[#allocation6 + $0x30] sm:$0xff] }
  0x3e   :  { %241 = vmatpush.msrb.mxu2 %v183_v51  ;;  %264 = vmatpush.msrb.mxu3 %v184_v52  ;;  %3349 = vst [vmem:[#allocation29_spill] sm:$0xff] %v2443_v6  ;;  %v128_v51 = vld [vmem:[#allocation6 + $0x38] sm:$0xff]  ;;  %v123_v52 = vld [vmem:[#allocation6 + $0x10] sm:$0xff] }
  0x3f   :  { %384 = vmatpush.msra.mxu1 %v2429_v61  ;;  %362 = vmatpush.msra.mxu0 %v2443_v6  ;;  %3350 = vst [vmem:[#allocation30_spill] sm:$0xff] %v2449_v11 }
  0x40   :  { %242 = vmatpush.msrb.mxu2 %v179_v55  ;;  %265 = vmatpush.msrb.mxu3 %v180_v56  ;;  %3351 = vst [vmem:[#allocation31_spill] sm:$0xff] %v2455_v20  ;;  %v124_v55 = vld [vmem:[#allocation6 + $0x18] sm:$0xff]  ;;  %v2477_v56 = vld [vmem:[#allocation8 + $0x1f0] sm:$0xff] }
  0x41   :  { %385 = vmatpush.msra.mxu1 %v2435_v1  ;;  %211 = vmatmul.f32.vlgmr.msra.gmra.mxu2 %v2420_v54  ;;  %3352 = vst [vmem:[#allocation32_spill] sm:$0xff] %v2459_v26 }
  0x42   :  { %243 = vmatpush.msrb.mxu2 %v175_v59  ;;  %266 = vmatpush.msrb.mxu3 %v176_v60  ;;  %3353 = vst [vmem:[#allocation33_spill] sm:$0xff] %v2463_v33  ;;  %v2479_v59 = vld [vmem:[#allocation8 + $0x1f8] sm:$0xff]  ;;  %v2483_v60 = vld [vmem:[#allocation8 + $0x1d0] sm:$0xff] }
  0x43   :  { %386 = vmatpush.msra.mxu1 %v2441_v5  ;;  %363 = vmatpush.msra.mxu0 %v2449_v11 }
  0x44   :  { %244 = vmatpush.msrb.mxu2 %v171_v63  ;;  %267 = vmatpush.msrb.mxu3 %v172_v0  ;;  %v2485_v63 = vld [vmem:[#allocation8 + $0x1d8] sm:$0xff]  ;;  %v2489_v0 = vld [vmem:[#allocation8 + $0x1b0] sm:$0xff] }
  0x45   :  { %387 = vmatmul.f32.vlgmr.msra.gmra.mxu1 %v3242_v18  ;;  %237 = vmatmul.f32.gmra.mxu3 %v2451_v14 }
  0x46   :  { %245 = vmatpush.msrb.mxu2 %v167_v3  ;;  %268 = vmatpush.msrb.mxu3 %v168_v4  ;;  %v2491_v3 = vld [vmem:[#allocation8 + $0x1b8] sm:$0xff]  ;;  %v2497_v4 = vld [vmem:[#allocation8 + $0x190] sm:$0xff] }
  0x47   :  { %364 = vmatpush.msra.mxu0 %v2455_v20  ;;  %519 = vmatpush.msrb.mxu1 %v2362_v12 }
  0x48   :  { %246 = vmatpush.msrb.mxu2 %v163_v7  ;;  %269 = vmatpush.msrb.mxu3 %v164_v8  ;;  %v2499_v7 = vld [vmem:[#allocation8 + $0x198] sm:$0xff]  ;;  %v2505_v8 = vld [vmem:[#allocation8 + $0x170] sm:$0xff] }
  0x49   :  { %365 = vmatpush.msra.mxu0 %v2459_v26  ;;  %520 = vmatpush.msrb.mxu1 %v2364_v13 }
  0x4a   :  { %247 = vmatpush.msrb.mxu2 %v159_v9  ;;  %270 = vmatpush.msrb.mxu3 %v160_v10  ;;  %v2507_v9 = vld [vmem:[#allocation8 + $0x178] sm:$0xff] }
  0x4b   :  { %366 = vmatpush.msra.mxu0 %v2463_v33  ;;  %214 = vmatmul.f32.gmra.mxu2 %v2451_v14  ;;  %v2515_v10 = vld [vmem:[#allocation8 + $0x158] sm:$0xff] }
  0x4c   :  { %248 = vmatpush.msrb.mxu2 %v155_v15  ;;  %271 = vmatpush.msrb.mxu3 %v156_v17  ;;  %v2521_v15 = vld [vmem:[#allocation8 + $0x130] sm:$0xff]  ;;  %v2523_v17 = vld [vmem:[#allocation8 + $0x138] sm:$0xff] }
  0x4d   :  { %367 = vmatmul.f32.vlgmr.msra.gmra.mxu0 %v3242_v18  ;;  %521 = vmatpush.msrb.mxu1 %v2367_v16  ;;  %v2595_v18 = vld [vmem:[#allocation8 + $0x18] sm:$0xff] }
  0x4e   :  { %249 = vmatpush.msrb.mxu2 %v151_v21  ;;  %272 = vmatpush.msrb.mxu3 %v152_v25  ;;  %v2529_v21 = vld [vmem:[#allocation8 + $0x110] sm:$0xff]  ;;  %v2531_v25 = vld [vmem:[#allocation8 + $0x118] sm:$0xff]  ;;  %3365 = vst [vmem:[#allocation45_spill] sm:$0xff] %v2595_v18 }
  0x4f   :  { %499 = vmatpush.msrb.mxu0 %v2373_v22  ;;  %522 = vmatpush.msrb.mxu1 %v2370_v19 }
  0x50   :  { %250 = vmatpush.msrb.mxu2 %v147_v29  ;;  %273 = vmatpush.msrb.mxu3 %v148_v30  ;;  %v2537_v29 = vld [vmem:[#allocation8 + $0xf0] sm:$0xff]  ;;  %v2539_v30 = vld [vmem:[#allocation8 + $0xf8] sm:$0xff] }
  0x51   :  { %500 = vmatpush.msrb.mxu0 %v2377_v24  ;;  %523 = vmatpush.msrb.mxu1 %v2375_v23 }
  0x52   :  { %251 = vmatpush.msrb.mxu2 %v143_v34  ;;  %274 = vmatpush.msrb.mxu3 %v144_v37  ;;  %v2547_v34 = vld [vmem:[#allocation8 + $0xd8] sm:$0xff]  ;;  %v2553_v37 = vld [vmem:[#allocation8 + $0xb0] sm:$0xff] }
  0x53   :  { %501 = vmatpush.msrb.mxu0 %v2383_v28  ;;  %524 = vmatpush.msrb.mxu1 %v2381_v27  ;;  %3354 = vst [vmem:[#allocation34_spill] sm:$0xff] %v2553_v37 }
  0x54   :  { %252 = vmatpush.msrb.mxu2 %v139_v38  ;;  %275 = vmatpush.msrb.mxu3 %v140_v41  ;;  %v2555_v38 = vld [vmem:[#allocation8 + $0xb8] sm:$0xff]  ;;  %v2561_v41 = vld [vmem:[#allocation8 + $0x90] sm:$0xff] }
  0x55   :  { %502 = vmatpush.msrb.mxu0 %v2389_v32  ;;  %525 = vmatpush.msrb.mxu1 %v2387_v31  ;;  %3355 = vst [vmem:[#allocation35_spill] sm:$0xff] %v2555_v38 }
  0x56   :  { %253 = vmatpush.msrb.mxu2 %v135_v42  ;;  %276 = vmatpush.msrb.mxu3 %v136_v45  ;;  %3356 = vst [vmem:[#allocation36_spill] sm:$0xff] %v2561_v41  ;;  %v2563_v42 = vld [vmem:[#allocation8 + $0x98] sm:$0xff]  ;;  %v2569_v45 = vld [vmem:[#allocation8 + $0x70] sm:$0xff] }
  0x57   :  { %503 = vmatpush.msrb.mxu0 %v2395_v36  ;;  %526 = vmatpush.msrb.mxu1 %v2393_v35  ;;  %3357 = vst [vmem:[#allocation37_spill] sm:$0xff] %v2563_v42 }
  0x58   :  { %254 = vmatpush.msrb.mxu2 %v131_v46  ;;  %277 = vmatpush.msrb.mxu3 %v132_v49  ;;  %3358 = vst [vmem:[#allocation38_spill] sm:$0xff] %v2569_v45  ;;  %v2571_v46 = vld [vmem:[#allocation8 + $0x78] sm:$0xff]  ;;  %v2577_v49 = vld [vmem:[#allocation8 + $0x50] sm:$0xff] }
  0x59   :  { %504 = vmatpush.msrb.mxu0 %v2401_v40  ;;  %527 = vmatpush.msrb.mxu1 %v2399_v39  ;;  %3359 = vst [vmem:[#allocation39_spill] sm:$0xff] %v2571_v46 }
  0x5a   :  { %255 = vmatpush.msrb.mxu2 %v127_v50  ;;  %278 = vmatpush.msrb.mxu3 %v128_v51  ;;  %3360 = vst [vmem:[#allocation40_spill] sm:$0xff] %v2577_v49  ;;  %v2579_v50 = vld [vmem:[#allocation8 + $0x58] sm:$0xff]  ;;  %v2585_v51 = vld [vmem:[#allocation8 + $0x30] sm:$0xff] }
  0x5b   :  { %505 = vmatpush.msrb.mxu0 %v2407_v44  ;;  %528 = vmatpush.msrb.mxu1 %v2405_v43  ;;  %3361 = vst [vmem:[#allocation41_spill] sm:$0xff] %v2579_v50 }
  0x5c   :  { %256 = vmatpush.msrb.mxu2 %v123_v52  ;;  %279 = vmatpush.msrb.mxu3 %v124_v55  ;;  %3362 = vst [vmem:[#allocation42_spill] sm:$0xff] %v2585_v51  ;;  %v2587_v52 = vld [vmem:[#allocation8 + $0x38] sm:$0xff]  ;;  %v2593_v55 = vld [vmem:[#allocation8 + $0x10] sm:$0xff] }
  0x5d   :  { %257 = vmatmul.f32.vlgmr.msrb.gmra.mxu2 %v2420_v54  ;;  %280 = vmatmul.f32.vlgmr.msrb.gmra.mxu3 %v2420_v54  ;;  %v2513_v54 = vld [vmem:[#allocation8 + $0x150] sm:$0xff]  ;;  %3363 = vst [vmem:[#allocation43_spill] sm:$0xff] %v2587_v52 }
  0x5e   :  { %391 = vmatpush.msra.mxu2 %v2477_v56  ;;  %411 = vmatpush.msra.mxu3 %v2479_v59  ;;  %3364 = vst [vmem:[#allocation44_spill] sm:$0xff] %v2593_v55 }
  0x5f   :  { %506 = vmatpush.msrb.mxu0 %v2413_v48  ;;  %529 = vmatpush.msrb.mxu1 %v2411_v47 }
  0x60   :  { %392 = vmatpush.msra.mxu2 %v2483_v60  ;;  %412 = vmatpush.msra.mxu3 %v2485_v63 }
  0x61   :  { %507 = vmatpush.msrb.mxu0 %v2425_v58  ;;  %530 = vmatpush.msrb.mxu1 %v2418_v53 }
  0x62   :  { %393 = vmatpush.msra.mxu2 %v2489_v0  ;;  %413 = vmatpush.msra.mxu3 %v2491_v3 }
  0x63   :  { %508 = vmatpush.msrb.mxu0 %v2431_v62  ;;  %531 = vmatpush.msrb.mxu1 %v2423_v57 }
  0x64   :  { %394 = vmatpush.msra.mxu2 %v2497_v4  ;;  %414 = vmatpush.msra.mxu3 %v2499_v7 }
  0x65   :  { %260 = vmatmul.f32.gmra.mxu2 %v2451_v14  ;;  %283 = vmatmul.f32.gmra.mxu3 %v2451_v14  ;;  %v2545_v14 = vld [vmem:[#allocation8 + $0xd0] sm:$0xff] }
  0x66   :  { %395 = vmatpush.msra.mxu2 %v2505_v8  ;;  %415 = vmatpush.msra.mxu3 %v2507_v9 }
  0x67   :  { %509 = vmatpush.msrb.mxu0 %v2437_v2  ;;  %532 = vmatpush.msrb.mxu1 %v2429_v61 }
  0x68   :  { %396 = vmatpush.msra.mxu2 %v2513_v54  ;;  %416 = vmatpush.msra.mxu3 %v2515_v10 }
  0x69   :  { %510 = vmatpush.msrb.mxu0 %v2443_v6  ;;  %533 = vmatpush.msrb.mxu1 %v2435_v1 }
  0x6a   :  { %397 = vmatpush.msra.mxu2 %v2521_v15  ;;  %417 = vmatpush.msra.mxu3 %v2523_v17 }
  0x6b   :  { %511 = vmatpush.msrb.mxu0 %v2449_v11  ;;  %534 = vmatpush.msrb.mxu1 %v2441_v5 }
  0x6c   :  { %398 = vmatpush.msra.mxu2 %v2529_v21  ;;  %418 = vmatpush.msra.mxu3 %v2531_v25 }
  0x6d   :  { %512 = vmatpush.msrb.mxu0 %v2455_v20  ;;  %685 = vmatpush.msra.mxu1 %v2362_v12 }
  0x6e   :  { %399 = vmatpush.msra.mxu2 %v2537_v29  ;;  %419 = vmatpush.msra.mxu3 %v2539_v30 }
  0x6f   :  { %513 = vmatpush.msrb.mxu0 %v2459_v26  ;;  %686 = vmatpush.msra.mxu1 %v2364_v13  ;;  %v3366_v13 = vmov 0.0  }
  0x70   :  { %400 = vmatpush.msra.mxu2 %v2545_v14  ;;  %420 = vmatpush.msra.mxu3 %v2547_v34 }
  0x71   :  { %514 = vmatpush.msrb.mxu0 %v2463_v33  ;;  %687 = vmatpush.msra.mxu1 %v2367_v16 }
  0x72   :  { %401 = vmatpush.msra.mxu2 %v2553_v37  ;;  %421 = vmatpush.msra.mxu3 %v2555_v38 }
  0x73   :  { %665 = vmatpush.msra.mxu0 %v2373_v22  ;;  %688 = vmatpush.msra.mxu1 %v2370_v19 }
  0x74   :  { %402 = vmatpush.msra.mxu2 %v2561_v41  ;;  %422 = vmatpush.msra.mxu3 %v2563_v42 }
  0x75   :  { %666 = vmatpush.msra.mxu0 %v2377_v24  ;;  %689 = vmatpush.msra.mxu1 %v2375_v23 }
  0x76   :  { %403 = vmatpush.msra.mxu2 %v2569_v45  ;;  %423 = vmatpush.msra.mxu3 %v2571_v46 }
  0x77   :  { %667 = vmatpush.msra.mxu0 %v2383_v28  ;;  %690 = vmatpush.msra.mxu1 %v2381_v27 }
  0x78   :  { %404 = vmatpush.msra.mxu2 %v2577_v49  ;;  %424 = vmatpush.msra.mxu3 %v2579_v50 }
  0x79   :  { %668 = vmatpush.msra.mxu0 %v2389_v32  ;;  %691 = vmatpush.msra.mxu1 %v2387_v31 }
  0x7a   :  { %405 = vmatpush.msra.mxu2 %v2585_v51  ;;  %425 = vmatpush.msra.mxu3 %v2587_v52 }
  0x7b   :  { %669 = vmatpush.msra.mxu0 %v2395_v36  ;;  %692 = vmatpush.msra.mxu1 %v2393_v35 }
  0x7c   :  { %406 = vmatpush.msra.mxu2 %v2593_v55  ;;  %426 = vmatpush.msra.mxu3 %v2595_v18 }
  0x7d   :  { %407 = vmatmul.f32.vlgmr.msra.gmra.mxu2 %v3366_v13  ;;  %427 = vmatmul.f32.vlgmr.msra.gmra.mxu3 %v3366_v13 }
  0x7e   :  { %539 = vmatpush.msrb.mxu2 %v2477_v56  ;;  %559 = vmatpush.msrb.mxu3 %v2479_v59 }
  0x7f   :  { %670 = vmatpush.msra.mxu0 %v2401_v40  ;;  %693 = vmatpush.msra.mxu1 %v2399_v39 }
  0x80   :  { %540 = vmatpush.msrb.mxu2 %v2483_v60  ;;  %560 = vmatpush.msrb.mxu3 %v2485_v63 }
  0x81   :  { %671 = vmatpush.msra.mxu0 %v2407_v44  ;;  %694 = vmatpush.msra.mxu1 %v2405_v43 }
  0x82   :  { %541 = vmatpush.msrb.mxu2 %v2489_v0  ;;  %561 = vmatpush.msrb.mxu3 %v2491_v3 }
  0x83   :  { %672 = vmatpush.msra.mxu0 %v2413_v48  ;;  %695 = vmatpush.msra.mxu1 %v2411_v47 }
  0x84   :  { %542 = vmatpush.msrb.mxu2 %v2497_v4  ;;  %562 = vmatpush.msrb.mxu3 %v2499_v7 }
  0x85   :  { %673 = vmatpush.msra.mxu0 %v2425_v58  ;;  %696 = vmatpush.msra.mxu1 %v2418_v53 }
  0x86   :  { %543 = vmatpush.msrb.mxu2 %v2505_v8  ;;  %563 = vmatpush.msrb.mxu3 %v2507_v9 }
  0x87   :  { %674 = vmatpush.msra.mxu0 %v2431_v62  ;;  %697 = vmatpush.msra.mxu1 %v2423_v57 }
  0x88   :  { %544 = vmatpush.msrb.mxu2 %v2513_v54  ;;  %564 = vmatpush.msrb.mxu3 %v2515_v10 }
  0x89   :  { %675 = vmatpush.msra.mxu0 %v2437_v2  ;;  %698 = vmatpush.msra.mxu1 %v2429_v61 }
  0x8a   :  { %545 = vmatpush.msrb.mxu2 %v2521_v15  ;;  %565 = vmatpush.msrb.mxu3 %v2523_v17 }
  0x8b   :  { %676 = vmatpush.msra.mxu0 %v2443_v6  ;;  %699 = vmatpush.msra.mxu1 %v2435_v1 }
  0x8c   :  { %546 = vmatpush.msrb.mxu2 %v2529_v21  ;;  %566 = vmatpush.msrb.mxu3 %v2531_v25 }
  0x8d   :  { %677 = vmatpush.msra.mxu0 %v2449_v11  ;;  %700 = vmatpush.msra.mxu1 %v2441_v5  ;;  %v185_v5 = vld [vmem:[#allocation9] sm:$0xf] }
  0x8e   :  { %547 = vmatpush.msrb.mxu2 %v2537_v29  ;;  %567 = vmatpush.msrb.mxu3 %v2539_v30  ;;  %v188_v1 = vperm.slane %v185_v5, 1 }
  0x8f   :  { %678 = vmatpush.msra.mxu0 %v2455_v20  ;;  %v187_v20 = vperm.slane %v185_v5, 0 }
  0x90   :  { %548 = vmatpush.msrb.mxu2 %v2545_v14  ;;  %568 = vmatpush.msrb.mxu3 %v2547_v34 }
  0x91   :  { %679 = vmatpush.msra.mxu0 %v2459_v26 }
  0x92   :  { %549 = vmatpush.msrb.mxu2 %v2553_v37  ;;  %569 = vmatpush.msrb.mxu3 %v2555_v38 }
  0x93   :  { %680 = vmatpush.msra.mxu0 %v2463_v33 }
  0x94   :  { %550 = vmatpush.msrb.mxu2 %v2561_v41  ;;  %570 = vmatpush.msrb.mxu3 %v2563_v42 }
  0x96   :  { %551 = vmatpush.msrb.mxu2 %v2569_v45  ;;  %571 = vmatpush.msrb.mxu3 %v2571_v46 }
  0x98   :  { %552 = vmatpush.msrb.mxu2 %v2577_v49  ;;  %572 = vmatpush.msrb.mxu3 %v2579_v50 }
  0x9a   :  { %553 = vmatpush.msrb.mxu2 %v2585_v51  ;;  %573 = vmatpush.msrb.mxu3 %v2587_v52 }
  0x9c   :  { %554 = vmatpush.msrb.mxu2 %v2593_v55  ;;  %574 = vmatpush.msrb.mxu3 %v2595_v18 }
  0x9e   :  { %705 = vmatpush.msra.mxu2 %v2477_v56  ;;  %725 = vmatpush.msra.mxu3 %v2479_v59 }
  0xa0   :  { %706 = vmatpush.msra.mxu2 %v2483_v60  ;;  %726 = vmatpush.msra.mxu3 %v2485_v63 }
  0xa2   :  { %707 = vmatpush.msra.mxu2 %v2489_v0  ;;  %727 = vmatpush.msra.mxu3 %v2491_v3 }
  0xa4   :  { %708 = vmatpush.msra.mxu2 %v2497_v4  ;;  %728 = vmatpush.msra.mxu3 %v2499_v7 }
  0xa6   :  { %709 = vmatpush.msra.mxu2 %v2505_v8  ;;  %729 = vmatpush.msra.mxu3 %v2507_v9 }
  0xa8   :  { %710 = vmatpush.msra.mxu2 %v2513_v54  ;;  %730 = vmatpush.msra.mxu3 %v2515_v10 }
  0xaa   :  { %711 = vmatpush.msra.mxu2 %v2521_v15  ;;  %731 = vmatpush.msra.mxu3 %v2523_v17 }
  0xac   :  { %712 = vmatpush.msra.mxu2 %v2529_v21  ;;  %732 = vmatpush.msra.mxu3 %v2531_v25 }
  0xae   :  { %713 = vmatpush.msra.mxu2 %v2537_v29  ;;  %733 = vmatpush.msra.mxu3 %v2539_v30 }
  0xb0   :  { %714 = vmatpush.msra.mxu2 %v2545_v14  ;;  %734 = vmatpush.msra.mxu3 %v2547_v34 }
  0xb2   :  { %715 = vmatpush.msra.mxu2 %v2553_v37  ;;  %735 = vmatpush.msra.mxu3 %v2555_v38 }
  0xb4   :  { %716 = vmatpush.msra.mxu2 %v2561_v41  ;;  %736 = vmatpush.msra.mxu3 %v2563_v42 }
  0xb6   :  { %717 = vmatpush.msra.mxu2 %v2569_v45  ;;  %737 = vmatpush.msra.mxu3 %v2571_v46 }
  0xb8   :  { %718 = vmatpush.msra.mxu2 %v2577_v49  ;;  %738 = vmatpush.msra.mxu3 %v2579_v50 }
  0xba   :  { %719 = vmatpush.msra.mxu2 %v2585_v51  ;;  %739 = vmatpush.msra.mxu3 %v2587_v52 }
  0xbc   :  { %720 = vmatpush.msra.mxu2 %v2593_v55  ;;  %740 = vmatpush.msra.mxu3 %v2595_v18 }
  0xc0   :  { %v235_v13 = vpop.f32.mrf.mxu3 }
  0xc1   :  { %v2702_v50 = vadd.f32 %v235_v13, %v188_v1 }
  0xc2   :  { %v388_v51 = vpop.f32.mrf.mxu1 }
  0xc3   :  { %3369 = vst [vmem:[#allocation48_spill] sm:$0xff] %v2702_v50  ;;  %v432_v55 = vadd.f32 %v388_v51, %v2702_v50 }
  0xc4   :  { %v212_v33 = vpop.f32.mrf.mxu2 }
  0xc5   :  { %v2704_v45 = vadd.f32 %v212_v33, %v187_v20  ;;  %v1842_v57 = vmul.f32 -1.442695, %v432_v55 }
  0xc7   :  { %3370 = vst [vmem:[#allocation49_spill] sm:$0xff] %v2704_v45  ;;  %1878 = vpow2.f32 %v1842_v57 }
  0xc8   :  { %v238_v26 = vpop.f32.mrf.mxu3 }
  0xc9   :  { %v2698_v61 = vadd.f32 %v238_v26, %v188_v1  ;;  %v189_v26 = vperm.slane %v185_v5, 2 }
  0xca   :  { %v368_v52 = vpop.f32.mrf.mxu0 }
  0xcb   :  { %3367 = vst [vmem:[#allocation46_spill] sm:$0xff] %v2698_v61  ;;  %v431_v18 = vadd.f32 %v368_v52, %v2704_v45  ;;  %v190_v61 = vperm.slane %v185_v5, 3 }
  0xcd   :  { %v1841_v41 = vmul.f32 -1.442695, %v431_v18 }
  0xce   :  { %v215_v46 = vpop.f32.mrf.mxu2 }
  0xcf   :  { %v2700_v49 = vadd.f32 %v215_v46, %v187_v20  ;;  %1880 = vpow2.f32 %v1841_v41  ;;  %v1879_v20 = vpop.eup %1878 }
  0xd0   :  { %v457_v53 = vadd.f32 1.0, %v1879_v20 }
  0xd1   :  { %3368 = vst [vmem:[#allocation47_spill] sm:$0xff] %v2700_v49 }
  0xd2   :  { %1882 = vrcp.f32 %v457_v53  ;;  %vm463_vm0 = vweird.f32 %v457_v53 }
  0xd5   :  { %v1881_v33 = vpop.eup %1880 }
  0xd6   :  { %v438_v51 = vadd.f32 1.0, %v1881_v33 }
  0xd8   :  { %1884 = vrcp.f32 %v438_v51  ;;  %v1883_v52 = vpop.eup %1882  ;;  %vm444_vm2 = vweird.f32 %v438_v51 }
  0xd9   :  { %v459_v50 = vmul.f32 %v1883_v52, %v457_v53  ;;  %vm464_vm1 = vweird.f32 %v1883_v52 }
  0xda   :  { %vm465_vm4 = vmor %vm463_vm0, %vm464_vm1 }
  0xdb   :  { %v460_v5 = vsub.f32 1.0, %v459_v50 }
  0xdd   :  { %v461_v33 = vmul.f32 %v1883_v52, %v460_v5 }
  0xde   :  { %v1885_v55 = vpop.eup %1884 }
  0xdf   :  { %v440_v18 = vmul.f32 %v1885_v55, %v438_v51  ;;  %vm445_vm3 = vweird.f32 %v1885_v55  ;;  %v462_v38 = vadd.f32 %v1883_v52, %v461_v33 }
  0xe0   :  { %v258_v11 = vpop.f32.mrf.mxu2  ;;  %v281_v42 = vpop.f32.mrf.mxu3  ;;  %vm446_vm5 = vmor %vm444_vm2, %vm445_vm3 }
  0xe1   :  { %v2712_v57 = vadd.f32 %v281_v42, %v190_v61  ;;  %v441_v45 = vsub.f32 1.0, %v440_v18  ;;  %v450_v42 = vand.u32 2147483648, %v438_v51  ;;  %v448_v18 = vand.u32 2147483647, %v438_v51 }
  0xe3   :  { %3373 = vst [vmem:[#allocation52_spill] sm:$0xff] %v2712_v57  ;;  %vm449_vm6 = vcmp.eq.f32.partialorder %v448_v18, 8.507059e+37 }
  0xe8   :  { %v261_v46 = vpop.f32.mrf.mxu2  ;;  %v284_v49 = vpop.f32.mrf.mxu3 }
  0xe9   :  { %v2708_v1 = vadd.f32 %v261_v46, %v189_v26  ;;  %v2710_v13 = vadd.f32 %v284_v49, %v190_v61  ;;  %v2715_v49 = vadd.f32 %v258_v11, %v189_v26  ;;  %v469_v61 = vand.u32 2147483648, %v457_v53 }
  0xeb   :  { %3371 = vst [vmem:[#allocation50_spill] sm:$0xff] %v2708_v1  ;;  %v470_v26 = vor.u32 1.1754944e-38, %v469_v61 }
  0xec   :  { %3372 = vst [vmem:[#allocation51_spill] sm:$0xff] %v2710_v13  ;;  %v442_v13 = vmul.f32 %v1885_v55, %v441_v45  ;;  %v466_v45 = vsel %vm465_vm4, %v1883_v52, %v462_v38 }
  0xed   :  { %3374 = vst [vmem:[#allocation53_spill] sm:$0xff] %v2715_v49 }
  0xee   :  { %v443_v50 = vadd.f32 %v1885_v55, %v442_v13 }
  0xf0   :  { %v447_v5 = vsel %vm446_vm5, %v1885_v55, %v443_v50 }
 0x100   :  { %v428_v41 = vpop.f32.mrf.mxu3  ;;  %v408_v6 = vpop.f32.mrf.mxu2 }
 0x101   :  { %v434_v46 = vadd.f32 %v428_v41, %v2712_v57  ;;  %v433_v20 = vadd.f32 %v408_v6, %v2715_v49  ;;  %v467_v41 = vand.u32 2147483647, %v457_v53 }
 0x103   :  { %v1843_v1 = vmul.f32 -1.442695, %v434_v46  ;;  %v451_v46 = vor.u32 1.1754944e-38, %v450_v42  ;;  %vm468_vm7 = vcmp.eq.f32.partialorder %v467_v41, 8.507059e+37  ;;  %v3397_v41 = vld [vmem:[#allocation45_spill] sm:$0xff] }
 0x104   :  { %v471_v57 = vsel %vm468_vm7, %v470_v26, %v466_v45 }
 0x105   :  { %1886 = vpow2.f32 %v1843_v1  ;;  %v452_v49 = vsel %vm449_vm6, %v451_v46, %v447_v5  ;;  %v3398_v5 = vld [vmem:[#allocation49_spill] sm:$0xff] }
 0x106   :  { %1888 = vtanh.f32 %v433_v20  ;;  %v493_v20 = vmul.f32 0.0, %v471_v57 }
 0x10b   :  { %v1887_v11 = vpop.eup %1886 }
 0x10c   :  { %v477_v6 = vadd.f32 1.0, %v1887_v11  ;;  %v1889_v1 = vpop.eup %1888 }
 0x10d   :  { %v494_v37 = vmul.f32 %v1889_v1, %v452_v49  ;;  %v3399_v1 = vld [vmem:[#allocation48_spill] sm:$0xff] }
 0x10e   :  { %1890 = vrcp.f32 %v477_v6  ;;  %v489_v61 = vand.u32 2147483648, %v477_v6  ;;  %v487_v55 = vand.u32 2147483647, %v477_v6  ;;  %vm483_vm9 = vweird.f32 %v477_v6 }
 0x10f   :  { %v2718_v51 = vadd.f32 %v494_v37, %v493_v20  ;;  %v3375_v37 = vld [vmem:[#allocation23_spill] sm:$0xff] }
 0x110   :  { %v490_v52 = vor.u32 1.1754944e-38, %v489_v61  ;;  %vm488_vm11 = vcmp.eq.f32.partialorder %v487_v55, 8.507059e+37 }
 0x111   :  { %1892 = vtanh.f32 %v2718_v51 }
 0x114   :  { %v1891_v13 = vpop.eup %1890 }
 0x115   :  { %v479_v33 = vmul.f32 %v1891_v13, %v477_v6  ;;  %vm484_vm8 = vweird.f32 %v1891_v13 }
 0x116   :  { %vm485_vm10 = vmor %vm483_vm9, %vm484_vm8 }
 0x117   :  { %v480_v53 = vsub.f32 1.0, %v479_v33  ;;  %v1893_v18 = vpop.eup %1892 }
 0x119   :  { %v481_v42 = vmul.f32 %v1891_v13, %v480_v53 }
 0x11b   :  { %v482_v38 = vadd.f32 %v1891_v13, %v481_v42  ;;  %v3400_v42 = vld [vmem:[#allocation52_spill] sm:$0xff] }
 0x11d   :  { %v486_v50 = vsel %vm485_vm10, %v1891_v13, %v482_v38 }
 0x11e   :  { %v491_v49 = vsel %vm488_vm11, %v490_v52, %v486_v50 }
 0x11f   :  { %v497_v57 = vmul.f32 %v1893_v18, %v491_v49 }
 0x121   :  { %498 = vst [vmem:[#allocation2] sm:$0x3] %v497_v57  ;;  %515 = vmatmul.f32.vlgmr.msrb.gmra.mxu0 %v497_v57  ;;  %535 = vmatmul.f32.vlgmr.msrb.gmra.mxu1 %v497_v57 }
 0x122   :  { %555 = vmatmul.f32.vlgmr.msrb.gmra.mxu2 %v497_v57  ;;  %575 = vmatmul.f32.vlgmr.msrb.gmra.mxu3 %v497_v57 }
 0x123   :  { %831 = vmatpush.msrb.mxu0 %v2373_v22  ;;  %851 = vmatpush.msrb.mxu1 %v2362_v12  ;;  %v3376_v12 = vld [vmem:[#allocation34_spill] sm:$0xff]  ;;  %v3379_v22 = vld [vmem:[#allocation24_spill] sm:$0xff] }
 0x124   :  { %871 = vmatpush.msrb.mxu2 %v2477_v56  ;;  %891 = vmatpush.msrb.mxu3 %v2479_v59 }
 0x125   :  { %832 = vmatpush.msrb.mxu0 %v2377_v24  ;;  %852 = vmatpush.msrb.mxu1 %v3375_v37  ;;  %v3381_v24 = vld [vmem:[#allocation37_spill] sm:$0xff] }
 0x126   :  { %872 = vmatpush.msrb.mxu2 %v2483_v60  ;;  %892 = vmatpush.msrb.mxu3 %v2485_v63 }
 0x127   :  { %833 = vmatpush.msrb.mxu0 %v2383_v28  ;;  %853 = vmatpush.msrb.mxu1 %v2367_v16  ;;  %v3377_v16 = vld [vmem:[#allocation35_spill] sm:$0xff]  ;;  %v3383_v28 = vld [vmem:[#allocation25_spill] sm:$0xff] }
 0x128   :  { %873 = vmatpush.msrb.mxu2 %v2489_v0  ;;  %893 = vmatpush.msrb.mxu3 %v2491_v3 }
 0x129   :  { %834 = vmatpush.msrb.mxu0 %v2389_v32  ;;  %854 = vmatpush.msrb.mxu1 %v2370_v19  ;;  %v3378_v19 = vld [vmem:[#allocation29_spill] sm:$0xff]  ;;  %v3385_v32 = vld [vmem:[#allocation39_spill] sm:$0xff] }
 0x12a   :  { %874 = vmatpush.msrb.mxu2 %v2497_v4  ;;  %894 = vmatpush.msrb.mxu3 %v2499_v7 }
 0x12b   :  { %835 = vmatpush.msrb.mxu0 %v2395_v36  ;;  %855 = vmatpush.msrb.mxu1 %v2375_v23  ;;  %v3380_v23 = vld [vmem:[#allocation36_spill] sm:$0xff]  ;;  %v3387_v36 = vld [vmem:[#allocation26_spill] sm:$0xff] }
 0x12c   :  { %875 = vmatpush.msrb.mxu2 %v2505_v8  ;;  %895 = vmatpush.msrb.mxu3 %v2507_v9 }
 0x12d   :  { %836 = vmatpush.msrb.mxu0 %v2401_v40  ;;  %856 = vmatpush.msrb.mxu1 %v2381_v27  ;;  %v3382_v27 = vld [vmem:[#allocation30_spill] sm:$0xff]  ;;  %v3389_v40 = vld [vmem:[#allocation41_spill] sm:$0xff] }
 0x12e   :  { %876 = vmatpush.msrb.mxu2 %v2513_v54  ;;  %896 = vmatpush.msrb.mxu3 %v2515_v10 }
 0x12f   :  { %837 = vmatpush.msrb.mxu0 %v2407_v44  ;;  %857 = vmatpush.msrb.mxu1 %v2387_v31  ;;  %v3384_v31 = vld [vmem:[#allocation38_spill] sm:$0xff]  ;;  %v3391_v44 = vld [vmem:[#allocation27_spill] sm:$0xff] }
 0x130   :  { %877 = vmatpush.msrb.mxu2 %v2521_v15  ;;  %897 = vmatpush.msrb.mxu3 %v2523_v17 }
 0x131   :  { %838 = vmatpush.msrb.mxu0 %v2413_v48  ;;  %858 = vmatpush.msrb.mxu1 %v2393_v35  ;;  %v3386_v35 = vld [vmem:[#allocation31_spill] sm:$0xff] }
 0x132   :  { %878 = vmatpush.msrb.mxu2 %v2529_v21  ;;  %898 = vmatpush.msrb.mxu3 %v2531_v25  ;;  %v3393_v48 = vld [vmem:[#allocation43_spill] sm:$0xff] }
 0x133   :  { %839 = vmatpush.msrb.mxu0 %v2425_v58  ;;  %859 = vmatpush.msrb.mxu1 %v2399_v39  ;;  %v3388_v39 = vld [vmem:[#allocation40_spill] sm:$0xff]  ;;  %v3394_v58 = vld [vmem:[#allocation33_spill] sm:$0xff] }
 0x134   :  { %879 = vmatpush.msrb.mxu2 %v2537_v29  ;;  %899 = vmatpush.msrb.mxu3 %v2539_v30 }
 0x135   :  { %840 = vmatpush.msrb.mxu0 %v2431_v62  ;;  %860 = vmatpush.msrb.mxu1 %v2405_v43  ;;  %v3390_v43 = vld [vmem:[#allocation32_spill] sm:$0xff] }
 0x136   :  { %880 = vmatpush.msrb.mxu2 %v2545_v14  ;;  %900 = vmatpush.msrb.mxu3 %v2547_v34  ;;  %v3395_v62 = vld [vmem:[#allocation28_spill] sm:$0xff] }
 0x137   :  { %841 = vmatpush.msrb.mxu0 %v2437_v2  ;;  %861 = vmatpush.msrb.mxu1 %v2411_v47  ;;  %v3392_v47 = vld [vmem:[#allocation42_spill] sm:$0xff]  ;;  %v3396_v2 = vld [vmem:[#allocation44_spill] sm:$0xff] }
 0x138   :  { %881 = vmatpush.msrb.mxu2 %v3376_v12  ;;  %901 = vmatpush.msrb.mxu3 %v3377_v16 }
 0x139   :  { %842 = vmatpush.msrb.mxu0 %v3378_v19  ;;  %862 = vmatpush.msrb.mxu1 %v3379_v22 }
 0x13a   :  { %882 = vmatpush.msrb.mxu2 %v3380_v23  ;;  %902 = vmatpush.msrb.mxu3 %v3381_v24 }
 0x13b   :  { %843 = vmatpush.msrb.mxu0 %v3382_v27  ;;  %863 = vmatpush.msrb.mxu1 %v3383_v28  ;;  %v3401_v28 = vld [vmem:[#allocation53_spill] sm:$0xff] }
 0x13c   :  { %883 = vmatpush.msrb.mxu2 %v3384_v31  ;;  %903 = vmatpush.msrb.mxu3 %v3385_v32 }
 0x13d   :  { %844 = vmatpush.msrb.mxu0 %v3386_v35  ;;  %864 = vmatpush.msrb.mxu1 %v3387_v36 }
 0x13e   :  { %884 = vmatpush.msrb.mxu2 %v3388_v39  ;;  %904 = vmatpush.msrb.mxu3 %v3389_v40 }
 0x13f   :  { %845 = vmatpush.msrb.mxu0 %v3390_v43  ;;  %865 = vmatpush.msrb.mxu1 %v3391_v44 }
 0x140   :  { %885 = vmatpush.msrb.mxu2 %v3392_v47  ;;  %905 = vmatpush.msrb.mxu3 %v3393_v48 }
 0x141   :  { %846 = vmatpush.msrb.mxu0 %v3394_v58  ;;  %866 = vmatpush.msrb.mxu1 %v3395_v62 }
 0x142   :  { %886 = vmatpush.msrb.mxu2 %v3396_v2  ;;  %906 = vmatpush.msrb.mxu3 %v3397_v41 }
 0x19e   :  { %v516_v11 = vpop.f32.mrf.mxu0  ;;  %v536_v26 = vpop.f32.mrf.mxu1 }
 0x19f   :  { %v583_v46 = vrot.slane %v516_v11, 6  ;;  %v584_v6 = vrot.slane %v536_v26, 6 }
 0x1a1   :  { %v591_v45 = vadd.f32 %v583_v46, %v3398_v5  ;;  %v592_v20 = vadd.f32 %v584_v6, %v3399_v1 }
 0x1a3   :  { %v1844_v13 = vmul.f32 -1.442695, %v591_v45  ;;  %v1845_v33 = vmul.f32 -1.442695, %v592_v20 }
 0x1a5   :  { %1894 = vpow2.f32 %v1844_v13  ;;  %v576_v53 = vpop.f32.mrf.mxu3  ;;  %v556_v57 = vpop.f32.mrf.mxu2 }
 0x1a6   :  { %1896 = vpow2.f32 %v1845_v33  ;;  %v586_v61 = vrot.slane %v576_v53, 6  ;;  %v585_v37 = vrot.slane %v556_v57, 6 }
 0x1a8   :  { %v594_v55 = vadd.f32 %v586_v61, %v3400_v42  ;;  %v593_v35 = vadd.f32 %v585_v37, %v3401_v28 }
 0x1aa   :  { %v1846_v38 = vmul.f32 -1.442695, %v594_v55 }
 0x1ab   :  { %v1895_v52 = vpop.eup %1894 }
 0x1ac   :  { %v1897_v50 = vpop.eup %1896  ;;  %v598_v18 = vadd.f32 1.0, %v1895_v52  ;;  %1898 = vpow2.f32 %v1846_v38  ;;  %v654_v38 = vrot.slane %v2718_v51, 6 }
 0x1ad   :  { %v617_v49 = vadd.f32 1.0, %v1897_v50 }
 0x1ae   :  { %1900 = vrcp.f32 %v598_v18  ;;  %v610_v11 = vand.u32 2147483648, %v598_v18  ;;  %v608_v6 = vand.u32 2147483647, %v598_v18  ;;  %vm604_vm14 = vweird.f32 %v598_v18 }
 0x1af   :  { %1902 = vrcp.f32 %v617_v49  ;;  %v629_v26 = vand.u32 2147483648, %v617_v49  ;;  %v627_v20 = vand.u32 2147483647, %v617_v49  ;;  %vm623_vm15 = vweird.f32 %v617_v49 }
 0x1b0   :  { %v611_v53 = vor.u32 1.1754944e-38, %v610_v11  ;;  %vm609_vm2 = vcmp.eq.f32.partialorder %v608_v6, 8.507059e+37 }
 0x1b1   :  { %v630_v52 = vor.u32 1.1754944e-38, %v629_v26  ;;  %vm628_vm3 = vcmp.eq.f32.partialorder %v627_v20, 8.507059e+37  ;;  %v2793_v20 = vld [vmem:[#allocation8 + $0x1e0] sm:$0xff] }
 0x1b2   :  { %v1899_v19 = vpop.eup %1898 }
 0x1b3   :  { %v637_v22 = vadd.f32 1.0, %v1899_v19 }
 0x1b4   :  { %v1901_v27 = vpop.eup %1900 }
 0x1b5   :  { %v1903_v36 = vpop.eup %1902  ;;  %v600_v43 = vmul.f32 %v1901_v27, %v598_v18  ;;  %1904 = vrcp.f32 %v637_v22  ;;  %vm605_vm12 = vweird.f32 %v1901_v27  ;;  %v649_v51 = vand.u32 2147483648, %v637_v22 }
 0x1b6   :  { %v619_v44 = vmul.f32 %v1903_v36, %v617_v49  ;;  %1906 = vtanh.f32 %v593_v35  ;;  %vm624_vm13 = vweird.f32 %v1903_v36  ;;  %vm606_vm0 = vmor %vm604_vm14, %vm605_vm12  ;;  %vm643_vm5 = vweird.f32 %v637_v22 }
 0x1b7   :  { %v601_v58 = vsub.f32 1.0, %v600_v43  ;;  %vm625_vm1 = vmor %vm623_vm15, %vm624_vm13  ;;  %v647_v11 = vand.u32 2147483647, %v637_v22  ;;  %v650_v26 = vor.u32 1.1754944e-38, %v649_v51 }
 0x1b8   :  { %v620_v62 = vsub.f32 1.0, %v619_v44 }
 0x1b9   :  { %v602_v46 = vmul.f32 %v1901_v27, %v601_v58  ;;  %vm648_vm7 = vcmp.eq.f32.partialorder %v647_v11, 8.507059e+37 }
 0x1ba   :  { %v621_v45 = vmul.f32 %v1903_v36, %v620_v62 }
 0x1bb   :  { %v1905_v13 = vpop.eup %1904  ;;  %v603_v33 = vadd.f32 %v1901_v27, %v602_v46 }
 0x1bc   :  { %v622_v61 = vadd.f32 %v1903_v36, %v621_v45  ;;  %v639_v55 = vmul.f32 %v1905_v13, %v637_v22  ;;  %v1907_v57 = vpop.eup %1906  ;;  %vm644_vm4 = vweird.f32 %v1905_v13  ;;  %v2801_v22 = vld [vmem:[#allocation8 + $0x1c0] sm:$0xff] }
 0x1bd   :  { %v607_v50 = vsel %vm606_vm0, %v1901_v27, %v603_v33  ;;  %vm645_vm6 = vmor %vm643_vm5, %vm644_vm4  ;;  %v2796_v33 = vld [vmem:[#allocation8 + $0x1e8] sm:$0xff] }
 0x1be   :  { %v612_v37 = vsel %vm609_vm2, %v611_v53, %v607_v50  ;;  %v626_v19 = vsel %vm625_vm1, %v1903_v36, %v622_v61  ;;  %v640_v35 = vsub.f32 1.0, %v639_v55  ;;  %v2809_v53 = vld [vmem:[#allocation8 + $0x1a0] sm:$0xff]  ;;  %v2812_v61 = vld [vmem:[#allocation8 + $0x1a8] sm:$0xff] }
 0x1bf   :  { %v631_v43 = vsel %vm628_vm3, %v630_v52, %v626_v19  ;;  %v657_v44 = vmul.f32 %v1907_v57, %v612_v37 }
 0x1c0   :  { %v656_v58 = vmul.f32 %v654_v38, %v631_v43  ;;  %v641_v18 = vmul.f32 %v1905_v13, %v640_v35 }
 0x1c2   :  { %v2790_v49 = vadd.f32 %v657_v44, %v656_v58  ;;  %v642_v62 = vadd.f32 %v1905_v13, %v641_v18 }
 0x1c4   :  { %1908 = vtanh.f32 %v2790_v49  ;;  %v646_v27 = vsel %vm645_vm6, %v1905_v13, %v642_v62  ;;  %v2804_v13 = vld [vmem:[#allocation8 + $0x1c8] sm:$0xff] }
 0x1c5   :  { %v651_v46 = vsel %vm648_vm7, %v650_v26, %v646_v27 }
 0x1ca   :  { %v1909_v36 = vpop.eup %1908 }
 0x1cb   :  { %v660_v6 = vmul.f32 %v1909_v36, %v651_v46 }
 0x1cd   :  { %661 = vst [vmem:[#allocation2] sm:$0xc] %v660_v6  ;;  %v663_v45 = vrot.slane %v660_v6, 2 }
 0x1cf   :  { %681 = vmatmul.f32.vlgmr.msra.gmra.mxu0 %v663_v45  ;;  %701 = vmatmul.f32.vlgmr.msra.gmra.mxu1 %v663_v45 }
 0x1d0   :  { %721 = vmatmul.f32.vlgmr.msra.gmra.mxu2 %v663_v45  ;;  %741 = vmatmul.f32.vlgmr.msra.gmra.mxu3 %v663_v45 }
 0x1d1   :  { %997 = vmatpush.msra.mxu0 %v2793_v20  ;;  %1017 = vmatpush.msra.mxu1 %v2796_v33 }
 0x1d2   :  { %1037 = vmatpush.msra.mxu2 %v2477_v56  ;;  %1057 = vmatpush.msra.mxu3 %v2479_v59  ;;  %v2817_v56 = vld [vmem:[#allocation8 + $0x180] sm:$0xff]  ;;  %v2820_v59 = vld [vmem:[#allocation8 + $0x188] sm:$0xff] }
 0x1d3   :  { %998 = vmatpush.msra.mxu0 %v2801_v22  ;;  %1018 = vmatpush.msra.mxu1 %v2804_v13 }
 0x1d4   :  { %1038 = vmatpush.msra.mxu2 %v2483_v60  ;;  %1058 = vmatpush.msra.mxu3 %v2485_v63  ;;  %v2825_v60 = vld [vmem:[#allocation8 + $0x160] sm:$0xff]  ;;  %v2828_v63 = vld [vmem:[#allocation8 + $0x168] sm:$0xff] }
 0x1d5   :  { %999 = vmatpush.msra.mxu0 %v2809_v53  ;;  %1019 = vmatpush.msra.mxu1 %v2812_v61 }
 0x1d6   :  { %1039 = vmatpush.msra.mxu2 %v2489_v0  ;;  %1059 = vmatpush.msra.mxu3 %v2491_v3  ;;  %v2833_v0 = vld [vmem:[#allocation8 + $0x140] sm:$0xff]  ;;  %v2836_v3 = vld [vmem:[#allocation8 + $0x148] sm:$0xff] }
 0x1d7   :  { %1000 = vmatpush.msra.mxu0 %v2817_v56  ;;  %1020 = vmatpush.msra.mxu1 %v2820_v59 }
 0x1d8   :  { %1040 = vmatpush.msra.mxu2 %v2497_v4  ;;  %1060 = vmatpush.msra.mxu3 %v2499_v7  ;;  %v2841_v4 = vld [vmem:[#allocation8 + $0x120] sm:$0xff]  ;;  %v2844_v7 = vld [vmem:[#allocation8 + $0x128] sm:$0xff] }
 0x1d9   :  { %1001 = vmatpush.msra.mxu0 %v2825_v60  ;;  %1021 = vmatpush.msra.mxu1 %v2828_v63 }
 0x1da   :  { %1041 = vmatpush.msra.mxu2 %v2505_v8  ;;  %1061 = vmatpush.msra.mxu3 %v2507_v9  ;;  %v2849_v8 = vld [vmem:[#allocation8 + $0x100] sm:$0xff]  ;;  %v2852_v9 = vld [vmem:[#allocation8 + $0x108] sm:$0xff] }
 0x1db   :  { %1002 = vmatpush.msra.mxu0 %v2833_v0  ;;  %1022 = vmatpush.msra.mxu1 %v2836_v3 }
 0x1dc   :  { %1042 = vmatpush.msra.mxu2 %v2513_v54  ;;  %1062 = vmatpush.msra.mxu3 %v2515_v10  ;;  %v2857_v54 = vld [vmem:[#allocation8 + $0xe0] sm:$0xff]  ;;  %v2860_v10 = vld [vmem:[#allocation8 + $0xe8] sm:$0xff] }
 0x1dd   :  { %1003 = vmatpush.msra.mxu0 %v2841_v4  ;;  %1023 = vmatpush.msra.mxu1 %v2844_v7 }
 0x1de   :  { %1043 = vmatpush.msra.mxu2 %v2521_v15  ;;  %1063 = vmatpush.msra.mxu3 %v2523_v17  ;;  %v2865_v15 = vld [vmem:[#allocation8 + $0xc0] sm:$0xff]  ;;  %v2868_v17 = vld [vmem:[#allocation8 + $0xc8] sm:$0xff] }
 0x1df   :  { %1004 = vmatpush.msra.mxu0 %v2849_v8  ;;  %1024 = vmatpush.msra.mxu1 %v2852_v9 }
 0x1e0   :  { %1044 = vmatpush.msra.mxu2 %v2529_v21  ;;  %1064 = vmatpush.msra.mxu3 %v2531_v25  ;;  %v2873_v21 = vld [vmem:[#allocation8 + $0xa0] sm:$0xff]  ;;  %v2876_v25 = vld [vmem:[#allocation8 + $0xa8] sm:$0xff] }
 0x1e1   :  { %1005 = vmatpush.msra.mxu0 %v2857_v54  ;;  %1025 = vmatpush.msra.mxu1 %v2860_v10  ;;  %3402 = vst [vmem:[#allocation23_spill] sm:$0xff] %v2873_v21 }
 0x1e2   :  { %1045 = vmatpush.msra.mxu2 %v2537_v29  ;;  %1065 = vmatpush.msra.mxu3 %v2539_v30  ;;  %3403 = vst [vmem:[#allocation34_spill] sm:$0xff] %v2876_v25  ;;  %v2881_v29 = vld [vmem:[#allocation8 + $0x80] sm:$0xff]  ;;  %v2884_v30 = vld [vmem:[#allocation8 + $0x88] sm:$0xff] }
 0x1e3   :  { %1006 = vmatpush.msra.mxu0 %v2865_v15  ;;  %1026 = vmatpush.msra.mxu1 %v2868_v17  ;;  %3404 = vst [vmem:[#allocation35_spill] sm:$0xff] %v2881_v29 }
 0x1e4   :  { %1046 = vmatpush.msra.mxu2 %v2545_v14  ;;  %1066 = vmatpush.msra.mxu3 %v2547_v34  ;;  %3405 = vst [vmem:[#allocation29_spill] sm:$0xff] %v2884_v30  ;;  %v2889_v14 = vld [vmem:[#allocation8 + $0x60] sm:$0xff]  ;;  %v2892_v34 = vld [vmem:[#allocation8 + $0x68] sm:$0xff] }
 0x1e5   :  { %1007 = vmatpush.msra.mxu0 %v2873_v21  ;;  %1027 = vmatpush.msra.mxu1 %v2876_v25  ;;  %3406 = vst [vmem:[#allocation24_spill] sm:$0xff] %v2889_v14 }
 0x1e6   :  { %1047 = vmatpush.msra.mxu2 %v3376_v12  ;;  %1067 = vmatpush.msra.mxu3 %v3377_v16  ;;  %3407 = vst [vmem:[#allocation36_spill] sm:$0xff] %v2892_v34  ;;  %v2897_v12 = vld [vmem:[#allocation8 + $0x40] sm:$0xff]  ;;  %v2900_v16 = vld [vmem:[#allocation8 + $0x48] sm:$0xff] }
 0x1e7   :  { %1008 = vmatpush.msra.mxu0 %v2881_v29  ;;  %1028 = vmatpush.msra.mxu1 %v2884_v30  ;;  %3408 = vst [vmem:[#allocation37_spill] sm:$0xff] %v2897_v12 }
 0x1e8   :  { %1048 = vmatpush.msra.mxu2 %v3380_v23  ;;  %1068 = vmatpush.msra.mxu3 %v3381_v24  ;;  %3409 = vst [vmem:[#allocation30_spill] sm:$0xff] %v2900_v16  ;;  %v2905_v23 = vld [vmem:[#allocation8 + $0x20] sm:$0xff]  ;;  %v2908_v24 = vld [vmem:[#allocation8 + $0x28] sm:$0xff] }
 0x1e9   :  { %1009 = vmatpush.msra.mxu0 %v2889_v14  ;;  %1029 = vmatpush.msra.mxu1 %v2892_v34  ;;  %3410 = vst [vmem:[#allocation25_spill] sm:$0xff] %v2905_v23 }
 0x1ea   :  { %1049 = vmatpush.msra.mxu2 %v3384_v31  ;;  %1069 = vmatpush.msra.mxu3 %v3385_v32  ;;  %3411 = vst [vmem:[#allocation38_spill] sm:$0xff] %v2908_v24  ;;  %v2913_v31 = vld [vmem:[#allocation8] sm:$0xff]  ;;  %v2916_v32 = vld [vmem:[#allocation8 + $0x8] sm:$0xff] }
 0x1eb   :  { %1010 = vmatpush.msra.mxu0 %v2897_v12  ;;  %1030 = vmatpush.msra.mxu1 %v2900_v16  ;;  %3412 = vst [vmem:[#allocation39_spill] sm:$0xff] %v2913_v31 }
 0x1ec   :  { %1050 = vmatpush.msra.mxu2 %v3388_v39  ;;  %1070 = vmatpush.msra.mxu3 %v3389_v40  ;;  %3413 = vst [vmem:[#allocation31_spill] sm:$0xff] %v2916_v32 }
 0x1ed   :  { %1011 = vmatpush.msra.mxu0 %v2905_v23  ;;  %1031 = vmatpush.msra.mxu1 %v2908_v24 }
 0x1ee   :  { %1051 = vmatpush.msra.mxu2 %v3392_v47  ;;  %1071 = vmatpush.msra.mxu3 %v3393_v48 }
 0x1ef   :  { %1012 = vmatpush.msra.mxu0 %v2913_v31  ;;  %1032 = vmatpush.msra.mxu1 %v2916_v32 }
 0x1f0   :  { %1052 = vmatpush.msra.mxu2 %v3396_v2  ;;  %1072 = vmatpush.msra.mxu3 %v3397_v41 }
 0x24c   :  { %v682_v39 = vpop.f32.mrf.mxu0  ;;  %v702_v40 = vpop.f32.mrf.mxu1 }
 0x24d   :  { %v749_v55 = vrot.slane %v682_v39, 4  ;;  %v750_v38 = vrot.slane %v702_v40, 4 }
 0x24f   :  { %v757_v47 = vadd.f32 %v749_v55, %v3398_v5  ;;  %v758_v48 = vadd.f32 %v750_v38, %v3399_v1 }
 0x251   :  { %v1847_v52 = vmul.f32 -1.442695, %v757_v47  ;;  %v1848_v50 = vmul.f32 -1.442695, %v758_v48 }
 0x253   :  { %1910 = vpow2.f32 %v1847_v52  ;;  %v742_v57 = vpop.f32.mrf.mxu3  ;;  %v722_v58 = vpop.f32.mrf.mxu2 }
 0x254   :  { %1912 = vpow2.f32 %v1848_v50  ;;  %v752_v37 = vrot.slane %v742_v57, 4  ;;  %v751_v18 = vrot.slane %v722_v58, 4 }
 0x256   :  { %v760_v19 = vadd.f32 %v752_v37, %v3400_v42  ;;  %v759_v27 = vadd.f32 %v751_v18, %v3401_v28 }
 0x258   :  { %v1849_v35 = vmul.f32 -1.442695, %v760_v19 }
 0x259   :  { %v1911_v2 = vpop.eup %1910 }
 0x25a   :  { %v1913_v43 = vpop.eup %1912  ;;  %v764_v41 = vadd.f32 1.0, %v1911_v2  ;;  %1914 = vpow2.f32 %v1849_v35  ;;  %v820_v35 = vrot.slane %v2790_v49, 6 }
 0x25b   :  { %v783_v44 = vadd.f32 1.0, %v1913_v43 }
 0x25c   :  { %1916 = vrcp.f32 %v764_v41  ;;  %v776_v39 = vand.u32 2147483648, %v764_v41  ;;  %v774_v38 = vand.u32 2147483647, %v764_v41  ;;  %vm770_vm10 = vweird.f32 %v764_v41 }
 0x25d   :  { %1918 = vrcp.f32 %v783_v44  ;;  %v795_v40 = vand.u32 2147483648, %v783_v44  ;;  %v793_v48 = vand.u32 2147483647, %v783_v44  ;;  %vm789_vm11 = vweird.f32 %v783_v44 }
 0x25e   :  { %v777_v57 = vor.u32 1.1754944e-38, %v776_v39  ;;  %vm775_vm14 = vcmp.eq.f32.partialorder %v774_v38, 8.507059e+37 }
 0x25f   :  { %v796_v2 = vor.u32 1.1754944e-38, %v795_v40  ;;  %vm794_vm15 = vcmp.eq.f32.partialorder %v793_v48, 8.507059e+37  ;;  %v2931_v48 = vld [vmem:[#allocation8 + $0x1f0] sm:$0xff] }
 0x260   :  { %v1915_v62 = vpop.eup %1914 }
 0x261   :  { %v803_v51 = vadd.f32 1.0, %v1915_v62 }
 0x262   :  { %v1917_v11 = vpop.eup %1916 }
 0x263   :  { %v1919_v26 = vpop.eup %1918  ;;  %v766_v36 = vmul.f32 %v1917_v11, %v764_v41  ;;  %1920 = vrcp.f32 %v803_v51  ;;  %vm771_vm8 = vweird.f32 %v1917_v11  ;;  %v815_v49 = vand.u32 2147483648, %v803_v51 }
 0x264   :  { %v785_v46 = vmul.f32 %v1919_v26, %v783_v44  ;;  %1922 = vtanh.f32 %v759_v27  ;;  %vm790_vm9 = vweird.f32 %v1919_v26  ;;  %vm772_vm12 = vmor %vm770_vm10, %vm771_vm8  ;;  %vm809_vm1 = vweird.f32 %v803_v51 }
 0x265   :  { %v767_v6 = vsub.f32 1.0, %v766_v36  ;;  %vm791_vm13 = vmor %vm789_vm11, %vm790_vm9  ;;  %v813_v39 = vand.u32 2147483647, %v803_v51  ;;  %v816_v40 = vor.u32 1.1754944e-38, %v815_v49  ;;  %v3006_v49 = vld [vmem:[#allocation8 + $0xd8] sm:$0xff] }
 0x266   :  { %v786_v45 = vsub.f32 1.0, %v785_v46  ;;  %3415 = vst [vmem:[#allocation40_spill] sm:$0xff] %v3006_v49 }
 0x267   :  { %v768_v55 = vmul.f32 %v1917_v11, %v767_v6  ;;  %vm814_vm3 = vcmp.eq.f32.partialorder %v813_v39, 8.507059e+37  ;;  %v3011_v39 = vld [vmem:[#allocation8 + $0xb0] sm:$0xff] }
 0x268   :  { %v787_v47 = vmul.f32 %v1919_v26, %v786_v45  ;;  %3416 = vst [vmem:[#allocation41_spill] sm:$0xff] %v3011_v39 }
 0x269   :  { %v1921_v52 = vpop.eup %1920  ;;  %v769_v50 = vadd.f32 %v1917_v11, %v768_v55 }
 0x26a   :  { %v788_v37 = vadd.f32 %v1919_v26, %v787_v47  ;;  %v805_v19 = vmul.f32 %v1921_v52, %v803_v51  ;;  %v1923_v58 = vpop.eup %1922  ;;  %vm810_vm0 = vweird.f32 %v1921_v52  ;;  %v2934_v51 = vld [vmem:[#allocation8 + $0x1f8] sm:$0xff] }
 0x26b   :  { %v773_v43 = vsel %vm772_vm12, %v1917_v11, %v769_v50  ;;  %vm811_vm2 = vmor %vm809_vm1, %vm810_vm0  ;;  %v2942_v50 = vld [vmem:[#allocation8 + $0x1d8] sm:$0xff] }
 0x26c   :  { %v778_v18 = vsel %vm775_vm14, %v777_v57, %v773_v43  ;;  %v792_v62 = vsel %vm791_vm13, %v1919_v26, %v788_v37  ;;  %v806_v27 = vsub.f32 1.0, %v805_v19  ;;  %v2947_v57 = vld [vmem:[#allocation8 + $0x1b0] sm:$0xff]  ;;  %v2950_v37 = vld [vmem:[#allocation8 + $0x1b8] sm:$0xff] }
 0x26d   :  { %v797_v36 = vsel %vm794_vm15, %v796_v2, %v792_v62  ;;  %v823_v46 = vmul.f32 %v1923_v58, %v778_v18  ;;  %v2955_v19 = vld [vmem:[#allocation8 + $0x190] sm:$0xff]  ;;  %v2966_v43 = vld [vmem:[#allocation8 + $0x178] sm:$0xff] }
 0x26e   :  { %v822_v6 = vmul.f32 %v820_v35, %v797_v36  ;;  %v807_v41 = vmul.f32 %v1921_v52, %v806_v27  ;;  %v2958_v35 = vld [vmem:[#allocation8 + $0x198] sm:$0xff]  ;;  %v2963_v2 = vld [vmem:[#allocation8 + $0x170] sm:$0xff] }
 0x26f   :  { %v2971_v58 = vld [vmem:[#allocation8 + $0x150] sm:$0xff]  ;;  %v2974_v18 = vld [vmem:[#allocation8 + $0x158] sm:$0xff] }
 0x270   :  { %v2926_v44 = vadd.f32 %v823_v46, %v822_v6  ;;  %v808_v45 = vadd.f32 %v1921_v52, %v807_v41  ;;  %v2979_v62 = vld [vmem:[#allocation8 + $0x130] sm:$0xff]  ;;  %v2982_v27 = vld [vmem:[#allocation8 + $0x138] sm:$0xff] }
 0x271   :  { %v2987_v36 = vld [vmem:[#allocation8 + $0x110] sm:$0xff]  ;;  %v2990_v46 = vld [vmem:[#allocation8 + $0x118] sm:$0xff] }
 0x272   :  { %1924 = vtanh.f32 %v2926_v44  ;;  %v812_v11 = vsel %vm811_vm2, %v1921_v52, %v808_v45  ;;  %v2939_v52 = vld [vmem:[#allocation8 + $0x1d0] sm:$0xff]  ;;  %v2998_v41 = vld [vmem:[#allocation8 + $0xf8] sm:$0xff] }
 0x273   :  { %v817_v55 = vsel %vm814_vm3, %v816_v40, %v812_v11  ;;  %v2995_v6 = vld [vmem:[#allocation8 + $0xf0] sm:$0xff]  ;;  %v3014_v11 = vld [vmem:[#allocation8 + $0xb8] sm:$0xff] }
 0x274   :  { %v3003_v45 = vld [vmem:[#allocation8 + $0xd0] sm:$0xff]  ;;  %3417 = vst [vmem:[#allocation32_spill] sm:$0xff] %v3014_v11 }
 0x275   :  { %3414 = vst [vmem:[#allocation26_spill] sm:$0xff] %v3003_v45  ;;  %v3019_v40 = vld [vmem:[#allocation8 + $0x90] sm:$0xff] }
 0x276   :  { %3418 = vst [vmem:[#allocation27_spill] sm:$0xff] %v3019_v40 }
 0x278   :  { %v1925_v26 = vpop.eup %1924 }
 0x279   :  { %v826_v38 = vmul.f32 %v1925_v26, %v817_v55  ;;  %v3022_v26 = vld [vmem:[#allocation8 + $0x98] sm:$0xff]  ;;  %v3027_v55 = vld [vmem:[#allocation8 + $0x70] sm:$0xff] }
 0x27a   :  { %3419 = vst [vmem:[#allocation42_spill] sm:$0xff] %v3022_v26 }
 0x27b   :  { %827 = vst [vmem:[#allocation2] sm:$0x30] %v826_v38  ;;  %v829_v47 = vrot.slane %v826_v38, 4  ;;  %v3030_v38 = vld [vmem:[#allocation8 + $0x78] sm:$0xff] }
 0x27c   :  { %3420 = vst [vmem:[#allocation43_spill] sm:$0xff] %v3027_v55 }
 0x27d   :  { %847 = vmatmul.f32.vlgmr.msrb.gmra.mxu0 %v829_v47  ;;  %867 = vmatmul.f32.vlgmr.msrb.gmra.mxu1 %v829_v47  ;;  %3421 = vst [vmem:[#allocation33_spill] sm:$0xff] %v3030_v38 }
 0x27e   :  { %887 = vmatmul.f32.vlgmr.msrb.gmra.mxu2 %v829_v47  ;;  %907 = vmatmul.f32.vlgmr.msrb.gmra.mxu3 %v829_v47  ;;  %v3035_v47 = vld [vmem:[#allocation8 + $0x50] sm:$0xff] }
 0x27f   :  { %1148 = vmatpush.msrb.mxu0 %v2793_v20  ;;  %1168 = vmatpush.msrb.mxu1 %v2796_v33  ;;  %3422 = vst [vmem:[#allocation28_spill] sm:$0xff] %v3035_v47 }
 0x280   :  { %1188 = vmatpush.msrb.mxu2 %v2931_v48  ;;  %1208 = vmatpush.msrb.mxu3 %v2934_v51 }
 0x281   :  { %1149 = vmatpush.msrb.mxu0 %v2801_v22  ;;  %1169 = vmatpush.msrb.mxu1 %v2804_v13 }
 0x282   :  { %1189 = vmatpush.msrb.mxu2 %v2939_v52  ;;  %1209 = vmatpush.msrb.mxu3 %v2942_v50 }
 0x283   :  { %1150 = vmatpush.msrb.mxu0 %v2809_v53  ;;  %1170 = vmatpush.msrb.mxu1 %v2812_v61 }
 0x284   :  { %1190 = vmatpush.msrb.mxu2 %v2947_v57  ;;  %1210 = vmatpush.msrb.mxu3 %v2950_v37 }
 0x285   :  { %1151 = vmatpush.msrb.mxu0 %v2817_v56  ;;  %1171 = vmatpush.msrb.mxu1 %v2820_v59 }
 0x286   :  { %1191 = vmatpush.msrb.mxu2 %v2955_v19  ;;  %1211 = vmatpush.msrb.mxu3 %v2958_v35 }
 0x287   :  { %1152 = vmatpush.msrb.mxu0 %v2825_v60  ;;  %1172 = vmatpush.msrb.mxu1 %v2828_v63 }
 0x288   :  { %1192 = vmatpush.msrb.mxu2 %v2963_v2  ;;  %1212 = vmatpush.msrb.mxu3 %v2966_v43 }
 0x289   :  { %1153 = vmatpush.msrb.mxu0 %v2833_v0  ;;  %1173 = vmatpush.msrb.mxu1 %v2836_v3 }
 0x28a   :  { %1193 = vmatpush.msrb.mxu2 %v2971_v58  ;;  %1213 = vmatpush.msrb.mxu3 %v2974_v18 }
 0x28b   :  { %1154 = vmatpush.msrb.mxu0 %v2841_v4  ;;  %1174 = vmatpush.msrb.mxu1 %v2844_v7 }
 0x28c   :  { %1194 = vmatpush.msrb.mxu2 %v2979_v62  ;;  %1214 = vmatpush.msrb.mxu3 %v2982_v27 }
 0x28d   :  { %1155 = vmatpush.msrb.mxu0 %v2849_v8  ;;  %1175 = vmatpush.msrb.mxu1 %v2852_v9 }
 0x28e   :  { %1195 = vmatpush.msrb.mxu2 %v2987_v36  ;;  %1215 = vmatpush.msrb.mxu3 %v2990_v46 }
 0x28f   :  { %1156 = vmatpush.msrb.mxu0 %v2857_v54  ;;  %1176 = vmatpush.msrb.mxu1 %v2860_v10 }
 0x290   :  { %1196 = vmatpush.msrb.mxu2 %v2995_v6  ;;  %1216 = vmatpush.msrb.mxu3 %v2998_v41 }
 0x291   :  { %1157 = vmatpush.msrb.mxu0 %v2865_v15  ;;  %1177 = vmatpush.msrb.mxu1 %v2868_v17 }
 0x292   :  { %1197 = vmatpush.msrb.mxu2 %v3003_v45  ;;  %1217 = vmatpush.msrb.mxu3 %v3006_v49 }
 0x293   :  { %1158 = vmatpush.msrb.mxu0 %v2873_v21  ;;  %1178 = vmatpush.msrb.mxu1 %v2876_v25 }
 0x294   :  { %1198 = vmatpush.msrb.mxu2 %v3011_v39  ;;  %1218 = vmatpush.msrb.mxu3 %v3014_v11 }
 0x295   :  { %1159 = vmatpush.msrb.mxu0 %v2881_v29  ;;  %1179 = vmatpush.msrb.mxu1 %v2884_v30 }
 0x296   :  { %1199 = vmatpush.msrb.mxu2 %v3019_v40  ;;  %1219 = vmatpush.msrb.mxu3 %v3022_v26  ;;  %v3038_v26 = vld [vmem:[#allocation8 + $0x58] sm:$0xff] }
 0x297   :  { %1160 = vmatpush.msrb.mxu0 %v2889_v14  ;;  %1180 = vmatpush.msrb.mxu1 %v2892_v34  ;;  %3423 = vst [vmem:[#allocation44_spill] sm:$0xff] %v3038_v26 }
 0x298   :  { %1200 = vmatpush.msrb.mxu2 %v3027_v55  ;;  %1220 = vmatpush.msrb.mxu3 %v3030_v38  ;;  %v3043_v55 = vld [vmem:[#allocation8 + $0x30] sm:$0xff]  ;;  %v3046_v38 = vld [vmem:[#allocation8 + $0x38] sm:$0xff] }
 0x299   :  { %1161 = vmatpush.msrb.mxu0 %v2897_v12  ;;  %1181 = vmatpush.msrb.mxu1 %v2900_v16  ;;  %3424 = vst [vmem:[#allocation45_spill] sm:$0xff] %v3043_v55 }
 0x29a   :  { %1201 = vmatpush.msrb.mxu2 %v3035_v47  ;;  %1221 = vmatpush.msrb.mxu3 %v3038_v26  ;;  %3425 = vst [vmem:[#allocation49_spill] sm:$0xff] %v3046_v38  ;;  %v3051_v47 = vld [vmem:[#allocation8 + $0x10] sm:$0xff]  ;;  %v3054_v26 = vld [vmem:[#allocation8 + $0x18] sm:$0xff] }
 0x29b   :  { %1162 = vmatpush.msrb.mxu0 %v2905_v23  ;;  %1182 = vmatpush.msrb.mxu1 %v2908_v24  ;;  %3426 = vst [vmem:[#allocation48_spill] sm:$0xff] %v3051_v47 }
 0x29c   :  { %1202 = vmatpush.msrb.mxu2 %v3043_v55  ;;  %1222 = vmatpush.msrb.mxu3 %v3046_v38  ;;  %3427 = vst [vmem:[#allocation52_spill] sm:$0xff] %v3054_v26 }
 0x29d   :  { %1163 = vmatpush.msrb.mxu0 %v2913_v31  ;;  %1183 = vmatpush.msrb.mxu1 %v2916_v32 }
 0x29e   :  { %1203 = vmatpush.msrb.mxu2 %v3051_v47  ;;  %1223 = vmatpush.msrb.mxu3 %v3054_v26 }
 0x2fa   :  { %v848_v24 = vpop.f32.mrf.mxu0  ;;  %v868_v23 = vpop.f32.mrf.mxu1 }
 0x2fb   :  { %v915_v16 = vrot.slane %v848_v24, 2  ;;  %v916_v55 = vrot.slane %v868_v23, 2 }
 0x2fd   :  { %v923_v12 = vadd.f32 %v915_v16, %v3398_v5  ;;  %v924_v38 = vadd.f32 %v916_v55, %v3399_v1 }
 0x2ff   :  { %v1850_v34 = vmul.f32 -1.442695, %v923_v12  ;;  %v1851_v31 = vmul.f32 -1.442695, %v924_v38 }
 0x301   :  { %1926 = vpow2.f32 %v1850_v34  ;;  %v908_v32 = vpop.f32.mrf.mxu3  ;;  %v888_v24 = vpop.f32.mrf.mxu2 }
 0x302   :  { %1928 = vpow2.f32 %v1851_v31  ;;  %v918_v14 = vrot.slane %v908_v32, 2  ;;  %v917_v5 = vrot.slane %v888_v24, 2 }
 0x304   :  { %v926_v47 = vadd.f32 %v918_v14, %v3400_v42  ;;  %v925_v34 = vadd.f32 %v917_v5, %v3401_v28 }
 0x306   :  { %v1852_v40 = vmul.f32 -1.442695, %v926_v47 }
 0x307   :  { %v1927_v30 = vpop.eup %1926 }
 0x308   :  { %v1929_v29 = vpop.eup %1928  ;;  %v930_v26 = vadd.f32 1.0, %v1927_v30  ;;  %1930 = vpow2.f32 %v1852_v40 }
 0x309   :  { %v949_v11 = vadd.f32 1.0, %v1929_v29 }
 0x30a   :  { %1932 = vrcp.f32 %v930_v26  ;;  %v942_v55 = vand.u32 2147483648, %v930_v26  ;;  %v940_v29 = vand.u32 2147483647, %v930_v26  ;;  %vm936_vm6 = vweird.f32 %v930_v26 }
 0x30b   :  { %1934 = vrcp.f32 %v949_v11  ;;  %v961_v30 = vand.u32 2147483648, %v949_v11  ;;  %v959_v47 = vand.u32 2147483647, %v949_v11  ;;  %vm955_vm7 = vweird.f32 %v949_v11 }
 0x30c   :  { %v943_v28 = vor.u32 1.1754944e-38, %v942_v55  ;;  %vm941_vm10 = vcmp.eq.f32.partialorder %v940_v29, 8.507059e+37 }
 0x30d   :  { %vm960_vm11 = vcmp.eq.f32.partialorder %v959_v47, 8.507059e+37  ;;  %v3432_v47 = vld [vmem:[#allocation41_spill] sm:$0xff] }
 0x30e   :  { %v1931_v16 = vpop.eup %1930 }
 0x30f   :  { %v969_v1 = vadd.f32 1.0, %v1931_v16 }
 0x310   :  { %v1933_v12 = vpop.eup %1932 }
 0x311   :  { %v1935_v23 = vpop.eup %1934  ;;  %v932_v31 = vmul.f32 %v1933_v12, %v930_v26  ;;  %1936 = vrcp.f32 %v969_v1  ;;  %vm937_vm4 = vweird.f32 %v1933_v12  ;;  %vm975_vm13 = vweird.f32 %v969_v1 }
 0x312   :  { %v951_v32 = vmul.f32 %v1935_v23, %v949_v11  ;;  %1938 = vtanh.f32 %v925_v34  ;;  %vm956_vm5 = vweird.f32 %v1935_v23  ;;  %vm938_vm8 = vmor %vm936_vm6, %vm937_vm4 }
 0x313   :  { %v933_v42 = vsub.f32 1.0, %v932_v31  ;;  %v986_v31 = vrot.slane %v2926_v44, 6  ;;  %vm957_vm9 = vmor %vm955_vm7, %vm956_vm5  ;;  %v981_v44 = vand.u32 2147483648, %v969_v1 }
 0x314   :  { %v952_v14 = vsub.f32 1.0, %v951_v32  ;;  %v962_v32 = vor.u32 1.1754944e-38, %v961_v30  ;;  %v979_v30 = vand.u32 2147483647, %v969_v1 }
 0x315   :  { %v934_v40 = vmul.f32 %v1933_v12, %v933_v42  ;;  %v982_v29 = vor.u32 1.1754944e-38, %v981_v44  ;;  %v3445_v44 = vld [vmem:[#allocation44_spill] sm:$0xff] }
 0x316   :  { %v953_v38 = vmul.f32 %v1935_v23, %v952_v14  ;;  %vm980_vm15 = vcmp.eq.f32.partialorder %v979_v30, 8.507059e+37  ;;  %v3446_v30 = vld [vmem:[#allocation25_spill] sm:$0xff] }
 0x317   :  { %v1937_v24 = vpop.eup %1936  ;;  %v935_v16 = vadd.f32 %v1933_v12, %v934_v40 }
 0x318   :  { %v954_v5 = vadd.f32 %v1935_v23, %v953_v38  ;;  %v971_v39 = vmul.f32 %v1937_v24, %v969_v1  ;;  %v1939_v42 = vpop.eup %1938  ;;  %vm976_vm12 = vweird.f32 %v1937_v24  ;;  %v3431_v1 = vld [vmem:[#allocation34_spill] sm:$0xff] }
 0x319   :  { %v939_v34 = vsel %vm938_vm8, %v1933_v12, %v935_v16  ;;  %vm977_vm14 = vmor %vm975_vm13, %vm976_vm12  ;;  %v3434_v16 = vld [vmem:[#allocation35_spill] sm:$0xff] }
 0x31a   :  { %v944_v25 = vsel %vm941_vm10, %v943_v28, %v939_v34  ;;  %v958_v21 = vsel %vm957_vm9, %v1935_v23, %v954_v5  ;;  %v972_v14 = vsub.f32 1.0, %v971_v39  ;;  %v3435_v28 = vld [vmem:[#allocation29_spill] sm:$0xff]  ;;  %v3436_v5 = vld [vmem:[#allocation27_spill] sm:$0xff]  ;;  %v3439_v34 = vld [vmem:[#allocation36_spill] sm:$0xff] }
 0x31b   :  { %v963_v49 = vsel %vm960_vm11, %v962_v32, %v958_v21  ;;  %v989_v45 = vmul.f32 %v1939_v42, %v944_v25  ;;  %v3428_v25 = vld [vmem:[#allocation26_spill] sm:$0xff]  ;;  %v3438_v32 = vld [vmem:[#allocation24_spill] sm:$0xff]  ;;  %v3440_v42 = vld [vmem:[#allocation43_spill] sm:$0xff] }
 0x31c   :  { %v988_v40 = vmul.f32 %v986_v31, %v963_v49  ;;  %v973_v26 = vmul.f32 %v1937_v24, %v972_v14  ;;  %v3430_v49 = vld [vmem:[#allocation23_spill] sm:$0xff]  ;;  %v3437_v31 = vld [vmem:[#allocation42_spill] sm:$0xff]  ;;  %v3441_v14 = vld [vmem:[#allocation33_spill] sm:$0xff] }
 0x31e   :  { %v3062_v11 = vadd.f32 %v989_v45, %v988_v40  ;;  %v974_v55 = vadd.f32 %v1937_v24, %v973_v26  ;;  %v3429_v45 = vld [vmem:[#allocation40_spill] sm:$0xff]  ;;  %v3442_v40 = vld [vmem:[#allocation37_spill] sm:$0xff]  ;;  %v3443_v26 = vld [vmem:[#allocation30_spill] sm:$0xff] }
 0x320   :  { %1940 = vtanh.f32 %v3062_v11  ;;  %v978_v12 = vsel %vm977_vm14, %v1937_v24, %v974_v55  ;;  %v3433_v24 = vld [vmem:[#allocation32_spill] sm:$0xff] }
 0x321   :  { %v983_v38 = vsel %vm980_vm15, %v982_v29, %v978_v12  ;;  %v3444_v55 = vld [vmem:[#allocation28_spill] sm:$0xff]  ;;  %v3447_v12 = vld [vmem:[#allocation38_spill] sm:$0xff]  ;;  %v3448_v29 = vld [vmem:[#allocation45_spill] sm:$0xff] }
 0x326   :  { %v1941_v23 = vpop.eup %1940 }
 0x327   :  { %v992_v39 = vmul.f32 %v1941_v23, %v983_v38  ;;  %v3449_v23 = vld [vmem:[#allocation49_spill] sm:$0xff]  ;;  %v3450_v38 = vld [vmem:[#allocation39_spill] sm:$0xff] }
 0x329   :  { %993 = vst [vmem:[#allocation2] sm:$0xc0] %v992_v39  ;;  %v995_v21 = vrot.slane %v992_v39, 6  ;;  %v3451_v39 = vld [vmem:[#allocation31_spill] sm:$0xff] }
 0x32b   :  { %1013 = vmatmul.f32.vlgmr.msra.gmra.mxu0 %v995_v21  ;;  %1033 = vmatmul.f32.vlgmr.msra.gmra.mxu1 %v995_v21 }
 0x32c   :  { %1053 = vmatmul.f32.vlgmr.msra.gmra.mxu2 %v995_v21  ;;  %1073 = vmatmul.f32.vlgmr.msra.gmra.mxu3 %v995_v21  ;;  %v3452_v21 = vld [vmem:[#allocation48_spill] sm:$0xff] }
 0x32d   :  { %1314 = vmatpush.msra.mxu0 %v2793_v20  ;;  %1334 = vmatpush.msra.mxu1 %v2796_v33 }
 0x32e   :  { %1354 = vmatpush.msra.mxu2 %v2931_v48  ;;  %1374 = vmatpush.msra.mxu3 %v2934_v51 }
 0x32f   :  { %1315 = vmatpush.msra.mxu0 %v2801_v22  ;;  %1335 = vmatpush.msra.mxu1 %v2804_v13 }
 0x330   :  { %1355 = vmatpush.msra.mxu2 %v2939_v52  ;;  %1375 = vmatpush.msra.mxu3 %v2942_v50 }
 0x331   :  { %1316 = vmatpush.msra.mxu0 %v2809_v53  ;;  %1336 = vmatpush.msra.mxu1 %v2812_v61 }
 0x332   :  { %1356 = vmatpush.msra.mxu2 %v2947_v57  ;;  %1376 = vmatpush.msra.mxu3 %v2950_v37 }
 0x333   :  { %1317 = vmatpush.msra.mxu0 %v2817_v56  ;;  %1337 = vmatpush.msra.mxu1 %v2820_v59 }
 0x334   :  { %1357 = vmatpush.msra.mxu2 %v2955_v19  ;;  %1377 = vmatpush.msra.mxu3 %v2958_v35 }
 0x335   :  { %1318 = vmatpush.msra.mxu0 %v2825_v60  ;;  %1338 = vmatpush.msra.mxu1 %v2828_v63 }
 0x336   :  { %1358 = vmatpush.msra.mxu2 %v2963_v2  ;;  %1378 = vmatpush.msra.mxu3 %v2966_v43 }
 0x337   :  { %1319 = vmatpush.msra.mxu0 %v2833_v0  ;;  %1339 = vmatpush.msra.mxu1 %v2836_v3 }
 0x338   :  { %1359 = vmatpush.msra.mxu2 %v2971_v58  ;;  %1379 = vmatpush.msra.mxu3 %v2974_v18 }
 0x339   :  { %1320 = vmatpush.msra.mxu0 %v2841_v4  ;;  %1340 = vmatpush.msra.mxu1 %v2844_v7 }
 0x33a   :  { %1360 = vmatpush.msra.mxu2 %v2979_v62  ;;  %1380 = vmatpush.msra.mxu3 %v2982_v27 }
 0x33b   :  { %1321 = vmatpush.msra.mxu0 %v2849_v8  ;;  %1341 = vmatpush.msra.mxu1 %v2852_v9 }
 0x33c   :  { %1361 = vmatpush.msra.mxu2 %v2987_v36  ;;  %1381 = vmatpush.msra.mxu3 %v2990_v46 }
 0x33d   :  { %1322 = vmatpush.msra.mxu0 %v2857_v54  ;;  %1342 = vmatpush.msra.mxu1 %v2860_v10 }
 0x33e   :  { %1362 = vmatpush.msra.mxu2 %v2995_v6  ;;  %1382 = vmatpush.msra.mxu3 %v2998_v41 }
 0x33f   :  { %1323 = vmatpush.msra.mxu0 %v2865_v15  ;;  %1343 = vmatpush.msra.mxu1 %v2868_v17 }
 0x340   :  { %1363 = vmatpush.msra.mxu2 %v3428_v25  ;;  %1383 = vmatpush.msra.mxu3 %v3429_v45 }
 0x341   :  { %1324 = vmatpush.msra.mxu0 %v3430_v49  ;;  %1344 = vmatpush.msra.mxu1 %v3431_v1 }
 0x342   :  { %1364 = vmatpush.msra.mxu2 %v3432_v47  ;;  %1384 = vmatpush.msra.mxu3 %v3433_v24 }
 0x343   :  { %1325 = vmatpush.msra.mxu0 %v3434_v16  ;;  %1345 = vmatpush.msra.mxu1 %v3435_v28 }
 0x344   :  { %1365 = vmatpush.msra.mxu2 %v3436_v5  ;;  %1385 = vmatpush.msra.mxu3 %v3437_v31 }
 0x345   :  { %1326 = vmatpush.msra.mxu0 %v3438_v32  ;;  %1346 = vmatpush.msra.mxu1 %v3439_v34 }
 0x346   :  { %1366 = vmatpush.msra.mxu2 %v3440_v42  ;;  %1386 = vmatpush.msra.mxu3 %v3441_v14  ;;  %v3454_v14 = vld [vmem:[#allocation47_spill] sm:$0xff]  ;;  %v3455_v42 = vld [vmem:[#allocation46_spill] sm:$0xff] }
 0x347   :  { %1327 = vmatpush.msra.mxu0 %v3442_v40  ;;  %1347 = vmatpush.msra.mxu1 %v3443_v26  ;;  %v3453_v40 = vld [vmem:[#allocation52_spill] sm:$0xff] }
 0x348   :  { %1367 = vmatpush.msra.mxu2 %v3444_v55  ;;  %1387 = vmatpush.msra.mxu3 %v3445_v44 }
 0x349   :  { %1328 = vmatpush.msra.mxu0 %v3446_v30  ;;  %1348 = vmatpush.msra.mxu1 %v3447_v12 }
 0x34a   :  { %1368 = vmatpush.msra.mxu2 %v3448_v29  ;;  %1388 = vmatpush.msra.mxu3 %v3449_v23  ;;  %v3456_v23 = vld [vmem:[#allocation51_spill] sm:$0xff] }
 0x34b   :  { %1329 = vmatpush.msra.mxu0 %v3450_v38  ;;  %1349 = vmatpush.msra.mxu1 %v3451_v39 }
 0x34c   :  { %1369 = vmatpush.msra.mxu2 %v3452_v21  ;;  %1389 = vmatpush.msra.mxu3 %v3453_v40 }
 0x3a8   :  { %v1014_v26 = vpop.f32.mrf.mxu0  ;;  %v1034_v55 = vpop.f32.mrf.mxu1 }
 0x3a9   :  { %v1077_v44 = vadd.f32 %v1014_v26, %v3454_v14  ;;  %v1078_v30 = vadd.f32 %v1034_v55, %v3455_v42  ;;  %v3457_v55 = vld [vmem:[#allocation50_spill] sm:$0xff] }
 0x3ab   :  { %v1853_v34 = vmul.f32 -1.442695, %v1077_v44  ;;  %v1854_v12 = vmul.f32 -1.442695, %v1078_v30 }
 0x3ad   :  { %1942 = vpow2.f32 %v1853_v34 }
 0x3ae   :  { %1944 = vpow2.f32 %v1854_v12 }
 0x3af   :  { %v1074_v29 = vpop.f32.mrf.mxu3  ;;  %v1054_v40 = vpop.f32.mrf.mxu2 }
 0x3b0   :  { %v1080_v32 = vadd.f32 %v1074_v29, %v3456_v23  ;;  %v1079_v44 = vadd.f32 %v1054_v40, %v3457_v55 }
 0x3b2   :  { %v1855_v38 = vmul.f32 -1.442695, %v1080_v32 }
 0x3b3   :  { %v1943_v31 = vpop.eup %1942 }
 0x3b4   :  { %v1945_v39 = vpop.eup %1944  ;;  %v1084_v5 = vadd.f32 1.0, %v1943_v31  ;;  %1946 = vpow2.f32 %v1855_v38 }
 0x3b5   :  { %v1103_v21 = vadd.f32 1.0, %v1945_v39 }
 0x3b6   :  { %1948 = vrcp.f32 %v1084_v5  ;;  %v1096_v32 = vand.u32 2147483648, %v1084_v5  ;;  %v1094_v38 = vand.u32 2147483647, %v1084_v5  ;;  %vm1090_vm2 = vweird.f32 %v1084_v5 }
 0x3b7   :  { %1950 = vrcp.f32 %v1103_v21  ;;  %v1115_v23 = vand.u32 2147483648, %v1103_v21  ;;  %v1113_v16 = vand.u32 2147483647, %v1103_v21  ;;  %vm1109_vm3 = vweird.f32 %v1103_v21 }
 0x3b8   :  { %v1097_v40 = vor.u32 1.1754944e-38, %v1096_v32  ;;  %vm1095_vm6 = vcmp.eq.f32.partialorder %v1094_v38, 8.507059e+37 }
 0x3b9   :  { %vm1114_vm7 = vcmp.eq.f32.partialorder %v1113_v16, 8.507059e+37 }
 0x3ba   :  { %v1947_v28 = vpop.eup %1946 }
 0x3bb   :  { %v1123_v26 = vadd.f32 1.0, %v1947_v28 }
 0x3bc   :  { %v1949_v14 = vpop.eup %1948 }
 0x3bd   :  { %v1951_v30 = vpop.eup %1950  ;;  %v1086_v34 = vmul.f32 %v1949_v14, %v1084_v5  ;;  %1952 = vrcp.f32 %v1123_v26  ;;  %vm1091_vm0 = vweird.f32 %v1949_v14  ;;  %vm1129_vm9 = vweird.f32 %v1123_v26 }
 0x3be   :  { %v1105_v12 = vmul.f32 %v1951_v30, %v1103_v21  ;;  %1954 = vtanh.f32 %v1079_v44  ;;  %vm1110_vm1 = vweird.f32 %v1951_v30  ;;  %vm1092_vm4 = vmor %vm1090_vm2, %vm1091_vm0  ;;  %v1140_v44 = vrot.slane %v3062_v11, 6 }
 0x3bf   :  { %v1087_v42 = vsub.f32 1.0, %v1086_v34  ;;  %vm1111_vm5 = vmor %vm1109_vm3, %vm1110_vm1  ;;  %v1116_v34 = vor.u32 1.1754944e-38, %v1115_v23  ;;  %v1135_v23 = vand.u32 2147483648, %v1123_v26 }
 0x3c0   :  { %v1106_v29 = vsub.f32 1.0, %v1105_v12 }
 0x3c1   :  { %v1088_v31 = vmul.f32 %v1949_v14, %v1087_v42  ;;  %v1136_v38 = vor.u32 1.1754944e-38, %v1135_v23 }
 0x3c2   :  { %v1107_v39 = vmul.f32 %v1951_v30, %v1106_v29 }
 0x3c3   :  { %v1953_v24 = vpop.eup %1952  ;;  %v1089_v28 = vadd.f32 %v1949_v14, %v1088_v31 }
 0x3c4   :  { %v1108_v55 = vadd.f32 %v1951_v30, %v1107_v39  ;;  %v1125_v47 = vmul.f32 %v1953_v24, %v1123_v26  ;;  %v1955_v42 = vpop.eup %1954  ;;  %vm1130_vm8 = vweird.f32 %v1953_v24 }
 0x3c5   :  { %v1093_v12 = vsel %vm1092_vm4, %v1949_v14, %v1089_v28  ;;  %v1133_v14 = vand.u32 2147483647, %v1123_v26  ;;  %vm1131_vm10 = vmor %vm1129_vm9, %vm1130_vm8 }
 0x3c6   :  { %v1098_v1 = vsel %vm1095_vm6, %v1097_v40, %v1093_v12  ;;  %v1112_v49 = vsel %vm1111_vm5, %v1951_v30, %v1108_v55  ;;  %v1126_v29 = vsub.f32 1.0, %v1125_v47 }
 0x3c7   :  { %v1117_v45 = vsel %vm1114_vm7, %v1116_v34, %v1112_v49  ;;  %v1143_v25 = vmul.f32 %v1955_v42, %v1098_v1  ;;  %vm1134_vm11 = vcmp.eq.f32.partialorder %v1133_v14, 8.507059e+37 }
 0x3c8   :  { %v1142_v31 = vmul.f32 %v1140_v44, %v1117_v45  ;;  %v1127_v5 = vmul.f32 %v1953_v24, %v1126_v29  ;;  %v3487_v44 = vld [vmem:[#allocation50_spill] sm:$0xff] }
 0x3ca   :  { %v3134_v21 = vadd.f32 %v1143_v25, %v1142_v31  ;;  %v1128_v32 = vadd.f32 %v1953_v24, %v1127_v5  ;;  %v3486_v25 = vld [vmem:[#allocation51_spill] sm:$0xff] }
 0x3cc   :  { %1956 = vtanh.f32 %v3134_v21  ;;  %v1132_v11 = vsel %vm1131_vm10, %v1953_v24, %v1128_v32 }
 0x3cd   :  { %v1137_v16 = vsel %vm1134_vm11, %v1136_v38, %v1132_v11 }
 0x3d2   :  { %v1957_v55 = vpop.eup %1956 }
 0x3d3   :  { %v1146_v47 = vmul.f32 %v1957_v55, %v1137_v16 }
 0x3d5   :  { %1147 = vst [vmem:[#allocation2 + $0x8] sm:$0x3] %v1146_v47  ;;  %1164 = vmatmul.f32.vlgmr.msrb.gmra.mxu0 %v1146_v47  ;;  %1184 = vmatmul.f32.vlgmr.msrb.gmra.mxu1 %v1146_v47 }
 0x3d6   :  { %1204 = vmatmul.f32.vlgmr.msrb.gmra.mxu2 %v1146_v47  ;;  %1224 = vmatmul.f32.vlgmr.msrb.gmra.mxu3 %v1146_v47 }
 0x3d7   :  { %1480 = vmatpush.msrb.mxu0 %v2793_v20  ;;  %1500 = vmatpush.msrb.mxu1 %v2796_v33  ;;  %v3458_v20 = vld [vmem:[#allocation26_spill] sm:$0xff]  ;;  %v3459_v33 = vld [vmem:[#allocation40_spill] sm:$0xff] }
 0x3d8   :  { %1520 = vmatpush.msrb.mxu2 %v2931_v48  ;;  %1540 = vmatpush.msrb.mxu3 %v2934_v51  ;;  %v3478_v48 = vld [vmem:[#allocation45_spill] sm:$0xff] }
 0x3d9   :  { %1481 = vmatpush.msrb.mxu0 %v2801_v22  ;;  %1501 = vmatpush.msrb.mxu1 %v2804_v13  ;;  %v3460_v22 = vld [vmem:[#allocation23_spill] sm:$0xff]  ;;  %v3461_v13 = vld [vmem:[#allocation34_spill] sm:$0xff]  ;;  %v3479_v51 = vld [vmem:[#allocation49_spill] sm:$0xff] }
 0x3da   :  { %1521 = vmatpush.msrb.mxu2 %v2939_v52  ;;  %1541 = vmatpush.msrb.mxu3 %v2942_v50  ;;  %v3480_v52 = vld [vmem:[#allocation39_spill] sm:$0xff] }
 0x3db   :  { %1482 = vmatpush.msrb.mxu0 %v2809_v53  ;;  %1502 = vmatpush.msrb.mxu1 %v2812_v61  ;;  %v3462_v53 = vld [vmem:[#allocation41_spill] sm:$0xff]  ;;  %v3463_v61 = vld [vmem:[#allocation32_spill] sm:$0xff]  ;;  %v3481_v50 = vld [vmem:[#allocation31_spill] sm:$0xff] }
 0x3dc   :  { %1522 = vmatpush.msrb.mxu2 %v2947_v57  ;;  %1542 = vmatpush.msrb.mxu3 %v2950_v37  ;;  %v3482_v57 = vld [vmem:[#allocation48_spill] sm:$0xff] }
 0x3dd   :  { %1483 = vmatpush.msrb.mxu0 %v2817_v56  ;;  %1503 = vmatpush.msrb.mxu1 %v2820_v59  ;;  %v3464_v56 = vld [vmem:[#allocation35_spill] sm:$0xff]  ;;  %v3465_v59 = vld [vmem:[#allocation29_spill] sm:$0xff]  ;;  %v3483_v37 = vld [vmem:[#allocation52_spill] sm:$0xff] }
 0x3de   :  { %1523 = vmatpush.msrb.mxu2 %v2955_v19  ;;  %1543 = vmatpush.msrb.mxu3 %v2958_v35 }
 0x3df   :  { %1484 = vmatpush.msrb.mxu0 %v2825_v60  ;;  %1504 = vmatpush.msrb.mxu1 %v2828_v63  ;;  %v3466_v60 = vld [vmem:[#allocation27_spill] sm:$0xff]  ;;  %v3467_v63 = vld [vmem:[#allocation42_spill] sm:$0xff] }
 0x3e0   :  { %1524 = vmatpush.msrb.mxu2 %v2963_v2  ;;  %1544 = vmatpush.msrb.mxu3 %v2966_v43 }
 0x3e1   :  { %1485 = vmatpush.msrb.mxu0 %v2833_v0  ;;  %1505 = vmatpush.msrb.mxu1 %v2836_v3  ;;  %v3468_v0 = vld [vmem:[#allocation24_spill] sm:$0xff] }
 0x3e2   :  { %1525 = vmatpush.msrb.mxu2 %v2971_v58  ;;  %1545 = vmatpush.msrb.mxu3 %v2974_v18  ;;  %v3469_v3 = vld [vmem:[#allocation36_spill] sm:$0xff]  ;;  %v3484_v58 = vld [vmem:[#allocation47_spill] sm:$0xff] }
 0x3e3   :  { %1486 = vmatpush.msrb.mxu0 %v2841_v4  ;;  %1506 = vmatpush.msrb.mxu1 %v2844_v7  ;;  %v3470_v4 = vld [vmem:[#allocation43_spill] sm:$0xff]  ;;  %v3471_v7 = vld [vmem:[#allocation33_spill] sm:$0xff] }
 0x3e4   :  { %1526 = vmatpush.msrb.mxu2 %v2979_v62  ;;  %1546 = vmatpush.msrb.mxu3 %v2982_v27  ;;  %v3485_v62 = vld [vmem:[#allocation46_spill] sm:$0xff] }
 0x3e5   :  { %1487 = vmatpush.msrb.mxu0 %v2849_v8  ;;  %1507 = vmatpush.msrb.mxu1 %v2852_v9  ;;  %v3472_v8 = vld [vmem:[#allocation37_spill] sm:$0xff]  ;;  %v3473_v9 = vld [vmem:[#allocation30_spill] sm:$0xff] }
 0x3e6   :  { %1527 = vmatpush.msrb.mxu2 %v2987_v36  ;;  %1547 = vmatpush.msrb.mxu3 %v2990_v46 }
 0x3e7   :  { %1488 = vmatpush.msrb.mxu0 %v2857_v54  ;;  %1508 = vmatpush.msrb.mxu1 %v2860_v10  ;;  %v3474_v54 = vld [vmem:[#allocation28_spill] sm:$0xff] }
 0x3e8   :  { %1528 = vmatpush.msrb.mxu2 %v2995_v6  ;;  %1548 = vmatpush.msrb.mxu3 %v2998_v41  ;;  %v3475_v10 = vld [vmem:[#allocation44_spill] sm:$0xff] }
 0x3e9   :  { %1489 = vmatpush.msrb.mxu0 %v2865_v15  ;;  %1509 = vmatpush.msrb.mxu1 %v2868_v17  ;;  %v3476_v15 = vld [vmem:[#allocation25_spill] sm:$0xff]  ;;  %v3477_v17 = vld [vmem:[#allocation38_spill] sm:$0xff] }
 0x3ea   :  { %1529 = vmatpush.msrb.mxu2 %v3458_v20  ;;  %1549 = vmatpush.msrb.mxu3 %v3459_v33 }
 0x3eb   :  { %1490 = vmatpush.msrb.mxu0 %v3460_v22  ;;  %1510 = vmatpush.msrb.mxu1 %v3461_v13 }
 0x3ec   :  { %1530 = vmatpush.msrb.mxu2 %v3462_v53  ;;  %1550 = vmatpush.msrb.mxu3 %v3463_v61  ;;  %v1303_v61 = vrot.slane %v3134_v21, 6 }
 0x3ed   :  { %1491 = vmatpush.msrb.mxu0 %v3464_v56  ;;  %1511 = vmatpush.msrb.mxu1 %v3465_v59 }
 0x3ee   :  { %1531 = vmatpush.msrb.mxu2 %v3466_v60  ;;  %1551 = vmatpush.msrb.mxu3 %v3467_v63 }
 0x3ef   :  { %1492 = vmatpush.msrb.mxu0 %v3468_v0  ;;  %1512 = vmatpush.msrb.mxu1 %v3469_v3 }
 0x3f0   :  { %1532 = vmatpush.msrb.mxu2 %v3470_v4  ;;  %1552 = vmatpush.msrb.mxu3 %v3471_v7 }
 0x3f1   :  { %1493 = vmatpush.msrb.mxu0 %v3472_v8  ;;  %1513 = vmatpush.msrb.mxu1 %v3473_v9 }
 0x3f2   :  { %1533 = vmatpush.msrb.mxu2 %v3474_v54  ;;  %1553 = vmatpush.msrb.mxu3 %v3475_v10 }
 0x3f3   :  { %1494 = vmatpush.msrb.mxu0 %v3476_v15  ;;  %1514 = vmatpush.msrb.mxu1 %v3477_v17 }
 0x3f4   :  { %1534 = vmatpush.msrb.mxu2 %v3478_v48  ;;  %1554 = vmatpush.msrb.mxu3 %v3479_v51 }
 0x3f5   :  { %1495 = vmatpush.msrb.mxu0 %v3480_v52  ;;  %1515 = vmatpush.msrb.mxu1 %v3481_v50 }
 0x3f6   :  { %1535 = vmatpush.msrb.mxu2 %v3482_v57  ;;  %1555 = vmatpush.msrb.mxu3 %v3483_v37  ;;  %v1660_v37 = vld [vmem:[#allocation11 + $0x78] sm:$0xff] }
 0x452   :  { %v1165_v19 = vpop.f32.mrf.mxu0  ;;  %v1185_v35 = vpop.f32.mrf.mxu1 }
 0x453   :  { %v1232_v2 = vrot.slane %v1165_v19, 6  ;;  %v1233_v43 = vrot.slane %v1185_v35, 6  ;;  %v1699_v19 = vld [vmem:[#allocation12 + $0x78] sm:$0xff]  ;;  %v1659_v35 = vld [vmem:[#allocation11 + $0x70] sm:$0xff] }
 0x455   :  { %v1240_v18 = vadd.f32 %v1232_v2, %v3484_v58  ;;  %v1241_v27 = vadd.f32 %v1233_v43, %v3485_v62  ;;  %v1698_v2 = vld [vmem:[#allocation12 + $0x70] sm:$0xff]  ;;  %v1658_v43 = vld [vmem:[#allocation11 + $0x68] sm:$0xff] }
 0x457   :  { %v1856_v36 = vmul.f32 -1.442695, %v1240_v18  ;;  %v1857_v46 = vmul.f32 -1.442695, %v1241_v27  ;;  %v1697_v18 = vld [vmem:[#allocation12 + $0x68] sm:$0xff]  ;;  %v1657_v27 = vld [vmem:[#allocation11 + $0x60] sm:$0xff] }
 0x459   :  { %1958 = vpow2.f32 %v1856_v36  ;;  %v1225_v6 = vpop.f32.mrf.mxu3  ;;  %v1205_v39 = vpop.f32.mrf.mxu2  ;;  %v1696_v36 = vld [vmem:[#allocation12 + $0x60] sm:$0xff] }
 0x45a   :  { %1960 = vpow2.f32 %v1857_v46  ;;  %v1235_v41 = vrot.slane %v1225_v6, 6  ;;  %v1234_v28 = vrot.slane %v1205_v39, 6  ;;  %v1694_v39 = vld [vmem:[#allocation12 + $0x50] sm:$0xff] }
 0x45c   :  { %v1243_v45 = vadd.f32 %v1235_v41, %v3486_v25  ;;  %v1242_v42 = vadd.f32 %v1234_v28, %v3487_v44 }
 0x45e   :  { %v1858_v49 = vmul.f32 -1.442695, %v1243_v45 }
 0x45f   :  { %v1959_v1 = vpop.eup %1958 }
 0x460   :  { %v1961_v24 = vpop.eup %1960  ;;  %v1247_v26 = vadd.f32 1.0, %v1959_v1  ;;  %1962 = vpow2.f32 %v1858_v49  ;;  %v1656_v49 = vld [vmem:[#allocation11 + $0x58] sm:$0xff] }
 0x461   :  { %v1266_v30 = vadd.f32 1.0, %v1961_v24  ;;  %v1695_v1 = vld [vmem:[#allocation12 + $0x58] sm:$0xff] }
 0x462   :  { %1964 = vrcp.f32 %v1247_v26  ;;  %v1259_v14 = vand.u32 2147483648, %v1247_v26  ;;  %v1257_v55 = vand.u32 2147483647, %v1247_v26  ;;  %vm1253_vm14 = vweird.f32 %v1247_v26 }
 0x463   :  { %1966 = vrcp.f32 %v1266_v30  ;;  %v1278_v11 = vand.u32 2147483648, %v1266_v30  ;;  %v1276_v47 = vand.u32 2147483647, %v1266_v30  ;;  %vm1272_vm15 = vweird.f32 %v1266_v30 }
 0x464   :  { %v1260_v22 = vor.u32 1.1754944e-38, %v1259_v14  ;;  %vm1258_vm2 = vcmp.eq.f32.partialorder %v1257_v55, 8.507059e+37  ;;  %v1651_v14 = vld [vmem:[#allocation11 + $0x30] sm:$0xff]  ;;  %v1650_v55 = vld [vmem:[#allocation11 + $0x28] sm:$0xff] }
 0x465   :  { %v1279_v56 = vor.u32 1.1754944e-38, %v1278_v11  ;;  %vm1277_vm3 = vcmp.eq.f32.partialorder %v1276_v47, 8.507059e+37  ;;  %v1690_v11 = vld [vmem:[#allocation12 + $0x30] sm:$0xff] }
 0x466   :  { %v1963_v40 = vpop.eup %1962 }
 0x467   :  { %v1286_v34 = vadd.f32 1.0, %v1963_v40 }
 0x468   :  { %v1965_v12 = vpop.eup %1964 }
 0x469   :  { %v1967_v29 = vpop.eup %1966  ;;  %v1249_v31 = vmul.f32 %v1965_v12, %v1247_v26  ;;  %1968 = vrcp.f32 %v1286_v34  ;;  %vm1254_vm12 = vweird.f32 %v1965_v12  ;;  %v1298_v21 = vand.u32 2147483648, %v1286_v34 }
 0x46a   :  { %v1268_v5 = vmul.f32 %v1967_v29, %v1266_v30  ;;  %1970 = vtanh.f32 %v1242_v42  ;;  %vm1273_vm13 = vweird.f32 %v1967_v29  ;;  %vm1255_vm0 = vmor %vm1253_vm14, %vm1254_vm12  ;;  %vm1292_vm5 = vweird.f32 %v1286_v34  ;;  %v1655_v30 = vld [vmem:[#allocation11 + $0x50] sm:$0xff]  ;;  %v1653_v42 = vld [vmem:[#allocation11 + $0x40] sm:$0xff] }
 0x46b   :  { %v1250_v32 = vsub.f32 1.0, %v1249_v31  ;;  %vm1274_vm1 = vmor %vm1272_vm15, %vm1273_vm13  ;;  %v1296_v15 = vand.u32 2147483647, %v1286_v34  ;;  %v1299_v48 = vor.u32 1.1754944e-38, %v1298_v21 }
 0x46c   :  { %v1269_v23 = vsub.f32 1.0, %v1268_v5  ;;  %v1652_v5 = vld [vmem:[#allocation11 + $0x38] sm:$0xff] }
 0x46d   :  { %v1251_v38 = vmul.f32 %v1965_v12, %v1250_v32  ;;  %vm1297_vm7 = vcmp.eq.f32.partialorder %v1296_v15, 8.507059e+37  ;;  %v1691_v32 = vld [vmem:[#allocation12 + $0x38] sm:$0xff]  ;;  %v1645_v15 = vld [vmem:[#allocation11] sm:$0xff] }
 0x46e   :  { %v1270_v16 = vmul.f32 %v1967_v29, %v1269_v23 }
 0x46f   :  { %v1969_v20 = vpop.eup %1968  ;;  %v1252_v33 = vadd.f32 %v1965_v12, %v1251_v38 }
 0x470   :  { %v1271_v13 = vadd.f32 %v1967_v29, %v1270_v16  ;;  %v1288_v53 = vmul.f32 %v1969_v20, %v1286_v34  ;;  %v1971_v60 = vpop.eup %1970  ;;  %vm1293_vm4 = vweird.f32 %v1969_v20  ;;  %v1654_v34 = vld [vmem:[#allocation11 + $0x48] sm:$0xff] }
 0x471   :  { %v1256_v59 = vsel %vm1255_vm0, %v1965_v12, %v1252_v33  ;;  %vm1294_vm6 = vmor %vm1292_vm5, %vm1293_vm4  ;;  %v1693_v12 = vld [vmem:[#allocation12 + $0x48] sm:$0xff]  ;;  %v1649_v33 = vld [vmem:[#allocation11 + $0x20] sm:$0xff] }
 0x472   :  { %v1261_v63 = vsel %vm1258_vm2, %v1260_v22, %v1256_v59  ;;  %v1275_v0 = vsel %vm1274_vm1, %v1967_v29, %v1271_v13  ;;  %v1289_v3 = vsub.f32 1.0, %v1288_v53  ;;  %v1692_v29 = vld [vmem:[#allocation12 + $0x40] sm:$0xff]  ;;  %v1689_v16 = vld [vmem:[#allocation12 + $0x28] sm:$0xff] }
 0x473   :  { %v1280_v4 = vsel %vm1277_vm3, %v1279_v56, %v1275_v0  ;;  %v1306_v7 = vmul.f32 %v1971_v60, %v1261_v63  ;;  %v1688_v22 = vld [vmem:[#allocation12 + $0x20] sm:$0xff]  ;;  %v1648_v60 = vld [vmem:[#allocation11 + $0x18] sm:$0xff]  ;;  %v1647_v0 = vld [vmem:[#allocation11 + $0x10] sm:$0xff] }
 0x474   :  { %v1305_v8 = vmul.f32 %v1303_v61, %v1280_v4  ;;  %v1290_v9 = vmul.f32 %v1969_v20, %v1289_v3  ;;  %v1687_v63 = vld [vmem:[#allocation12 + $0x18] sm:$0xff]  ;;  %v1686_v3 = vld [vmem:[#allocation12 + $0x10] sm:$0xff] }
 0x476   :  { %v3206_v54 = vadd.f32 %v1306_v7, %v1305_v8  ;;  %v1291_v10 = vadd.f32 %v1969_v20, %v1290_v9  ;;  %v1646_v7 = vld [vmem:[#allocation11 + $0x8] sm:$0xff] }
 0x477   :  { %v1685_v8 = vld [vmem:[#allocation12 + $0x8] sm:$0xff] }
 0x478   :  { %1972 = vtanh.f32 %v3206_v54  ;;  %v1295_v17 = vsel %vm1294_vm6, %v1969_v20, %v1291_v10 }
 0x479   :  { %v1300_v52 = vsel %vm1297_vm7, %v1299_v48, %v1295_v17  ;;  %v1684_v17 = vld [vmem:[#allocation12] sm:$0xff] }
 0x47e   :  { %v1973_v51 = vpop.eup %1972 }
 0x47f   :  { %v1309_v50 = vmul.f32 %v1973_v51, %v1300_v52 }
 0x481   :  { %1310 = vst [vmem:[#allocation2 + $0x8] sm:$0xc] %v1309_v50  ;;  %v1312_v57 = vrot.slane %v1309_v50, 2 }
 0x483   :  { %1330 = vmatmul.f32.vlgmr.msra.gmra.mxu0 %v1312_v57  ;;  %1350 = vmatmul.f32.vlgmr.msra.gmra.mxu1 %v1312_v57 }
 0x484   :  { %1370 = vmatmul.f32.vlgmr.msra.gmra.mxu2 %v1312_v57  ;;  %1390 = vmatmul.f32.vlgmr.msra.gmra.mxu3 %v1312_v57 }
 0x485   :  { %1661 = vmatpush.msra.mxu0 %v1660_v37  ;;  %1700 = vmatpush.msra.mxu1 %v1699_v19 }
 0x487   :  { %1662 = vmatpush.msra.mxu0 %v1659_v35  ;;  %1701 = vmatpush.msra.mxu1 %v1698_v2 }
 0x489   :  { %1663 = vmatpush.msra.mxu0 %v1658_v43  ;;  %1702 = vmatpush.msra.mxu1 %v1697_v18 }
 0x48b   :  { %1664 = vmatpush.msra.mxu0 %v1657_v27  ;;  %1703 = vmatpush.msra.mxu1 %v1696_v36 }
 0x48d   :  { %1665 = vmatpush.msra.mxu0 %v1656_v49  ;;  %1704 = vmatpush.msra.mxu1 %v1695_v1 }
 0x48f   :  { %1666 = vmatpush.msra.mxu0 %v1655_v30  ;;  %1705 = vmatpush.msra.mxu1 %v1694_v39 }
 0x491   :  { %1667 = vmatpush.msra.mxu0 %v1654_v34  ;;  %1706 = vmatpush.msra.mxu1 %v1693_v12 }
 0x493   :  { %1668 = vmatpush.msra.mxu0 %v1653_v42  ;;  %1707 = vmatpush.msra.mxu1 %v1692_v29 }
 0x495   :  { %1669 = vmatpush.msra.mxu0 %v1652_v5  ;;  %1708 = vmatpush.msra.mxu1 %v1691_v32 }
 0x497   :  { %1670 = vmatpush.msra.mxu0 %v1651_v14  ;;  %1709 = vmatpush.msra.mxu1 %v1690_v11 }
 0x499   :  { %1671 = vmatpush.msra.mxu0 %v1650_v55  ;;  %1710 = vmatpush.msra.mxu1 %v1689_v16  ;;  %v1643_v55 = vld [vmem:[#allocation2] sm:$0xff] }
 0x49b   :  { %1672 = vmatpush.msra.mxu0 %v1649_v33  ;;  %1711 = vmatpush.msra.mxu1 %v1688_v22 }
 0x49d   :  { %1673 = vmatpush.msra.mxu0 %v1648_v60  ;;  %1712 = vmatpush.msra.mxu1 %v1687_v63 }
 0x49f   :  { %1674 = vmatpush.msra.mxu0 %v1647_v0  ;;  %1713 = vmatpush.msra.mxu1 %v1686_v3 }
 0x4a1   :  { %1675 = vmatpush.msra.mxu0 %v1646_v7  ;;  %1714 = vmatpush.msra.mxu1 %v1685_v8 }
 0x4a3   :  { %1676 = vmatpush.msra.mxu0 %v1645_v15  ;;  %1715 = vmatpush.msra.mxu1 %v1684_v17 }
 0x500   :  { %v1331_v46 = vpop.f32.mrf.mxu0  ;;  %v1351_v6 = vpop.f32.mrf.mxu1 }
 0x501   :  { %v1398_v41 = vrot.slane %v1331_v46, 4  ;;  %v1399_v45 = vrot.slane %v1351_v6, 4 }
 0x503   :  { %v1406_v24 = vadd.f32 %v1398_v41, %v3484_v58  ;;  %v1407_v26 = vadd.f32 %v1399_v45, %v3485_v62  ;;  %v1469_v45 = vrot.slane %v3206_v54, 6 }
 0x505   :  { %v1859_v28 = vmul.f32 -1.442695, %v1406_v24  ;;  %v1860_v40 = vmul.f32 -1.442695, %v1407_v26 }
 0x507   :  { %1974 = vpow2.f32 %v1859_v28  ;;  %v1391_v31 = vpop.f32.mrf.mxu3  ;;  %v1371_v56 = vpop.f32.mrf.mxu2 }
 0x508   :  { %1976 = vpow2.f32 %v1860_v40  ;;  %v1401_v23 = vrot.slane %v1391_v31, 4  ;;  %v1400_v59 = vrot.slane %v1371_v56, 4 }
 0x50a   :  { %v1409_v38 = vadd.f32 %v1401_v23, %v3486_v25  ;;  %v1408_v21 = vadd.f32 %v1400_v59, %v3487_v44 }
 0x50c   :  { %v1861_v47 = vmul.f32 -1.442695, %v1409_v38 }
 0x50d   :  { %v1975_v20 = vpop.eup %1974 }
 0x50e   :  { %v1977_v13 = vpop.eup %1976  ;;  %v1413_v53 = vadd.f32 1.0, %v1975_v20  ;;  %1978 = vpow2.f32 %v1861_v47 }
 0x50f   :  { %v1432_v61 = vadd.f32 1.0, %v1977_v13 }
 0x510   :  { %1980 = vrcp.f32 %v1413_v53  ;;  %v1425_v37 = vand.u32 2147483648, %v1413_v53  ;;  %v1423_v2 = vand.u32 2147483647, %v1413_v53  ;;  %vm1419_vm10 = vweird.f32 %v1413_v53 }
 0x511   :  { %1982 = vrcp.f32 %v1432_v61  ;;  %v1444_v19 = vand.u32 2147483648, %v1432_v61  ;;  %v1442_v18 = vand.u32 2147483647, %v1432_v61  ;;  %vm1438_vm11 = vweird.f32 %v1432_v61 }
 0x512   :  { %v1426_v46 = vor.u32 1.1754944e-38, %v1425_v37  ;;  %vm1424_vm14 = vcmp.eq.f32.partialorder %v1423_v2, 8.507059e+37 }
 0x513   :  { %v1445_v49 = vor.u32 1.1754944e-38, %v1444_v19  ;;  %vm1443_vm15 = vcmp.eq.f32.partialorder %v1442_v18, 8.507059e+37 }
 0x514   :  { %v1979_v4 = vpop.eup %1978 }
 0x515   :  { %v1452_v9 = vadd.f32 1.0, %v1979_v4 }
 0x516   :  { %v1981_v10 = vpop.eup %1980 }
 0x517   :  { %v1983_v48 = vpop.eup %1982  ;;  %v1415_v51 = vmul.f32 %v1981_v10, %v1413_v53  ;;  %1984 = vrcp.f32 %v1452_v9  ;;  %vm1420_vm8 = vweird.f32 %v1981_v10  ;;  %v1464_v54 = vand.u32 2147483648, %v1452_v9 }
 0x518   :  { %v1434_v52 = vmul.f32 %v1983_v48, %v1432_v61  ;;  %1986 = vtanh.f32 %v1408_v21  ;;  %vm1439_vm9 = vweird.f32 %v1983_v48  ;;  %vm1421_vm12 = vmor %vm1419_vm10, %vm1420_vm8  ;;  %vm1458_vm1 = vweird.f32 %v1452_v9 }
 0x519   :  { %v1416_v50 = vsub.f32 1.0, %v1415_v51  ;;  %vm1440_vm13 = vmor %vm1438_vm11, %vm1439_vm9  ;;  %v1462_v31 = vand.u32 2147483647, %v1452_v9  ;;  %v1465_v32 = vor.u32 1.1754944e-38, %v1464_v54 }
 0x51a   :  { %v1435_v57 = vsub.f32 1.0, %v1434_v52 }
 0x51b   :  { %v1417_v35 = vmul.f32 %v1981_v10, %v1416_v50  ;;  %vm1463_vm3 = vcmp.eq.f32.partialorder %v1462_v31, 8.507059e+37 }
 0x51c   :  { %v1436_v43 = vmul.f32 %v1983_v48, %v1435_v57 }
 0x51d   :  { %v1985_v27 = vpop.eup %1984  ;;  %v1418_v36 = vadd.f32 %v1981_v10, %v1417_v35 }
 0x51e   :  { %v1437_v6 = vadd.f32 %v1983_v48, %v1436_v43  ;;  %v1454_v41 = vmul.f32 %v1985_v27, %v1452_v9  ;;  %v1987_v24 = vpop.eup %1986  ;;  %vm1459_vm0 = vweird.f32 %v1985_v27 }
 0x51f   :  { %v1422_v1 = vsel %vm1421_vm12, %v1981_v10, %v1418_v36  ;;  %vm1460_vm2 = vmor %vm1458_vm1, %vm1459_vm0 }
 0x520   :  { %v1427_v26 = vsel %vm1424_vm14, %v1426_v46, %v1422_v1  ;;  %v1441_v30 = vsel %vm1440_vm13, %v1983_v48, %v1437_v6  ;;  %v1455_v39 = vsub.f32 1.0, %v1454_v41 }
 0x521   :  { %v1446_v28 = vsel %vm1443_vm15, %v1445_v49, %v1441_v30  ;;  %v1472_v40 = vmul.f32 %v1987_v24, %v1427_v26 }
 0x522   :  { %v1471_v34 = vmul.f32 %v1469_v45, %v1446_v28  ;;  %v1456_v12 = vmul.f32 %v1985_v27, %v1455_v39 }
 0x524   :  { %v3214_v42 = vadd.f32 %v1472_v40, %v1471_v34  ;;  %v1457_v29 = vadd.f32 %v1985_v27, %v1456_v12 }
 0x526   :  { %1988 = vtanh.f32 %v3214_v42  ;;  %v1461_v5 = vsel %vm1460_vm2, %v1985_v27, %v1457_v29  ;;  %v1635_v36 = vrot.slane %v3214_v42, 6 }
 0x527   :  { %v1466_v14 = vsel %vm1463_vm3, %v1465_v32, %v1461_v5 }
 0x52c   :  { %v1989_v23 = vpop.eup %1988 }
 0x52d   :  { %v1475_v11 = vmul.f32 %v1989_v23, %v1466_v14 }
 0x52f   :  { %1476 = vst [vmem:[#allocation2 + $0x8] sm:$0x30] %v1475_v11  ;;  %v1478_v38 = vrot.slane %v1475_v11, 4 }
 0x531   :  { %1496 = vmatmul.f32.vlgmr.msrb.gmra.mxu0 %v1478_v38  ;;  %1516 = vmatmul.f32.vlgmr.msrb.gmra.mxu1 %v1478_v38 }
 0x532   :  { %1536 = vmatmul.f32.vlgmr.msrb.gmra.mxu2 %v1478_v38  ;;  %1556 = vmatmul.f32.vlgmr.msrb.gmra.mxu3 %v1478_v38 }
 0x539   :  { %1677 = vmatmul.f32.vlgmr.msra.gmra.mxu0 %v1643_v55  ;;  %1716 = vmatmul.f32.vlgmr.msra.gmra.mxu1 %v1643_v55 }
 0x5ae   :  { %v1497_v16 = vpop.f32.mrf.mxu0  ;;  %v1517_v47 = vpop.f32.mrf.mxu1 }
 0x5af   :  { %v1564_v20 = vrot.slane %v1497_v16, 2  ;;  %v1565_v33 = vrot.slane %v1517_v47, 2 }
 0x5b1   :  { %v1572_v22 = vadd.f32 %v1564_v20, %v3484_v58  ;;  %v1573_v13 = vadd.f32 %v1565_v33, %v3485_v62 }
 0x5b3   :  { %v1862_v53 = vmul.f32 -1.442695, %v1572_v22  ;;  %v1863_v61 = vmul.f32 -1.442695, %v1573_v13 }
 0x5b5   :  { %1990 = vpow2.f32 %v1862_v53  ;;  %v1557_v56 = vpop.f32.mrf.mxu3  ;;  %v1537_v8 = vpop.f32.mrf.mxu2 }
 0x5b6   :  { %1992 = vpow2.f32 %v1863_v61  ;;  %v1567_v59 = vrot.slane %v1557_v56, 2  ;;  %v1566_v58 = vrot.slane %v1537_v8, 2  ;;  %v1678_v23 = vpop.f32.mrf.mxu0  ;;  %v1717_v14 = vpop.f32.mrf.mxu1 }
 0x5b8   :  { %v1575_v60 = vadd.f32 %v1567_v59, %v3486_v25  ;;  %v1574_v21 = vadd.f32 %v1566_v58, %v3487_v44 }
 0x5ba   :  { %v1864_v63 = vmul.f32 -1.442695, %v1575_v60 }
 0x5bb   :  { %v1991_v0 = vpop.eup %1990 }
 0x5bc   :  { %v1993_v3 = vpop.eup %1992  ;;  %v1579_v4 = vadd.f32 1.0, %v1991_v0  ;;  %1994 = vpow2.f32 %v1864_v63 }
 0x5bd   :  { %v1598_v7 = vadd.f32 1.0, %v1993_v3 }
 0x5be   :  { %1996 = vrcp.f32 %v1579_v4  ;;  %v1591_v52 = vand.u32 2147483648, %v1579_v4  ;;  %v1589_v37 = vand.u32 2147483647, %v1579_v4  ;;  %vm1585_vm6 = vweird.f32 %v1579_v4 }
 0x5bf   :  { %1998 = vrcp.f32 %v1598_v7  ;;  %v1610_v50 = vand.u32 2147483648, %v1598_v7  ;;  %v1608_v35 = vand.u32 2147483647, %v1598_v7  ;;  %vm1604_vm7 = vweird.f32 %v1598_v7 }
 0x5c0   :  { %v1592_v44 = vor.u32 1.1754944e-38, %v1591_v52  ;;  %vm1590_vm9 = vcmp.eq.f32.partialorder %v1589_v37, 8.507059e+37 }
 0x5c1   :  { %v1611_v46 = vor.u32 1.1754944e-38, %v1610_v50  ;;  %vm1609_vm11 = vcmp.eq.f32.partialorder %v1608_v35, 8.507059e+37 }
 0x5c2   :  { %v1995_v9 = vpop.eup %1994 }
 0x5c3   :  { %v1618_v62 = vadd.f32 1.0, %v1995_v9 }
 0x5c4   :  { %v1997_v10 = vpop.eup %1996 }
 0x5c5   :  { %v1999_v15 = vpop.eup %1998  ;;  %v1581_v17 = vmul.f32 %v1997_v10, %v1579_v4  ;;  %2000 = vrcp.f32 %v1618_v62  ;;  %vm1586_vm4 = vweird.f32 %v1997_v10  ;;  %v1630_v34 = vand.u32 2147483648, %v1618_v62 }
 0x5c6   :  { %v1600_v48 = vmul.f32 %v1999_v15, %v1598_v7  ;;  %2002 = vtanh.f32 %v1574_v21  ;;  %vm1605_vm5 = vweird.f32 %v1999_v15  ;;  %vm1587_vm8 = vmor %vm1585_vm6, %vm1586_vm4  ;;  %vm1624_vm13 = vweird.f32 %v1618_v62 }
 0x5c7   :  { %v1582_v25 = vsub.f32 1.0, %v1581_v17  ;;  %vm1606_vm10 = vmor %vm1604_vm7, %vm1605_vm5  ;;  %v1628_v12 = vand.u32 2147483647, %v1618_v62  ;;  %v1631_v29 = vor.u32 1.1754944e-38, %v1630_v34 }
 0x5c8   :  { %v1601_v51 = vsub.f32 1.0, %v1600_v48 }
 0x5c9   :  { %v1583_v57 = vmul.f32 %v1997_v10, %v1582_v25  ;;  %vm1629_vm15 = vcmp.eq.f32.partialorder %v1628_v12, 8.507059e+37 }
 0x5ca   :  { %v1602_v19 = vmul.f32 %v1999_v15, %v1601_v51 }
 0x5cb   :  { %v2001_v2 = vpop.eup %2000  ;;  %v1584_v43 = vadd.f32 %v1997_v10, %v1583_v57 }
 0x5cc   :  { %v1603_v18 = vadd.f32 %v1999_v15, %v1602_v19  ;;  %v1620_v27 = vmul.f32 %v2001_v2, %v1618_v62  ;;  %v2003_v41 = vpop.eup %2002  ;;  %vm1625_vm12 = vweird.f32 %v2001_v2 }
 0x5cd   :  { %v1588_v6 = vsel %vm1587_vm8, %v1997_v10, %v1584_v43  ;;  %vm1626_vm14 = vmor %vm1624_vm13, %vm1625_vm12 }
 0x5ce   :  { %v1593_v45 = vsel %vm1590_vm9, %v1592_v44, %v1588_v6  ;;  %v1607_v49 = vsel %vm1606_vm10, %v1999_v15, %v1603_v18  ;;  %v1621_v1 = vsub.f32 1.0, %v1620_v27 }
 0x5cf   :  { %v1612_v24 = vsel %vm1609_vm11, %v1611_v46, %v1607_v49  ;;  %v1638_v26 = vmul.f32 %v2003_v41, %v1593_v45 }
 0x5d0   :  { %v1637_v30 = vmul.f32 %v1635_v36, %v1612_v24  ;;  %v1622_v39 = vmul.f32 %v2001_v2, %v1621_v1 }
 0x5d2   :  { %v1639_v28 = vadd.f32 %v1638_v26, %v1637_v30  ;;  %v1623_v40 = vadd.f32 %v2001_v2, %v1622_v39 }
 0x5d4   :  { %2004 = vtanh.f32 %v1639_v28  ;;  %v1627_v42 = vsel %vm1626_vm14, %v2001_v2, %v1623_v40 }
 0x5d5   :  { %v1632_v31 = vsel %vm1629_vm15, %v1631_v29, %v1627_v42 }
 0x5da   :  { %v2005_v54 = vpop.eup %2004 }
 0x5db   :  { %v1641_v5 = vmul.f32 %v2005_v54, %v1632_v31 }
 0x5dd   :  { %1642 = vst [vmem:[#allocation2 + $0x8] sm:$0xc0] %v1641_v5 }
 0x5e4   :  { %v1644_v32 = vld [vmem:[#allocation2 + $0x8] sm:$0xff] }
 0x5e5   :  { %1680 = vmatmul.f32.gmra.mxu0 %v1644_v32  ;;  %1719 = vmatmul.f32.gmra.mxu1 %v1644_v32 }
 0x662   :  { %v1681_v11 = vpop.f32.mrf.mxu0  ;;  %v1720_v38 = vpop.f32.mrf.mxu1 }
 0x663   :  { %v1723_v55 = vadd.f32 %v1681_v11, %v1678_v23  ;;  %v1760_v16 = vadd.f32 %v1720_v38, %v1717_v14 }
 0x665   :  { %v1724_v47 = vrot.slane %v1723_v55, 4  ;;  %v1761_v20 = vrot.slane %v1760_v16, 4 }
 0x667   :  { %v1725_v33 = vadd.f32 %v1724_v47, %v1723_v55  ;;  %v1762_v22 = vadd.f32 %v1761_v20, %v1760_v16 }
 0x669   :  { %v1726_v13 = vrot.slane %v1725_v33, 2  ;;  %v1763_v53 = vrot.slane %v1762_v22, 2 }
 0x66b   :  { %v1727_v61 = vadd.f32 %v1726_v13, %v1725_v33  ;;  %v1764_v56 = vadd.f32 %v1763_v53, %v1762_v22 }
 0x66d   :  { %v1728_v59 = vrot.slane %v1727_v61, 1  ;;  %v1765_v60 = vrot.slane %v1764_v56, 1 }
 0x66f   :  { %v1729_v63 = vadd.f32 %v1728_v59, %v1727_v61  ;;  %v1766_v0 = vadd.f32 %v1765_v60, %v1764_v56 }
 0x671   :  { %v1730_v3 = vmul.f32 0.0625, %v1729_v63  ;;  %v1767_v4 = vmul.f32 0.0625, %v1766_v0 }
 0x673   :  { %v1731_v7 = vsub.f32 %v1678_v23, %v1730_v3  ;;  %v1732_v8 = vsub.f32 %v1681_v11, %v1730_v3  ;;  %v1768_v58 = vsub.f32 %v1717_v14, %v1767_v4  ;;  %v1769_v9 = vsub.f32 %v1720_v38, %v1767_v4 }
 0x675   :  { %v1733_v62 = vmul.f32 %v1731_v7, %v1731_v7  ;;  %v1734_v10 = vmul.f32 %v1732_v8, %v1732_v8  ;;  %v1770_v21 = vmul.f32 %v1768_v58, %v1768_v58  ;;  %v1771_v15 = vmul.f32 %v1769_v9, %v1769_v9 }
 0x677   :  { %v1735_v17 = vadd.f32 %v1734_v10, %v1733_v62  ;;  %v1772_v48 = vadd.f32 %v1771_v15, %v1770_v21 }
 0x679   :  { %v1736_v25 = vrot.slane %v1735_v17, 4  ;;  %v1773_v51 = vrot.slane %v1772_v48, 4 }
 0x67b   :  { %v1737_v52 = vadd.f32 %v1736_v25, %v1735_v17  ;;  %v1774_v50 = vadd.f32 %v1773_v51, %v1772_v48 }
 0x67d   :  { %v1738_v57 = vrot.slane %v1737_v52, 2  ;;  %v1775_v37 = vrot.slane %v1774_v50, 2 }
 0x67f   :  { %v1739_v19 = vadd.f32 %v1738_v57, %v1737_v52  ;;  %v1776_v35 = vadd.f32 %v1775_v37, %v1774_v50 }
 0x681   :  { %v1740_v2 = vrot.slane %v1739_v19, 1  ;;  %v1777_v43 = vrot.slane %v1776_v35, 1 }
 0x683   :  { %v1741_v44 = vadd.f32 %v1740_v2, %v1739_v19  ;;  %v1778_v18 = vadd.f32 %v1777_v43, %v1776_v35 }
 0x685   :  { %v1742_v27 = vmul.f32 0.0625, %v1741_v44  ;;  %v1779_v36 = vmul.f32 0.0625, %v1778_v18 }
 0x687   :  { %v1743_v46 = vadd.f32 1e-05, %v1742_v27  ;;  %v1780_v6 = vadd.f32 1e-05, %v1779_v36 }
 0x689   :  { %2006 = vrsqrt.f32 %v1743_v46  ;;  %vm1750_vm2 = vweird.f32 %v1743_v46  ;;  %vm1787_vm4 = vweird.f32 %v1780_v6 }
 0x68a   :  { %2008 = vrsqrt.f32 %v1780_v6 }
 0x68f   :  { %v2007_v41 = vpop.eup %2006 }
 0x690   :  { %v2009_v45 = vpop.eup %2008  ;;  %v1745_v49 = vmul.f32 %v2007_v41, %v1743_v46  ;;  %vm1751_vm0 = vweird.f32 %v2007_v41 }
 0x691   :  { %v1782_v1 = vmul.f32 %v2009_v45, %v1780_v6  ;;  %vm1788_vm1 = vweird.f32 %v2009_v45  ;;  %vm1752_vm3 = vmor %vm1750_vm2, %vm1751_vm0 }
 0x692   :  { %v1746_v24 = vmul.f32 %v2007_v41, %v1745_v49  ;;  %vm1789_vm5 = vmor %vm1787_vm4, %vm1788_vm1 }
 0x693   :  { %v1783_v26 = vmul.f32 %v2009_v45, %v1782_v1 }
 0x694   :  { %v1747_v30 = vmul.f32 0.5, %v1746_v24 }
 0x695   :  { %v1784_v39 = vmul.f32 0.5, %v1783_v26 }
 0x696   :  { %v1748_v28 = vsub.f32 1.5, %v1747_v30 }
 0x697   :  { %v1785_v40 = vsub.f32 1.5, %v1784_v39 }
 0x698   :  { %v1749_v34 = vmul.f32 %v2007_v41, %v1748_v28 }
 0x699   :  { %v1786_v12 = vmul.f32 %v2009_v45, %v1785_v40 }
 0x69a   :  { %v1753_v42 = vsel %vm1752_vm3, %v2007_v41, %v1749_v34 }
 0x69b   :  { %v1754_v29 = vmul.f32 %v1753_v42, %v1731_v7  ;;  %v1755_v54 = vmul.f32 %v1753_v42, %v1732_v8  ;;  %v1790_v31 = vsel %vm1789_vm5, %v2009_v45, %v1786_v12 }
 0x69c   :  { %v1791_v5 = vmul.f32 %v1790_v31, %v1768_v58  ;;  %v1792_v32 = vmul.f32 %v1790_v31, %v1769_v9 }
 0x69d   :  { %v1756_v23 = vmul.f32 0.90068287, %v1754_v29  ;;  %v1757_v14 = vmul.f32 0.90068287, %v1755_v54 }
 0x69e   :  { %v1793_v11 = vmul.f32 0.4344771, %v1791_v5  ;;  %v1794_v38 = vmul.f32 0.4344771, %v1792_v32 }
 0x69f   :  { %1759 = vst [vmem:[#allocation14 + $0x8] sm:$0xff] %v1757_v14 }
 0x6a0   :  { %1758 = vst [vmem:[#allocation14] sm:$0xff] %v1756_v23  ;;  %v1795_v55 = vmul.f32 1.442695, %v1793_v11  ;;  %v1797_v16 = vmul.f32 1.442695, %v1794_v38 }
 0x6a1   :  { %1813 = dma.vmem_to_hbm [thread:$0]  %s1806_s5, 256, %s1808_s10, [#allocation5], %s2287_s19, %s2287_s19, %s2288_s20  }
 0x6a2   :  { %2010 = vpow2.f32 %v1795_v55 }
 0x6a3   :  { %2012 = vpow2.f32 %v1797_v16 }
 0x6a8   :  { %v2011_v47 = vpop.eup %2010 }
 0x6a9   :  { %v2013_v20 = vpop.eup %2012  ;;  %1799 = vst [vmem:[#allocation15] sm:$0xff] %v2011_v47 }
 0x6aa   :  { %1800 = vst [vmem:[#allocation15 + $0x8] sm:$0xff] %v2013_v20 }
 0x6ab   :  { %1826 = dma.vmem_to_hbm [thread:$0]  %s1819_s6, 256, %s1821_s14, [#allocation16], %s2287_s19, %s2287_s19, %s2288_s20  }
 0x6ac   :  { %2278 = dma.done.wait [#allocation5], 256  }
 0x6ad   :  { %2279 = vsyncadd [#allocation5], 4294967040 }
 0x6ae   :  { %2280 = dma.done.wait [#allocation16], 256  }
 0x6af   :  { %2281 = vsyncadd [#allocation16], 4294967040 }
 0x6b0   :  { %1835 = vsyncpa [#allocation4], 1 }
 0x6b1   :  { %1836 = vsyncpa [#allocation7], 1 }
 0x6b2   :  { %1837 = vsyncpa [#allocation10], 1 }
 0x6b3   :  { %1838 = vsyncpa [#allocation13], 1 }
 0x6b4   :  { %1839 = vsyncpa [#allocation5], 1 }
 0x6b5   :  { %1840 = vsyncpa [#allocation16], 1 }

</bundles_post_ra>
